<compile_context>
chip_gen: v7x
topology: tpu7x:2x2x1
jax: 0.10.0
libtpu: 0.0.40
codegen_flags: <defaults>
</compile_context>

<pallas_src>
import functools

import jax
import jax.numpy as jnp
from jax.experimental import pallas as pl
from jax.experimental.pallas import tpu as pltpu

# Plain Python float so it lowers as a literal (the previous jnp.float32 module-level
# constant was captured as a jaxpr const and broke tracing).
NEG_FILL = -1.0e30


def _round_up(x, mult):
    return ((x + mult - 1) // mult) * mult


def _triplet_loss_kernel(
    xc_ref, tc_ref, xr_ref, tr_ref,                     # inputs
    out_ref,                                            # (tile_n, 1) per-row loss
    sim_ref, mpos_ref, mneg_ref, cnt_ref, loss_ref,     # VMEM scratch
    *, margin, n_real, m_real, tile_n, tile_m,
):
    i_n = pl.program_id(0)
    phase = pl.program_id(1)
    j = pl.program_id(2)
    last_j = pl.num_programs(2) - 1

    # ---- reset the per-row accumulators at the first step of every n-tile ----
    @pl.when(jnp.logical_and(phase == 0, j == 0))
    def _():
        mpos_ref[...] = jnp.full(mpos_ref.shape, NEG_FILL, jnp.float32)
        mneg_ref[...] = jnp.full(mneg_ref.shape, NEG_FILL, jnp.float32)
        cnt_ref[...] = jnp.zeros(cnt_ref.shape, jnp.float32)
        loss_ref[...] = jnp.zeros(loss_ref.shape, jnp.float32)

    # ---- masks for this (n-tile, m-tile) --------------------------------------
    # col_g is needed anyway to mask m-padding, so the iota is shared with the
    # diagonal (self-pair) exclusion instead of being gated per-tile.
    match = tc_ref[...] == tr_ref[...]                                 # (tile_n, tile_m)
    col_g = j * tile_m + jax.lax.broadcasted_iota(jnp.int32, (tile_n, tile_m), 1)
    row_g = i_n * tile_n + jax.lax.broadcasted_iota(jnp.int32, (tile_n, tile_m), 0)
    valid_col = col_g < m_real
    # only the first n columns of the bank carry the batch itself
    not_self = jnp.logical_or(col_g != row_g, col_g >= n_real)
    pos_mask = jnp.logical_and(match, jnp.logical_and(not_self, valid_col))
    neg_mask = jnp.logical_and(jnp.logical_not(match), valid_col)

    # ---- phase 0: similarity tile (MXU) + running row maxima ------------------
    @pl.when(phase == 0)
    def _():
        sim = jax.lax.dot_general(
            xc_ref[...], xr_ref[...], (((1,), (1,)), ((), ())),
            preferred_element_type=jnp.float32)                        # (tile_n, tile_m)
        sim_ref[j] = sim                                               # stash for phase 1
        mpos_ref[...] = jnp.maximum(
            mpos_ref[...],
            jnp.max(jnp.where(pos_mask, sim, NEG_FILL), axis=1, keepdims=True))
        mneg_ref[...] = jnp.maximum(
            mneg_ref[...],
            jnp.max(jnp.where(neg_mask, sim, NEG_FILL), axis=1, keepdims=True))
        cnt_ref[...] += jnp.sum(pos_mask.astype(jnp.float32), axis=1, keepdims=True)

    # ---- phase 1: thresholded sums, read back from the VMEM sim scratch -------
    @pl.when(phase == 1)
    def _():
        sim = sim_ref[j]
        # pos_pair_ < neg_pair_[-1] + margin
        sel_pos = jnp.logical_and(pos_mask, sim < (mneg_ref[...] + margin)).astype(jnp.float32)
        # neg_pair_ > max(0.6, pos_pair_[-1]) - margin
        thr = jnp.maximum(0.6, mpos_ref[...]) - margin
        sel_neg = jnp.logical_and(neg_mask, sim > thr).astype(jnp.float32)
        # sum(1 - sim) over selected positives = count - sum(sim)  (reuses the count)
        pos_cnt = jnp.sum(sel_pos, axis=1, keepdims=True)
        pos_sum = jnp.sum(sim * sel_pos, axis=1, keepdims=True)
        neg_sum = jnp.sum(sim * sel_neg, axis=1, keepdims=True)
        loss_ref[...] += (pos_cnt - pos_sum) + neg_sum

        @pl.when(j == last_j)
        def _():
            # Rows with no positive pair contribute 0 (matches `else: loss.append(0)`);
            # padded rows are zeroed as well.  Output is written once per n-tile.
            row_g1 = i_n * tile_n + jax.lax.broadcasted_iota(jnp.int32, (tile_n, 1), 0)
            keep = jnp.logical_and(cnt_ref[...] > 0.0, row_g1 < n_real)
            out_ref[...] = jnp.where(keep, loss_ref[...], 0.0)


def triplet_loss(inputs_col, targets_col, inputs_row, targets_row,
                 margin=0.1, tile_n=128, tile_m=256):
    n, d = inputs_col.shape
    m, d2 = inputs_row.shape
    assert d == d2, "feature dims must match"

    # TPU-aligned tile sizes (sublane 8 / lane 128), clipped for small problems.
    tile_n = min(tile_n, _round_up(n, 8))
    tile_m = min(tile_m, _round_up(m, 128))
    n_pad = _round_up(n, tile_n)
    m_pad = _round_up(m, tile_m)
    d_pad = _round_up(d, 128)            # lane-dense contraction dim for the MXU

    dt = inputs_col.dtype                # native dtype in, f32 accumulate in-kernel
    xc = jnp.zeros((n_pad, d_pad), dt).at[:n, :d].set(inputs_col.astype(dt))
    xr = jnp.zeros((m_pad, d_pad), dt).at[:m, :d].set(inputs_row.astype(dt))
    tc = jnp.full((n_pad, 1), -1, jnp.int32).at[:n, 0].set(targets_col.astype(jnp.int32))
    tr = jnp.full((1, m_pad), -2, jnp.int32).at[0, :m].set(targets_row.astype(jnp.int32))

    nn = n_pad // tile_n
    nm = m_pad // tile_m
    elt = jnp.dtype(dt).itemsize

    # VMEM budget: sim scratch + double-buffered input blocks + small accumulators.
    vmem_bytes = (nm * tile_n * tile_m * 4          # sim scratch (== tile_n * m_pad * 4)
                  + 4 * tile_n * 4                  # row accumulators
                  + 2 * tile_n * d_pad * elt        # xc double-buffer
                  + 2 * tile_m * d_pad * elt        # xr double-buffer
                  + 2 * (tile_n + tile_m) * 4       # label blocks
                  + 2 * tile_n * 4)                 # output blocks
    # Stay well inside v7x's 64 MiB physical VMEM (v5e/v6e have 128 MiB).
    assert vmem_bytes < 40 * 1024 * 1024, (
        "sim scratch too large: shrink tile_n/tile_m or drop the VMEM sim scratch")
    vmem_limit = min(max(2 * vmem_bytes, 32 * 1024 * 1024), 60 * 1024 * 1024)

    kernel = functools.partial(
        _triplet_loss_kernel, margin=float(margin),
        n_real=n, m_real=m, tile_n=tile_n, tile_m=tile_m)

    # During phase 1 the row-bank index_map parks on its last block, so the
    # (m, d) bank is read from HBM exactly once per n-tile.
    def xr_index(i, p, j):
        return ((1 - p) * j + p * (nm - 1), 0)

    row_losses = pl.pallas_call(
        kernel,
        out_shape=jax.ShapeDtypeStruct((n_pad, 1), jnp.float32),
        grid_spec=pltpu.PrefetchScalarGridSpec(
            num_scalar_prefetch=0,
            grid=(nn, 2, nm),
            in_specs=[
                pl.BlockSpec((tile_n, d_pad), lambda i, p, j: (i, 0)),   # xc: resident per n-tile
                pl.BlockSpec((tile_n, 1), lambda i, p, j: (i, 0)),       # targets_col
                pl.BlockSpec((tile_m, d_pad), xr_index),                 # xr: streamed in phase 0
                pl.BlockSpec((1, tile_m), lambda i, p, j: (0, j)),       # targets_row tile
            ],
            out_specs=pl.BlockSpec((tile_n, 1), lambda i, p, j: (i, 0)),
            scratch_shapes=[
                pltpu.VMEM((nm, tile_n, tile_m), jnp.float32),   # sim scratch (VMEM-resident)
                pltpu.VMEM((tile_n, 1), jnp.float32),            # running max_pos
                pltpu.VMEM((tile_n, 1), jnp.float32),            # running max_neg
                pltpu.VMEM((tile_n, 1), jnp.float32),            # positive count
                pltpu.VMEM((tile_n, 1), jnp.float32),            # row-loss accumulator
            ]),
        compiler_params=pltpu.CompilerParams(
            dimension_semantics=("parallel", "arbitrary", "arbitrary"),
            vmem_limit_bytes=vmem_limit,
        ),
    )(xc, tc, xr, tr)

    # Padded rows were zeroed in-kernel; final tiny reduction + mean over the real n.
    return jnp.sum(row_losses) / jnp.float32(n)


# TODO(synk): rows with zero negative pairs raise IndexError in the PyTorch reference
# (neg_pair_[-1] on an empty tensor); here such rows simply contribute 0 to the loss.

if __name__ == "__main__":
    key = jax.random.PRNGKey(0)
    k1, k2, k3, k4 = jax.random.split(key, 4)

    # batch of n embeddings vs. a memory bank of m embeddings whose first n rows
    # are the batch itself (the usual cross-batch-memory setup); d is the embed dim.
    n, m, d = 100, 384, 96

    inputs_col = jax.random.normal(k1, (n, d), jnp.float32)
    inputs_col = inputs_col / jnp.linalg.norm(inputs_col, axis=1, keepdims=True)
    extra = jax.random.normal(k2, (m - n, d), jnp.float32)
    extra = extra / jnp.linalg.norm(extra, axis=1, keepdims=True)
    inputs_row = jnp.concatenate([inputs_col, extra], axis=0)

    targets_col = jax.random.randint(k3, (n,), 0, 8, dtype=jnp.int32)
    targets_row = jnp.concatenate(
        [targets_col, jax.random.randint(k4, (m - n,), 0, 8, dtype=jnp.int32)], axis=0)

    loss = triplet_loss(inputs_col, targets_col, inputs_row, targets_row, margin=0.1)
    jax.block_until_ready(loss)
    print("KERNEL_OK")
</pallas_src>

<mosaic_0001>
module attributes {stable_mosaic.version = 11 : i64} {
  func.func @_triplet_loss_kernel(%arg0: i32, %arg1: i32, %arg2: i32, %arg3: memref<104x128xf32, #tpu.memory_space<vmem>>, %arg4: memref<104x1xi32, #tpu.memory_space<vmem>>, %arg5: memref<256x128xf32, #tpu.memory_space<vmem>>, %arg6: memref<1x256xi32, #tpu.memory_space<vmem>>, %arg7: memref<104x1xf32, #tpu.memory_space<vmem>>, %arg8: memref<2x104x256xf32, #tpu.memory_space<vmem>>, %arg9: memref<104x1xf32, #tpu.memory_space<vmem>>, %arg10: memref<104x1xf32, #tpu.memory_space<vmem>>, %arg11: memref<104x1xf32, #tpu.memory_space<vmem>>, %arg12: memref<104x1xf32, #tpu.memory_space<vmem>>) attributes {dimension_semantics = [#tpu.dimension_semantics<parallel>, #tpu.dimension_semantics<arbitrary>, #tpu.dimension_semantics<arbitrary>], iteration_bounds = array<i64: 1, 2, 2>, scalar_prefetch = 0 : i64, scratch_operands = 5 : i64, tpu.core_type = #tpu.core_type<tc>, window_params = [{transform_indices = @transform_0, window_bounds = array<i64: 104, 128>}, {transform_indices = @transform_1, window_bounds = array<i64: 104, 1>}, {transform_indices = @transform_2, window_bounds = array<i64: 256, 128>}, {transform_indices = @transform_3, window_bounds = array<i64: 1, 256>}, {transform_indices = @transform_4, window_bounds = array<i64: 104, 1>}]} {
    %c0_i32 = arith.constant 0 : i32
    %0 = arith.cmpi eq, %arg1, %c0_i32 : i32
    %c0_i32_0 = arith.constant 0 : i32
    %1 = arith.cmpi eq, %arg2, %c0_i32_0 : i32
    %2 = arith.andi %0, %1 : i1
    %3 = arith.extui %2 : i1 to i32
    %c0_i32_1 = arith.constant 0 : i32
    %4 = arith.cmpi ne, %3, %c0_i32_1 : i32
    scf.if %4 {
      %cst_8 = arith.constant -1.000000e+30 : f32
      %34 = vector.broadcast %cst_8 : f32 to vector<104x1xf32>
      %c0_9 = arith.constant 0 : index
      %c0_10 = arith.constant 0 : index
      %35 = vector.load %arg9[%c0_9, %c0_10] : memref<104x1xf32, #tpu.memory_space<vmem>>, vector<104x1xf32>
      tpu.vector_store %arg9[%c0_9, %c0_10], %34 {strides = array<i32>} : memref<104x1xf32, #tpu.memory_space<vmem>>, vector<104x1xf32>,
      %cst_11 = arith.constant -1.000000e+30 : f32
      %36 = vector.broadcast %cst_11 : f32 to vector<104x1xf32>
      %c0_12 = arith.constant 0 : index
      %c0_13 = arith.constant 0 : index
      %37 = vector.load %arg10[%c0_12, %c0_13] : memref<104x1xf32, #tpu.memory_space<vmem>>, vector<104x1xf32>
      tpu.vector_store %arg10[%c0_12, %c0_13], %36 {strides = array<i32>} : memref<104x1xf32, #tpu.memory_space<vmem>>, vector<104x1xf32>,
      %cst_14 = arith.constant 0.000000e+00 : f32
      %38 = vector.broadcast %cst_14 : f32 to vector<104x1xf32>
      %c0_15 = arith.constant 0 : index
      %c0_16 = arith.constant 0 : index
      %39 = vector.load %arg11[%c0_15, %c0_16] : memref<104x1xf32, #tpu.memory_space<vmem>>, vector<104x1xf32>
      tpu.vector_store %arg11[%c0_15, %c0_16], %38 {strides = array<i32>} : memref<104x1xf32, #tpu.memory_space<vmem>>, vector<104x1xf32>,
      %cst_17 = arith.constant 0.000000e+00 : f32
      %40 = vector.broadcast %cst_17 : f32 to vector<104x1xf32>
      %c0_18 = arith.constant 0 : index
      %c0_19 = arith.constant 0 : index
      %41 = vector.load %arg12[%c0_18, %c0_19] : memref<104x1xf32, #tpu.memory_space<vmem>>, vector<104x1xf32>
      tpu.vector_store %arg12[%c0_18, %c0_19], %40 {strides = array<i32>} : memref<104x1xf32, #tpu.memory_space<vmem>>, vector<104x1xf32>,
    } else {
    }
    %c0 = arith.constant 0 : index
    %c0_2 = arith.constant 0 : index
    %5 = vector.load %arg4[%c0, %c0_2] : memref<104x1xi32, #tpu.memory_space<vmem>>, vector<104x1xi32>
    %c0_3 = arith.constant 0 : index
    %c0_4 = arith.constant 0 : index
    %6 = vector.load %arg6[%c0_3, %c0_4] : memref<1x256xi32, #tpu.memory_space<vmem>>, vector<1x256xi32>
    %7 = vector.broadcast %5 : vector<104x1xi32> to vector<104x256xi32>
    %8 = vector.broadcast %6 : vector<1x256xi32> to vector<104x256xi32>
    %9 = arith.cmpi eq, %7, %8 : vector<104x256xi32>
    %c256_i32 = arith.constant 256 : i32
    %10 = arith.muli %arg2, %c256_i32 : i32
    %11 = tpu.iota {dimensions = array<i32: 1>} : vector<104x256xi32>
    %12 = vector.broadcast %10 : i32 to vector<104x256xi32>
    %13 = arith.addi %12, %11 : vector<104x256xi32>
    %c104_i32 = arith.constant 104 : i32
    %14 = arith.muli %arg0, %c104_i32 : i32
    %15 = tpu.iota {dimensions = array<i32: 0>} : vector<104x256xi32>
    %16 = vector.broadcast %14 : i32 to vector<104x256xi32>
    %17 = arith.addi %16, %15 : vector<104x256xi32>
    %c384_i32 = arith.constant 384 : i32
    %18 = vector.broadcast %c384_i32 : i32 to vector<104x256xi32>
    %19 = arith.cmpi slt, %13, %18 : vector<104x256xi32>
    %20 = arith.cmpi ne, %13, %17 : vector<104x256xi32>
    %c100_i32 = arith.constant 100 : i32
    %21 = vector.broadcast %c100_i32 : i32 to vector<104x256xi32>
    %22 = arith.cmpi sge, %13, %21 : vector<104x256xi32>
    %23 = arith.ori %20, %22 : vector<104x256xi1>
    %24 = arith.andi %23, %19 : vector<104x256xi1>
    %25 = arith.andi %9, %24 : vector<104x256xi1>
    %cst = arith.constant dense<true> : vector<104x256xi1>
    %26 = arith.xori %9, %cst : vector<104x256xi1>
    %27 = arith.andi %26, %19 : vector<104x256xi1>
    %c0_i32_5 = arith.constant 0 : i32
    %28 = arith.cmpi eq, %arg1, %c0_i32_5 : i32
    %29 = arith.extui %28 : i1 to i32
    %c0_i32_6 = arith.constant 0 : i32
    %30 = arith.cmpi ne, %29, %c0_i32_6 : i32
    scf.if %30 {
      %c0_8 = arith.constant 0 : index
      %c0_9 = arith.constant 0 : index
      %34 = vector.load %arg3[%c0_8, %c0_9] : memref<104x128xf32, #tpu.memory_space<vmem>>, vector<104x128xf32>
      %c0_10 = arith.constant 0 : index
      %c0_11 = arith.constant 0 : index
      %35 = vector.load %arg5[%c0_10, %c0_11] : memref<256x128xf32, #tpu.memory_space<vmem>>, vector<256x128xf32>
      %cst_12 = arith.constant dense<0.000000e+00> : vector<104x256xf32>
      %36 = tpu.matmul %34, %35, %cst_12 {dimension_numbers = #tpu.dot_dimension_numbers<[1], [1], [0], [0], [0, 0, 1, 0], [], []>} : vector<104x128xf32>, vector<256x128xf32>, vector<104x256xf32> -> vector<104x256xf32>
      %37 = arith.index_cast %arg2 : i32 to index
      %c0_13 = arith.constant 0 : index
      %c0_14 = arith.constant 0 : index
      %38 = vector.load %arg8[%37, %c0_13, %c0_14] : memref<2x104x256xf32, #tpu.memory_space<vmem>>, vector<1x104x256xf32>
      %39 = vector.shape_cast %38 : vector<1x104x256xf32> to vector<104x256xf32>
      %40 = vector.shape_cast %36 : vector<104x256xf32> to vector<1x104x256xf32>
      tpu.vector_store %arg8[%37, %c0_13, %c0_14], %40 {strides = array<i32>} : memref<2x104x256xf32, #tpu.memory_space<vmem>>, vector<1x104x256xf32>,
      %c0_15 = arith.constant 0 : index
      %c0_16 = arith.constant 0 : index
      %41 = vector.load %arg9[%c0_15, %c0_16] : memref<104x1xf32, #tpu.memory_space<vmem>>, vector<104x1xf32>
      %cst_17 = arith.constant -1.000000e+30 : f32
      %42 = vector.broadcast %cst_17 : f32 to vector<104x256xf32>
      %43 = arith.select %25, %36, %42 : vector<104x256xi1>, vector<104x256xf32>
      %cst_18 = arith.constant dense<0xFF800000> : vector<104xf32>
      %44 = vector.multi_reduction <maximumf>, %43, %cst_18 [1] : vector<104x256xf32> to vector<104xf32>
      %45 = vector.shape_cast %44 : vector<104xf32> to vector<104x1xf32>
      %46 = arith.maximumf %41, %45 : vector<104x1xf32>
      %c0_19 = arith.constant 0 : index
      %c0_20 = arith.constant 0 : index
      %47 = vector.load %arg9[%c0_19, %c0_20] : memref<104x1xf32, #tpu.memory_space<vmem>>, vector<104x1xf32>
      tpu.vector_store %arg9[%c0_19, %c0_20], %46 {strides = array<i32>} : memref<104x1xf32, #tpu.memory_space<vmem>>, vector<104x1xf32>,
      %c0_21 = arith.constant 0 : index
      %c0_22 = arith.constant 0 : index
      %48 = vector.load %arg10[%c0_21, %c0_22] : memref<104x1xf32, #tpu.memory_space<vmem>>, vector<104x1xf32>
      %cst_23 = arith.constant -1.000000e+30 : f32
      %49 = vector.broadcast %cst_23 : f32 to vector<104x256xf32>
      %50 = arith.select %27, %36, %49 : vector<104x256xi1>, vector<104x256xf32>
      %cst_24 = arith.constant dense<0xFF800000> : vector<104xf32>
      %51 = vector.multi_reduction <maximumf>, %50, %cst_24 [1] : vector<104x256xf32> to vector<104xf32>
      %52 = vector.shape_cast %51 : vector<104xf32> to vector<104x1xf32>
      %53 = arith.maximumf %48, %52 : vector<104x1xf32>
      %c0_25 = arith.constant 0 : index
      %c0_26 = arith.constant 0 : index
      %54 = vector.load %arg10[%c0_25, %c0_26] : memref<104x1xf32, #tpu.memory_space<vmem>>, vector<104x1xf32>
      tpu.vector_store %arg10[%c0_25, %c0_26], %53 {strides = array<i32>} : memref<104x1xf32, #tpu.memory_space<vmem>>, vector<104x1xf32>,
      %c0_27 = arith.constant 0 : index
      %c0_28 = arith.constant 0 : index
      %55 = vector.load %arg11[%c0_27, %c0_28] : memref<104x1xf32, #tpu.memory_space<vmem>>, vector<104x1xf32>
      %56 = arith.extui %25 : vector<104x256xi1> to vector<104x256xi32>
      %57 = arith.sitofp %56 : vector<104x256xi32> to vector<104x256xf32>
      %cst_29 = arith.constant dense<0.000000e+00> : vector<104xf32>
      %58 = vector.multi_reduction <add>, %57, %cst_29 [1] : vector<104x256xf32> to vector<104xf32>
      %59 = vector.shape_cast %58 : vector<104xf32> to vector<104x1xf32>
      %60 = arith.addf %55, %59 : vector<104x1xf32>
      %c0_30 = arith.constant 0 : index
      %c0_31 = arith.constant 0 : index
      %61 = vector.load %arg11[%c0_30, %c0_31] : memref<104x1xf32, #tpu.memory_space<vmem>>, vector<104x1xf32>
      tpu.vector_store %arg11[%c0_30, %c0_31], %60 {strides = array<i32>} : memref<104x1xf32, #tpu.memory_space<vmem>>, vector<104x1xf32>,
    } else {
    }
    %c1_i32 = arith.constant 1 : i32
    %31 = arith.cmpi eq, %arg1, %c1_i32 : i32
    %32 = arith.extui %31 : i1 to i32
    %c0_i32_7 = arith.constant 0 : i32
    %33 = arith.cmpi ne, %32, %c0_i32_7 : i32
    scf.if %33 {
      %34 = arith.index_cast %arg2 : i32 to index
      %c0_8 = arith.constant 0 : index
      %c0_9 = arith.constant 0 : index
      %35 = vector.load %arg8[%34, %c0_8, %c0_9] : memref<2x104x256xf32, #tpu.memory_space<vmem>>, vector<1x104x256xf32>
      %36 = vector.shape_cast %35 : vector<1x104x256xf32> to vector<104x256xf32>
      %c0_10 = arith.constant 0 : index
      %c0_11 = arith.constant 0 : index
      %37 = vector.load %arg10[%c0_10, %c0_11] : memref<104x1xf32, #tpu.memory_space<vmem>>, vector<104x1xf32>
      %cst_12 = arith.constant 1.000000e-01 : f32
      %38 = vector.broadcast %cst_12 : f32 to vector<104x1xf32>
      %39 = arith.addf %37, %38 : vector<104x1xf32>
      %40 = vector.broadcast %39 : vector<104x1xf32> to vector<104x256xf32>
      %41 = arith.cmpf olt, %36, %40 : vector<104x256xf32>
      %42 = arith.andi %25, %41 : vector<104x256xi1>
      %43 = arith.extui %42 : vector<104x256xi1> to vector<104x256xi32>
      %44 = arith.sitofp %43 : vector<104x256xi32> to vector<104x256xf32>
      %c0_13 = arith.constant 0 : index
      %c0_14 = arith.constant 0 : index
      %45 = vector.load %arg9[%c0_13, %c0_14] : memref<104x1xf32, #tpu.memory_space<vmem>>, vector<104x1xf32>
      %cst_15 = arith.constant 6.000000e-01 : f32
      %46 = vector.broadcast %cst_15 : f32 to vector<104x1xf32>
      %47 = arith.maximumf %46, %45 : vector<104x1xf32>
      %cst_16 = arith.constant 1.000000e-01 : f32
      %48 = vector.broadcast %cst_16 : f32 to vector<104x1xf32>
      %49 = arith.subf %47, %48 : vector<104x1xf32>
      %50 = vector.broadcast %49 : vector<104x1xf32> to vector<104x256xf32>
      %51 = arith.cmpf ogt, %36, %50 : vector<104x256xf32>
      %52 = arith.andi %27, %51 : vector<104x256xi1>
      %53 = arith.extui %52 : vector<104x256xi1> to vector<104x256xi32>
      %54 = arith.sitofp %53 : vector<104x256xi32> to vector<104x256xf32>
      %cst_17 = arith.constant dense<0.000000e+00> : vector<104xf32>
      %55 = vector.multi_reduction <add>, %44, %cst_17 [1] : vector<104x256xf32> to vector<104xf32>
      %56 = vector.shape_cast %55 : vector<104xf32> to vector<104x1xf32>
      %57 = arith.mulf %36, %44 : vector<104x256xf32>
      %cst_18 = arith.constant dense<0.000000e+00> : vector<104xf32>
      %58 = vector.multi_reduction <add>, %57, %cst_18 [1] : vector<104x256xf32> to vector<104xf32>
      %59 = vector.shape_cast %58 : vector<104xf32> to vector<104x1xf32>
      %60 = arith.mulf %36, %54 : vector<104x256xf32>
      %cst_19 = arith.constant dense<0.000000e+00> : vector<104xf32>
      %61 = vector.multi_reduction <add>, %60, %cst_19 [1] : vector<104x256xf32> to vector<104xf32>
      %62 = vector.shape_cast %61 : vector<104xf32> to vector<104x1xf32>
      %c0_20 = arith.constant 0 : index
      %c0_21 = arith.constant 0 : index
      %63 = vector.load %arg12[%c0_20, %c0_21] : memref<104x1xf32, #tpu.memory_space<vmem>>, vector<104x1xf32>
      %64 = arith.subf %56, %59 : vector<104x1xf32>
      %65 = arith.addf %64, %62 : vector<104x1xf32>
      %66 = arith.addf %63, %65 : vector<104x1xf32>
      %c0_22 = arith.constant 0 : index
      %c0_23 = arith.constant 0 : index
      %67 = vector.load %arg12[%c0_22, %c0_23] : memref<104x1xf32, #tpu.memory_space<vmem>>, vector<104x1xf32>
      tpu.vector_store %arg12[%c0_22, %c0_23], %66 {strides = array<i32>} : memref<104x1xf32, #tpu.memory_space<vmem>>, vector<104x1xf32>,
      %c1_i32_24 = arith.constant 1 : i32
      %68 = arith.cmpi eq, %arg2, %c1_i32_24 : i32
      %69 = arith.extui %68 : i1 to i32
      %c0_i32_25 = arith.constant 0 : i32
      %70 = arith.cmpi ne, %69, %c0_i32_25 : i32
      scf.if %70 {
        %c104_i32_26 = arith.constant 104 : i32
        %71 = arith.muli %arg0, %c104_i32_26 : i32
        %72 = tpu.iota {dimensions = array<i32: 0>} : vector<104x1xi32>
        %73 = vector.broadcast %71 : i32 to vector<104x1xi32>
        %74 = arith.addi %73, %72 : vector<104x1xi32>
        %c0_27 = arith.constant 0 : index
        %c0_28 = arith.constant 0 : index
        %75 = vector.load %arg11[%c0_27, %c0_28] : memref<104x1xf32, #tpu.memory_space<vmem>>, vector<104x1xf32>
        %cst_29 = arith.constant 0.000000e+00 : f32
        %76 = vector.broadcast %cst_29 : f32 to vector<104x1xf32>
        %77 = arith.cmpf ogt, %75, %76 : vector<104x1xf32>
        %c100_i32_30 = arith.constant 100 : i32
        %78 = vector.broadcast %c100_i32_30 : i32 to vector<104x1xi32>
        %79 = arith.cmpi slt, %74, %78 : vector<104x1xi32>
        %80 = arith.andi %77, %79 : vector<104x1xi1>
        %c0_31 = arith.constant 0 : index
        %c0_32 = arith.constant 0 : index
        %81 = vector.load %arg12[%c0_31, %c0_32] : memref<104x1xf32, #tpu.memory_space<vmem>>, vector<104x1xf32>
        %cst_33 = arith.constant 0.000000e+00 : f32
        %82 = vector.broadcast %cst_33 : f32 to vector<104x1xf32>
        %83 = arith.select %80, %81, %82 : vector<104x1xi1>, vector<104x1xf32>
        %c0_34 = arith.constant 0 : index
        %c0_35 = arith.constant 0 : index
        %84 = vector.load %arg7[%c0_34, %c0_35] : memref<104x1xf32, #tpu.memory_space<vmem>>, vector<104x1xf32>
        tpu.vector_store %arg7[%c0_34, %c0_35], %83 {strides = array<i32>} : memref<104x1xf32, #tpu.memory_space<vmem>>, vector<104x1xf32>,
      } else {
      }
    } else {
    }
    return
  }
  func.func @transform_0(%arg0: i32, %arg1: i32, %arg2: i32) -> (i32, i32) {
    %c0_i32 = arith.constant 0 : i32
    %c0_i32_0 = arith.constant 0 : i32
    return %arg0, %c0_i32 : i32, i32
  }
  func.func @transform_1(%arg0: i32, %arg1: i32, %arg2: i32) -> (i32, i32) {
    %c0_i32 = arith.constant 0 : i32
    %c0_i32_0 = arith.constant 0 : i32
    return %arg0, %c0_i32 : i32, i32
  }
  func.func @transform_2(%arg0: i32, %arg1: i32, %arg2: i32) -> (i32, i32) {
    %c1_i32 = arith.constant 1 : i32
    %0 = arith.subi %c1_i32, %arg1 : i32
    %1 = arith.muli %0, %arg2 : i32
    %c1_i32_0 = arith.constant 1 : i32
    %2 = arith.muli %arg1, %c1_i32_0 : i32
    %3 = arith.addi %1, %2 : i32
    %c0_i32 = arith.constant 0 : i32
    %c0_i32_1 = arith.constant 0 : i32
    return %3, %c0_i32 : i32, i32
  }
  func.func @transform_3(%arg0: i32, %arg1: i32, %arg2: i32) -> (i32, i32) {
    %c0_i32 = arith.constant 0 : i32
    %c0_i32_0 = arith.constant 0 : i32
    return %c0_i32, %arg2 : i32, i32
  }
  func.func @transform_4(%arg0: i32, %arg1: i32, %arg2: i32) -> (i32, i32) {
    %c0_i32 = arith.constant 0 : i32
    %c0_i32_0 = arith.constant 0 : i32
    return %arg0, %c0_i32 : i32, i32
  }
}

</mosaic_0001>

<bundles_post_ra>
// kernel: tpu_custom_call.1
= control target key start
LH: loop header
LB: loop body
LE: loop exit
PB: predicated region body
PF: predicated region fallthrough
CT: control target
= control target key end

     0   :  { %9 = vsyncpa [#allocation8], 0  ;;  %s4652_s0 = inlined_call_operand.vmem [shape: f32[104,128], index: 0, kind: input, shape index: {}]   ;;  %s4653_s1 = inlined_call_operand.vmem [shape: s32[104,1], index: 1, kind: input, shape index: {}]   ;;  %s4654_s2 = inlined_call_operand.hbm [shape: f32[512,128], index: 2, kind: input, shape index: {}]   ;;  %s4655_s3 = inlined_call_operand.vmem [shape: s32[1,512], index: 3, kind: input, shape index: {}]   ;;  %s4656_s4 = inlined_call_operand.vmem [shape: f32[104,1], index: 4, kind: output, shape index: {}]  }
   0x1   :  { %11 = vsyncpa [#allocation8 + $0x1], 0  ;;  %s2542_s15 = smov 0   ;;  %s2544_s16 = smov 0  }
   0x2   :  { %s2546_s17 = smov 0   ;;  %s2548_s18 = smov 0  }
   0x3   :  { %s2550_s19 = smov 0   ;;  %s2552_s20 = smov 0  }
   0x4   :  { %s2554_s21 = smov 0   ;;  %s2556_s22 = smov 0  }
   0x5 LB: > { %s2104_s23 = sadd.s32 4294967295, %s2505_s22   ;;  %s29_s24 = sadd.s32 1, %s2497_s20  ;;  %s2505_s22 = sphi %s2556_s22, %s17_s22   ;;  %s2501_s21 = sphi %s2554_s21, %s5297_s21   ;;  %s2497_s20 = sphi %s2552_s20, %s5296_s20   ;;  %s2493_s19 = sphi %s2550_s19, %s5295_s19   ;;  %s2489_s18 = sphi %s2548_s18, %s5294_s18   ;;  %s2485_s17 = sphi %s2546_s17, %s5293_s17   ;;  %s2481_s16 = sphi %s2544_s16, %s5292_s16   ;;  %s2477_s15 = sphi %s2542_s15, %s5291_s15  }
   0x6   : > { %p30_p0 = scmp.ge.s32.totalorder %s29_s24, 2  ;;  %s32_s25 = sadd.s32 1, %s2501_s21 }
   0x7   : > { %s92_s26 = ssub.s32 1, %s2501_s21  ;;  %s101_s27 = sadd.s32 1, %s2485_s17 }
   0x8   : > { %s5299_s24 = smov (%p30_p0, %s29_s24), 0  ;;  %s5301_s25 = smov (!%p30_p0, %s32_s25), %s2501_s21 }
   0x9   : > { %s93_s28 = smul.u32 %s2497_s20, %s92_s26  ;;  %p108_p1 = scmp.ne.s32.totalorder %s2485_s17, %s2481_s16 }
   0xa   : > { %p34_p2 = scmp.ge.s32.totalorder %s5301_s25, 2  ;;  %p109_p3 = scmp.eq.s32.totalorder %s2505_s22, 0 }
   0xb   : > { %s94_s29 = sadd.s32 %s2501_s21, %s93_s28  ;;  %p114_p4 = scmp.ne.s32.totalorder %s2481_s16, %s2477_s15 }
   0xc   : > { %s5303_s25 = smov (%p34_p2, %s5301_s25), 0  ;;  %p2596_p5 = por %p109_p3, %p108_p1 }
   0xd   : > { %p115_p6 = scmp.eq.s32.totalorder %s2104_s23, 0  ;;  %s95_s5 = ssub.s32 1, %s5303_s25 }
   0xe   : > { %s96_s6 = smul.u32 %s95_s5, %s5299_s24  ;;  %p2331_p8 = scmp.lt.s32.totalorder %s2505_s22, 4 }
   0xf   : > { %p2602_p7 = por %p115_p6, %p114_p4  ;;  %s208_s8 = sand.u32 1, %s2485_s17  }
  0x10   : > { %s97_s9 = sadd.s32 %s96_s6, %s5303_s25  ;;  %s2109_s11 = sshll.u32 %s208_s8, 8 }
  0x11   : > { %s98_s10 = ssub.s32 %s94_s29, %s97_s9  ;;  %s2216_s12 = sshll.u32 %s94_s29, 12 }
  0x12   : > { %p99_p9 = scmp.eq.s32.totalorder %s98_s10, 0  ;;  %s212_s13 = scalar_lea.vmem [#allocation7], %s2109_s11 }
  0x13   : > { %s222_s14 = sshll.u32 %s212_s13, 4  ;;  %s2615_s28 = scalar_lea.hbm %s4654_s2, %s2216_s12  ;;  %s2617_s14 = int_to_ptr.vmem [resolvable:$true] %s222_s14 }
  0x14   : > { %s2610_s15 = scalar_select %p99_p9, %s2485_s17, %s101_s27  }
  0x15   : > { %p2621_p10 = pnand %p2331_p8, %p2596_p5  ;;  %s2627_s27 = scalar_lea.sflag [#allocation8], %s208_s8 }
  0x16   : > { %s2409_s29 = scalar_lea.hbm %s2615_s28, 4096  ;;  %s2414_s9 = scalar_lea.hbm %s4654_s2, 8192 }
  0x17   : > { %p2410_p13 = scmp.ne.s32.totalorder %s2615_s28, %s2409_s29  ;;  %p2411_p0 = pneg %p2621_p10 }
  0x18   : > { %p2415_p3 = scmp.lt.u32.totalorder %s2615_s28, %s4654_s2  ;;  %p2416_p4 = scmp.lt.u32.totalorder %s2414_s9, %s2409_s29 }
  0x19   : > { %p2412_p1 = pnand %p2411_p0, %p2410_p13  ;;  %p2418_p6 = scmp.lt.u32.totalorder %s2409_s29, %s2615_s28 }
  0x1a   : > { %p2417_p5 = por %p2416_p4, %p2415_p3 }
  0x1b   : > { %p2413_p2 = pneg %p2412_p1 }
  0x1c   : > { %p2419_p8 = por %p2418_p6, %p2417_p5 }
  0x1e   : > { %p2420_p9 = pnand %p2419_p8, %p2413_p2 }
  0x20   : > { %2423 = shalt.err (!%p2420_p9)
}
  0x21   : > { %s2424_s8 = scalar_lea.vmem %s2617_s14, 4096  ;;  %s2507_s12 = smov [#allocation7]  }
  0x22   : > { %p2425_p13 = scmp.ne.s32.totalorder %s2617_s14, %s2424_s8  ;;  %s2429_s13 = sshll.u32 %s2507_s12, 4  ;;  %s2430_s13 = int_to_ptr.vmem [resolvable:$false] %s2429_s13 }
  0x23   : > { %s2431_s23 = scalar_lea.vmem %s2430_s13, 8192  ;;  %p2432_p12 = scmp.lt.s32.totalorder %s2617_s14, %s2430_s13 }
  0x24   : > { %p2427_p1 = pnand %p2425_p13, %p2411_p0  ;;  %p2433_p3 = scmp.lt.s32.totalorder %s2431_s23, %s2424_s8 }
  0x26   : > { %p2428_p11 = pneg %p2427_p1  ;;  %p2434_p4 = por %p2433_p3, %p2432_p12 }
  0x28   : > { %p2435_p5 = pnand %p2434_p4, %p2428_p11 }
  0x2a   : > { %2438 = shalt.err (!%p2435_p5)
}
  0x2b   : > { %s2508_s26 = smov 128   ;;  %s2509_s29 = smov 8  }
  0x2c   : > { %2330 = dma.hbm_to_vmem [thread:$0]  (!%p2621_p10), %s2615_s28, 4096, %s2617_s14, %s2627_s27, %s2508_s26, %s2508_s26, %s2509_s29  }
  0x2d   : > { %p4730_p0 = scmp.lt.s32.totalorder %s2505_s22, 5  ;;  %p4731_p2 = scmp.ge.s32.totalorder %s2505_s22, 1 }
  0x2f   : > { %p239_p6 = pnand %p4731_p2, %p4730_p0 }
  0x31   : > { %242 = sbr.rel (%p239_p6) target bundleno = 1200 (0x4b0), region = 36 }
  0x38   : > { %s244_s6 = sand.u32 1, %s2481_s16  }
  0x39   : > { %s2113_s30 = sshll.u32 %s244_s6, 8  ;;  %s245_s9 = scalar_lea.sflag [#allocation8], %s244_s6 }
  0x3a   : > { %s2660_s10 = scalar_lea.vmem [#allocation7], %s2113_s30 }
  0x3b   : > { %2472 = dma.done.wait (%p2602_p7), %s245_s9, 4096  }
  0x3c   : > { %2474 = vsyncadd (%p2602_p7), %s245_s9, 4294963200  ;;  %s2114_s14 = sshll.u32 %s2489_s18, 1  ;;  %p314_p10 = scmp.eq.s32.totalorder %s2493_s19, 0 }
  0x3d   : > { %p304_p11 = scmp.lt.s32.totalorder %s2114_s14, 3  ;;  %p315_p12 = scmp.eq.s32.totalorder %s2489_s18, 0 }
  0x3f   : > { %s5305_s14 = smov (!%p304_p11, %s2114_s14), 3  ;;  %p316_p8 = pnand %p315_p12, %p314_p10 }
  0x40   : > { %s306_s27 = scalar_lea.vmem %s4655_s3, %s5305_s14  ;;  %vm320_vm0 = vcmask (!%p316_p8), 7168   ;;  %v2510_v0 = vmov (!%p316_p8), -1e+30   ;;  %v2511_v1 = vmov (!%p316_p8), 0.0  }
  0x41   : > { %319 = sbr.rel (%p316_p8) target bundleno = 91 (0x5b), region = 44  ;;  %321 = vst.msk [vmem:[#allocation3] sm:$0xff] (!%p316_p8), %vm320_vm0, %v2510_v0  ;;  %322 = vst.msk [vmem:[#allocation3 + $0x8] sm:$0xff] (!%p316_p8), %vm320_vm0, %v2510_v0 }
  0x42   : > { %323 = vst.msk [vmem:[#allocation3 + $0x10] sm:$0xff] (!%p316_p8), %vm320_vm0, %v2510_v0  ;;  %324 = vst.msk [vmem:[#allocation3 + $0x18] sm:$0xff] (!%p316_p8), %vm320_vm0, %v2510_v0 }
  0x43   : > { %325 = vst.msk [vmem:[#allocation3 + $0x20] sm:$0xff] (!%p316_p8), %vm320_vm0, %v2510_v0  ;;  %326 = vst.msk [vmem:[#allocation3 + $0x28] sm:$0xff] (!%p316_p8), %vm320_vm0, %v2510_v0 }
  0x44   : > { %327 = vst.msk [vmem:[#allocation3 + $0x30] sm:$0xff] (!%p316_p8), %vm320_vm0, %v2510_v0  ;;  %328 = vst.msk [vmem:[#allocation3 + $0x38] sm:$0xff] (!%p316_p8), %vm320_vm0, %v2510_v0 }
  0x45   : > { %329 = vst.msk [vmem:[#allocation3 + $0x40] sm:$0xff] (!%p316_p8), %vm320_vm0, %v2510_v0  ;;  %330 = vst.msk [vmem:[#allocation3 + $0x48] sm:$0xff] (!%p316_p8), %vm320_vm0, %v2510_v0 }
  0x46   : > { %331 = vst.msk [vmem:[#allocation3 + $0x50] sm:$0xff] (!%p316_p8), %vm320_vm0, %v2510_v0  ;;  %332 = vst.msk [vmem:[#allocation3 + $0x58] sm:$0xff] (!%p316_p8), %vm320_vm0, %v2510_v0 }
  0x47   : > { %333 = vst.msk [vmem:[#allocation3 + $0x60] sm:$0xff] (!%p316_p8), %vm320_vm0, %v2510_v0  ;;  %334 = vst.msk [vmem:[#allocation4] sm:$0xff] (!%p316_p8), %vm320_vm0, %v2510_v0 }
  0x48   : > { %335 = vst.msk [vmem:[#allocation4 + $0x8] sm:$0xff] %vm320_vm0, %v2510_v0  ;;  %336 = vst.msk [vmem:[#allocation4 + $0x10] sm:$0xff] %vm320_vm0, %v2510_v0 }
  0x49   : > { %337 = vst.msk [vmem:[#allocation4 + $0x18] sm:$0xff] %vm320_vm0, %v2510_v0  ;;  %338 = vst.msk [vmem:[#allocation4 + $0x20] sm:$0xff] %vm320_vm0, %v2510_v0 }
  0x4a   : > { %339 = vst.msk [vmem:[#allocation4 + $0x28] sm:$0xff] %vm320_vm0, %v2510_v0  ;;  %340 = vst.msk [vmem:[#allocation4 + $0x30] sm:$0xff] %vm320_vm0, %v2510_v0 }
  0x4b   : > { %341 = vst.msk [vmem:[#allocation4 + $0x38] sm:$0xff] %vm320_vm0, %v2510_v0  ;;  %342 = vst.msk [vmem:[#allocation4 + $0x40] sm:$0xff] %vm320_vm0, %v2510_v0 }
  0x4c   : > { %343 = vst.msk [vmem:[#allocation4 + $0x48] sm:$0xff] %vm320_vm0, %v2510_v0  ;;  %344 = vst.msk [vmem:[#allocation4 + $0x50] sm:$0xff] %vm320_vm0, %v2510_v0 }
  0x4d   : > { %345 = vst.msk [vmem:[#allocation4 + $0x58] sm:$0xff] %vm320_vm0, %v2510_v0  ;;  %346 = vst.msk [vmem:[#allocation4 + $0x60] sm:$0xff] %vm320_vm0, %v2510_v0 }
  0x4e   : > { %347 = vst.msk [vmem:[#allocation5] sm:$0xff] %vm320_vm0, %v2511_v1  ;;  %348 = vst.msk [vmem:[#allocation5 + $0x8] sm:$0xff] %vm320_vm0, %v2511_v1 }
  0x4f   : > { %349 = vst.msk [vmem:[#allocation5 + $0x10] sm:$0xff] %vm320_vm0, %v2511_v1  ;;  %350 = vst.msk [vmem:[#allocation5 + $0x18] sm:$0xff] %vm320_vm0, %v2511_v1 }
  0x50   : > { %351 = vst.msk [vmem:[#allocation5 + $0x20] sm:$0xff] %vm320_vm0, %v2511_v1  ;;  %352 = vst.msk [vmem:[#allocation5 + $0x28] sm:$0xff] %vm320_vm0, %v2511_v1 }
  0x51   : > { %353 = vst.msk [vmem:[#allocation5 + $0x30] sm:$0xff] %vm320_vm0, %v2511_v1  ;;  %354 = vst.msk [vmem:[#allocation5 + $0x38] sm:$0xff] %vm320_vm0, %v2511_v1 }
  0x52   : > { %355 = vst.msk [vmem:[#allocation5 + $0x40] sm:$0xff] %vm320_vm0, %v2511_v1  ;;  %356 = vst.msk [vmem:[#allocation5 + $0x48] sm:$0xff] %vm320_vm0, %v2511_v1 }
  0x53   : > { %357 = vst.msk [vmem:[#allocation5 + $0x50] sm:$0xff] %vm320_vm0, %v2511_v1  ;;  %358 = vst.msk [vmem:[#allocation5 + $0x58] sm:$0xff] %vm320_vm0, %v2511_v1 }
  0x54   : > { %359 = vst.msk [vmem:[#allocation5 + $0x60] sm:$0xff] %vm320_vm0, %v2511_v1  ;;  %360 = vst.msk [vmem:[#allocation6] sm:$0xff] %vm320_vm0, %v2511_v1 }
  0x55   : > { %361 = vst.msk [vmem:[#allocation6 + $0x8] sm:$0xff] %vm320_vm0, %v2511_v1  ;;  %362 = vst.msk [vmem:[#allocation6 + $0x10] sm:$0xff] %vm320_vm0, %v2511_v1 }
  0x56   : > { %363 = vst.msk [vmem:[#allocation6 + $0x18] sm:$0xff] %vm320_vm0, %v2511_v1  ;;  %364 = vst.msk [vmem:[#allocation6 + $0x20] sm:$0xff] %vm320_vm0, %v2511_v1 }
  0x57   : > { %365 = vst.msk [vmem:[#allocation6 + $0x28] sm:$0xff] %vm320_vm0, %v2511_v1  ;;  %366 = vst.msk [vmem:[#allocation6 + $0x30] sm:$0xff] %vm320_vm0, %v2511_v1 }
  0x58   : > { %367 = vst.msk [vmem:[#allocation6 + $0x38] sm:$0xff] %vm320_vm0, %v2511_v1  ;;  %368 = vst.msk [vmem:[#allocation6 + $0x40] sm:$0xff] %vm320_vm0, %v2511_v1 }
  0x59   : > { %369 = vst.msk [vmem:[#allocation6 + $0x48] sm:$0xff] %vm320_vm0, %v2511_v1  ;;  %370 = vst.msk [vmem:[#allocation6 + $0x50] sm:$0xff] %vm320_vm0, %v2511_v1 }
  0x5a   : > { %371 = vst.msk [vmem:[#allocation6 + $0x58] sm:$0xff] %vm320_vm0, %v2511_v1  ;;  %372 = vst.msk [vmem:[#allocation6 + $0x60] sm:$0xff] %vm320_vm0, %v2511_v1 }
  0x5b PF: > { %v375_v2 = vld [vmem:[%s4653_s1 + $0x10] sm:$0xff]  ;;  %v373_v3 = vld [vmem:[%s4653_s1] sm:$0xff]  ;;  %v2512_v4 = vmov 0   ;;  %v376_v5 = vld [vmem:[%s4653_s1 + $0x18] sm:$0xff]  ;;  %v426_v16 = vlaneseq  ;;  %s2115_s7 = sshll.u32 %s2489_s18, 8  ;;  %v4744_v39 = vmov 0 }
  0x5c   : > { %2406 = vset.pattern.permute.xlu1 %v2512_v4  ;;  %2405 = vset.pattern.permute.xlu0 %v2512_v4  ;;  %v374_v6 = vld [vmem:[%s4653_s1 + $0x8] sm:$0xff]  ;;  %v377_v8 = vld [vmem:[%s4653_s1 + $0x20] sm:$0xff]  ;;  %v380_v9 = vld [vmem:[%s4653_s1 + $0x38] sm:$0xff]  ;;  %v464_v19 = vstv %s2115_s7  ;;  %v4746_v40 = vmov 0  ;;  %v4748_v41 = vmov 0  ;;  %v4750_v43 = vmov 0 }
  0x5d   : > { %394 = vperm.xlu1 %2406, %v375_v2   ;;  %388 = vperm.xlu0 %2405, %v373_v3   ;;  %v378_v7 = vld [vmem:[%s4653_s1 + $0x28] sm:$0xff]  ;;  %v379_v10 = vld [vmem:[%s4653_s1 + $0x30] sm:$0xff]  ;;  %v381_v12 = vld [vmem:[%s4653_s1 + $0x40] sm:$0xff]  ;;  %v462_v17 = vand.u32 127, %v426_v16  ;;  %v2767_v18 = vshrl.u32 %v426_v16, 7  ;;  %v4753_v44 = vmov 0 }
  0x5e   : > { %v382_v11 = vld [vmem:[%s4653_s1 + $0x48] sm:$0xff]  ;;  %v384_v13 = vld [vmem:[%s4653_s1 + $0x58] sm:$0xff]  ;;  %v383_v14 = vld [vmem:[%s4653_s1 + $0x50] sm:$0xff]  ;;  %v4759_v47 = vmov 0  ;;  %v4765_v49 = vmov 0  ;;  %v4768_v50 = vmov 0 }
  0x5f   : > { %v385_v15 = vld [vmem:[%s4653_s1 + $0x60] sm:$0xff]  ;;  %v463_v20 = vadd.s32 128, %v462_v17  ;;  %v471_v21 = vadd.s32 16, %v2767_v18  ;;  %v2770_v22 = vadd.s32 %v464_v19, %v462_v17  ;;  %v472_v24 = vadd.s32 24, %v2767_v18  ;;  %p2116_p7 = scmp.ne.s32.totalorder %s2493_s19, 0 }
  0x60   : > { %v470_v26 = vadd.s32 8, %v2767_v18  ;;  %v428_v27 = vsub.s32 0, %v2767_v18  ;;  %v432_v28 = vsub.s32 1, %v2767_v18  ;;  %v386_v29 = vld [vmem:[%s306_s27] sm:$0x3]  ;;  %v474_v32 = vadd.s32 40, %v2767_v18 }
  0x61   : > { %397 = vperm.xlu1 %2406, %v376_v5   ;;  %391 = vperm.xlu0 %2405, %v374_v6   ;;  %v2772_v23 = vadd.s32 %v464_v19, %v463_v20  ;;  %vm502_vm1 = vcmp.ne.s32.totalorder %v2770_v22, %v471_v21  ;;  %vm4659_vm3 = vcmp.ge.s32.totalorder %v2770_v22, 100  ;;  %vm498_vm6 = vcmp.ne.s32.totalorder %v2770_v22, %v2767_v18  ;;  %v690_v37 = vld [vmem:[%s2660_s10 + $0x90] sm:$0xff] (!%p2116_p7) }
  0x62   : > { %vm530_vm4 = vmor %vm502_vm1, %vm4659_vm3  ;;  %vm4658_vm7 = vcmp.lt.s32.totalorder %v2770_v22, 384  ;;  %vm504_vm14 = vcmp.ne.s32.totalorder %v2770_v22, %v472_v24  ;;  %v2836_v35 = vrot.slane %v386_v29, %v428_v27  ;;  %v2838_v36 = vrot.slane %v386_v29, %v432_v28 }
  0x63   : > { %vm503_vm2 = vcmp.ne.s32.totalorder %v2772_v23, %v471_v21  ;;  %vm4660_vm5 = vcmp.ge.s32.totalorder %v2772_v23, 100  ;;  %vm499_vm9 = vcmp.ne.s32.totalorder %v2772_v23, %v2767_v18  ;;  %vm2790_vm10 = vmand %vm530_vm4, %vm4658_vm7  ;;  %vm4657_vm12 = vcmp.lt.s32.totalorder %v2772_v23, 384 }
  0x64   : > { %vm531_vm8 = vmor %vm503_vm2, %vm4660_vm5  ;;  %vm505_vm0 = vcmp.ne.s32.totalorder %v2772_v23, %v472_v24  ;;  %vm500_vm2 = vcmp.ne.s32.totalorder %v2770_v22, %v470_v26  ;;  %v473_v45 = vadd.s32 32, %v2767_v18  ;;  %v4770_v51 = vmov 0 }
  0x65   : > { %403 = vperm.xlu1 %2406, %v378_v7   ;;  %400 = vperm.xlu0 %2405, %v377_v8   ;;  %vm526_vm11 = vmor %vm498_vm6, %vm4659_vm3  ;;  %v4772_v53 = vmov 0  ;;  %v4776_v54 = vmov 0  ;;  %v476_v55 = vadd.s32 56, %v2767_v18  ;;  %v4783_v57 = vmov 0 }
  0x66   : > { %vm527_vm13 = vmor %vm499_vm9, %vm4660_vm5  ;;  %v4789_v59 = vmov 0  ;;  %v4792_v60 = vmov 0  ;;  %v4795_v61 = vmov 0  ;;  %v4797_v63 = vmov 0 }
  0x67   : > { %vm2810_vm15 = vmand %vm531_vm8, %vm4657_vm12  ;;  %vm501_vm8 = vcmp.ne.s32.totalorder %v2772_v23, %v470_v26  ;;  %v4801_v0 = vmov 0  ;;  %v475_v1 = vadd.s32 48, %v2767_v18  ;;  %v4808_v3 = vmov 0 }
  0x68   : > { %vm2817_vm1 = vmand %vm526_vm11, %vm4658_vm7  ;;  %v4814_v5 = vmov 0  ;;  %v4818_v6 = vmov 0  ;;  %v4822_v7 = vmov 0  ;;  %v4843_v16 = vmov 0 }
  0x69   : > { %409 = vperm.xlu1 %2406, %v380_v9   ;;  %406 = vperm.xlu0 %2405, %v379_v10   ;;  %vm2825_vm4 = vmand %vm527_vm13, %vm4657_vm12  ;;  %v4824_v9 = vmov 0  ;;  %v4828_v10 = vmov 0  ;;  %v4847_v17 = vmov 0  ;;  %v4849_v20 = vmov 0 }
  0x6a   : > { %vm2831_vm6 = vmor %vm504_vm14, %vm4659_vm3  ;;  %v4854_v21 = vmov 0  ;;  %v477_v24 = vadd.s32 64, %v2767_v18  ;;  %v4860_v26 = vmov 0  ;;  %v4866_v28 = vmov 0 }
  0x6b   : > { %vm2842_vm9 = vmor %vm505_vm0, %vm4660_vm5  ;;  %vm508_vm0 = vcmp.ne.s32.totalorder %v2770_v22, %v474_v32  ;;  %v4870_v29 = vmov 0  ;;  %v4874_v30 = vmov 0  ;;  %v4880_v33 = vmov 0 }
  0x6c   : > { %vm2848_vm11 = vmor %vm500_vm2, %vm4659_vm3  ;;  %vm509_vm2 = vcmp.ne.s32.totalorder %v2772_v23, %v474_v32  ;;  %v4876_v32 = vmov 0  ;;  %v480_v34 = vadd.s32 88, %v2767_v18  ;;  %v4902_v46 = vmov 0 }
  0x6d   : > { %415 = vperm.xlu1 %2406, %v382_v11   ;;  %412 = vperm.xlu0 %2405, %v381_v12   ;;  %v4745_v39 = vsel %vm2848_vm11, 4294967295, %v4744_v39  ;;  %vm2856_vm12 = vmor %vm501_vm8, %vm4660_vm5  ;;  %vm4752_vm8 = vcmp.lt.s32.totalorder %v2770_v22, 384  ;;  %v478_v11 = vadd.s32 72, %v2767_v18  ;;  %v479_v48 = vadd.s32 80, %v2767_v18 }
  0x6e   : > { %v4747_v40 = vsel %vm2856_vm12, 4294967295, %v4746_v40  ;;  %vm2878_vm5 = vmand %vm2831_vm6, %vm4752_vm8  ;;  %vm4755_vm12 = vcmp.lt.s32.totalorder %v2772_v23, 384  ;;  %v4918_v56 = vmov 0  ;;  %v4926_v58 = vmov 0 }
  0x6f   : > { %v4754_v44 = vsel %vm2878_vm5, 4294967295, %v4753_v44  ;;  %v3296_v2 = vadd.s32 96, %v2767_v18  ;;  %v4941_v4 = vmov 0  ;;  %v4973_v25 = vmov 0 }
  0x70   : > { %v4981_v27 = vmov 0  ;;  %v5024_v18 = vmov 0 }
  0x71   : > { %421 = vperm.xlu1 %2406, %v384_v13   ;;  %418 = vperm.xlu0 %2405, %v383_v14   ;;  %v4834_v13 = vmov 0  ;;  %4936 = vst [vmem:[#allocation22_spill] sm:$0xff] %v3296_v2  ;;  %v4961_v14 = vmov 0 }
  0x75   : > { %424 = vperm.xlu0 %2405, %v385_v15   ;;  %v4840_v15 = vmov 0 }
  0xdc   : > { %v395_v38 = vpop.permute.xlu1 %394  ;;  %v389_v42 = vpop.permute.xlu0 %388 }
  0xdd   : > { %vm438_vm13 = vcmp.eq.s32.totalorder %v395_v38, %v2836_v35  ;;  %vm439_vm14 = vcmp.eq.s32.totalorder %v395_v38, %v2838_v36  ;;  %vm434_vm8 = vcmp.eq.s32.totalorder %v389_v42, %v2836_v35  ;;  %v4886_v38 = vmov 0 }
  0xde   : > { %vm2863_vm7 = vmand %vm438_vm13, %vm2790_vm10  ;;  %vm4665_vm10 = vmmov 1  }
  0xdf   : > { %v4749_v41 = vsel %vm2863_vm7, 4294967295, %v4748_v41  ;;  %vm2870_vm3 = vmand %vm439_vm14, %vm2810_vm15 }
  0xe0   : > { %v4751_v43 = vsel %vm2870_vm3, 4294967295, %v4750_v43  ;;  %vm608_vm7 = vmxor %vm438_vm13, %vm4665_vm10  ;;  %vm4758_vm3 = vcmp.ge.s32.totalorder %v2770_v22, 100  ;;  %vm4761_vm13 = vcmp.ge.s32.totalorder %v2772_v23, 100  ;;  %v398_v52 = vpop.permute.xlu1 %397  ;;  %v392_v62 = vpop.permute.xlu0 %391 }
  0xe1   : > { %vm2888_vm15 = vmand %vm2842_vm9, %vm4755_vm12  ;;  %vm4764_vm12 = vcmp.lt.s32.totalorder %v2770_v22, 384 }
  0xe2   : > { %vm2894_vm11 = vmor %vm508_vm0, %vm4758_vm3  ;;  %vm435_vm3 = vcmp.eq.s32.totalorder %v389_v42, %v2838_v36  ;;  %vm4767_vm0 = vcmp.lt.s32.totalorder %v2772_v23, 384  ;;  %v4896_v42 = vmov 0 }
  0xe3   : > { %v4760_v47 = vsel %vm2894_vm11, 4294967295, %v4759_v47  ;;  %vm609_vm6 = vmxor %vm439_vm14, %vm4665_vm10  ;;  %vm506_vm14 = vcmp.ne.s32.totalorder %v2770_v22, %v473_v45 }
  0xe4   : > { %vm2902_vm5 = vmor %vm509_vm2, %vm4761_vm13  ;;  %v404_v8 = vpop.permute.xlu1 %403  ;;  %v401_v19 = vpop.permute.xlu0 %400 }
  0xe5   : > { %vm2908_vm9 = vmand %vm608_vm7, %vm4764_vm12  ;;  %vm507_vm7 = vcmp.ne.s32.totalorder %v2772_v23, %v473_v45 }
  0xe6   : > { %v4766_v49 = vsel %vm2908_vm9, 4294967295, %v4765_v49  ;;  %vm2915_vm11 = vmand %vm609_vm6, %vm4767_vm0  ;;  %vm4779_vm9 = vnez %v4747_v40  ;;  %v4892_v40 = vmov 0 }
  0xe7   : > { %v4769_v50 = vsel %vm2915_vm11, 4294967295, %v4768_v50  ;;  %vm2922_vm2 = vmand %vm434_vm8, %vm2817_vm1  ;;  %vm4778_vm11 = vcmp.lt.s32.totalorder %v2772_v23, 384 }
  0xe8   : > { %v4771_v51 = vsel %vm2922_vm2, 4294967295, %v4770_v51  ;;  %vm2929_vm13 = vmand %vm435_vm3, %vm2825_vm4  ;;  %v410_v31 = vpop.permute.xlu1 %409  ;;  %v407_v45 = vpop.permute.xlu0 %406 }
  0xe9   : > { %v4773_v53 = vsel %vm2929_vm13, 4294967295, %v4772_v53  ;;  %vm4774_vm6 = vmmov %vm4764_vm12  ;;  %vm4775_vm12 = vnez %v4745_v39  ;;  %vm4782_vm13 = vcmp.ge.s32.totalorder %v2770_v22, 100  ;;  %v4997_v39 = vmov 0 }
  0xea   : > { %vm2937_vm0 = vmand %vm4775_vm12, %vm4774_vm6  ;;  %vm440_vm12 = vcmp.eq.s32.totalorder %v398_v52, %v2836_v35 }
  0xeb   : > { %v4777_v54 = vsel %vm2937_vm0, 4294967295, %v4776_v54  ;;  %vm604_vm1 = vmxor %vm434_vm8, %vm4665_vm10  ;;  %vm4785_vm8 = vcmp.ge.s32.totalorder %v2772_v23, 100 }
  0xec   : > { %vm2947_vm4 = vmand %vm4779_vm9, %vm4778_vm11  ;;  %vm4788_vm11 = vcmp.lt.s32.totalorder %v2770_v22, 384  ;;  %v413_v12 = vpop.permute.xlu0 %412 }
  0xed   : > { %vm2953_vm2 = vmor %vm506_vm14, %vm4782_vm13  ;;  %vm441_vm14 = vcmp.eq.s32.totalorder %v398_v52, %v2838_v36  ;;  %vm4791_vm13 = vcmp.lt.s32.totalorder %v2772_v23, 384 }
  0xee   : > { %v4784_v57 = vsel %vm2953_vm2, 4294967295, %v4783_v57  ;;  %vm605_vm6 = vmxor %vm435_vm3, %vm4665_vm10  ;;  %vm512_vm3 = vcmp.ne.s32.totalorder %v2770_v22, %v476_v55 }
  0xef   : > { %vm2961_vm0 = vmor %vm507_vm7, %vm4785_vm8  ;;  %vm4794_vm7 = vnez %v4754_v44  ;;  %v4900_v44 = vmov 0 }
  0xf0   : > { %vm2967_vm9 = vmand %vm604_vm1, %vm4788_vm11  ;;  %vm513_vm1 = vcmp.ne.s32.totalorder %v2772_v23, %v476_v55  ;;  %v5012_v55 = vmov 0 }
  0xf1   : > { %v4790_v59 = vsel %vm2967_vm9, 4294967295, %v4789_v59  ;;  %vm2974_vm2 = vmand %vm605_vm6, %vm4791_vm13  ;;  %vm4799_vm6 = vcmp.lt.s32.totalorder %v2770_v22, 384  ;;  %vm4800_vm13 = vnez %v4760_v47  ;;  %vm4804_vm9 = vcmp.lt.s32.totalorder %v2772_v23, 384 }
  0xf2   : > { %v4793_v60 = vsel %vm2974_vm2, 4294967295, %v4792_v60  ;;  %vm2981_vm8 = vmand %vm440_vm12, %vm4794_vm7  ;;  %vm4803_vm7 = vmmov 1   ;;  %v4906_v47 = vmov 0 }
  0xf3   : > { %v4796_v61 = vsel %vm2981_vm8, 4294967295, %v4795_v61  ;;  %vm2988_vm11 = vmand %vm441_vm14, %vm2888_vm15 }
  0xf4   : > { %v4798_v63 = vsel %vm2988_vm11, 4294967295, %v4797_v63  ;;  %vm2996_vm10 = vmand %vm4800_vm13, %vm4799_vm6  ;;  %vm4807_vm11 = vcmp.ge.s32.totalorder %v2770_v22, 100  ;;  %vm436_vm13 = vcmp.eq.s32.totalorder %v392_v62, %v2836_v35 }
  0xf5   : > { %v4802_v0 = vsel %vm2996_vm10, 4294967295, %v4801_v0  ;;  %vm610_vm2 = vmxor %vm440_vm12, %vm4803_vm7  ;;  %vm4810_vm12 = vcmp.ge.s32.totalorder %v2772_v23, 100 }
  0xf6   : > { %vm3006_vm15 = vmand %vm2902_vm5, %vm4804_vm9  ;;  %vm4813_vm5 = vcmp.lt.s32.totalorder %v2770_v22, 384 }
  0xf7   : > { %vm3012_vm8 = vmor %vm512_vm3, %vm4807_vm11  ;;  %vm437_vm3 = vcmp.eq.s32.totalorder %v392_v62, %v2838_v36  ;;  %vm4817_vm11 = vcmp.lt.s32.totalorder %v2772_v23, 384  ;;  %v416_v62 = vpop.permute.xlu1 %415 }
  0xf8   : > { %v4809_v3 = vsel %vm3012_vm8, 4294967295, %v4808_v3  ;;  %vm611_vm6 = vmxor %vm441_vm14, %vm4803_vm7  ;;  %vm510_vm14 = vcmp.ne.s32.totalorder %v2770_v22, %v475_v1 }
  0xf9   : > { %vm3020_vm10 = vmor %vm513_vm1, %vm4810_vm12  ;;  %vm4821_vm1 = vnez %v4777_v54  ;;  %v4912_v54 = vmov 0 }
  0xfa   : > { %vm3026_vm9 = vmand %vm610_vm2, %vm4813_vm5  ;;  %vm511_vm2 = vcmp.ne.s32.totalorder %v2772_v23, %v475_v1  ;;  %v4934_v1 = vmov 0 }
  0xfb   : > { %v4815_v5 = vsel %vm3026_vm9, 4294967295, %v4814_v5  ;;  %vm3033_vm8 = vmand %vm611_vm6, %vm4817_vm11  ;;  %vm4826_vm6 = vcmp.lt.s32.totalorder %v2770_v22, 384  ;;  %vm4827_vm11 = vnez %v4784_v57  ;;  %vm4830_vm9 = vcmp.lt.s32.totalorder %v2772_v23, 384 }
  0xfc   : > { %4816 = vst [vmem:[#allocation10_spill] sm:$0xff] %v4815_v5  ;;  %v4819_v6 = vsel %vm3033_vm8, 4294967295, %v4818_v6  ;;  %vm3040_vm12 = vmand %vm436_vm13, %vm4821_vm1  ;;  %v4922_v57 = vmov 0 }
  0xfd   : > { %4820 = vst [vmem:[#allocation11_spill] sm:$0xff] %v4819_v6  ;;  %v4823_v7 = vsel %vm3040_vm12, 4294967295, %v4822_v7  ;;  %vm3047_vm5 = vmand %vm437_vm3, %vm2947_vm4 }
  0xfe   : > { %v4825_v9 = vsel %vm3047_vm5, 4294967295, %v4824_v9  ;;  %vm3055_vm8 = vmand %vm4827_vm11, %vm4826_vm6  ;;  %vm4833_vm5 = vcmp.ge.s32.totalorder %v2770_v22, 100  ;;  %vm444_vm11 = vcmp.eq.s32.totalorder %v404_v8, %v2836_v35 }
  0xff   : > { %v4829_v10 = vsel %vm3055_vm8, 4294967295, %v4828_v10  ;;  %vm606_vm1 = vmxor %vm436_vm13, %vm4803_vm7  ;;  %vm4836_vm13 = vcmp.ge.s32.totalorder %v2772_v23, 100 }
 0x100   : > { %vm3065_vm4 = vmand %vm2961_vm0, %vm4830_vm9  ;;  %vm4839_vm0 = vcmp.lt.s32.totalorder %v2770_v22, 384 }
 0x101   : > { %vm3071_vm12 = vmor %vm510_vm14, %vm4833_vm5  ;;  %vm445_vm14 = vcmp.eq.s32.totalorder %v404_v8, %v2838_v36  ;;  %vm4842_vm5 = vcmp.lt.s32.totalorder %v2772_v23, 384  ;;  %v4947_v8 = vmov 0 }
 0x102   : > { %v4835_v13 = vsel %vm3071_vm12, 4294967295, %v4834_v13  ;;  %vm607_vm6 = vmxor %vm437_vm3, %vm4803_vm7  ;;  %vm516_vm3 = vcmp.ne.s32.totalorder %v2770_v22, %v478_v11 }
 0x103   : > { %vm3079_vm8 = vmor %vm511_vm2, %vm4836_vm13  ;;  %vm4846_vm2 = vnez %v4802_v0  ;;  %v4929_v0 = vmov 0 }
 0x104   : > { %vm3085_vm9 = vmand %vm606_vm1, %vm4839_vm0  ;;  %vm517_vm1 = vcmp.ne.s32.totalorder %v2772_v23, %v478_v11  ;;  %v4955_v11 = vmov 0 }
 0x105   : > { %v4841_v15 = vsel %vm3085_vm9, 4294967295, %v4840_v15  ;;  %vm3092_vm12 = vmand %vm607_vm6, %vm4842_vm5  ;;  %vm4852_vm6 = vcmp.lt.s32.totalorder %v2770_v22, 384  ;;  %vm4853_vm5 = vnez %v4809_v3  ;;  %vm4856_vm9 = vcmp.lt.s32.totalorder %v2772_v23, 384 }
 0x106   : > { %v4844_v16 = vsel %vm3092_vm12, 4294967295, %v4843_v16  ;;  %vm3099_vm13 = vmand %vm444_vm11, %vm4846_vm2 }
 0x107   : > { %4845 = vst [vmem:[#allocation12_spill] sm:$0xff] %v4844_v16  ;;  %v4848_v17 = vsel %vm3099_vm13, 4294967295, %v4847_v17  ;;  %vm3106_vm0 = vmand %vm445_vm14, %vm3006_vm15 }
 0x108   : > { %v4850_v20 = vsel %vm3106_vm0, 4294967295, %v4849_v20  ;;  %vm3114_vm12 = vmand %vm4853_vm5, %vm4852_vm6  ;;  %vm4859_vm0 = vcmp.ge.s32.totalorder %v2770_v22, 100  ;;  %vm442_vm5 = vcmp.eq.s32.totalorder %v401_v19, %v2836_v35 }
 0x109   : > { %4851 = vst [vmem:[#allocation13_spill] sm:$0xff] %v4850_v20  ;;  %v4855_v21 = vsel %vm3114_vm12, 4294967295, %v4854_v21  ;;  %vm614_vm2 = vmxor %vm444_vm11, %vm4803_vm7  ;;  %vm4862_vm11 = vcmp.ge.s32.totalorder %v2772_v23, 100 }
 0x10a   : > { %vm3124_vm15 = vmand %vm3020_vm10, %vm4856_vm9  ;;  %vm4865_vm10 = vcmp.lt.s32.totalorder %v2770_v22, 384 }
 0x10b   : > { %vm3130_vm13 = vmor %vm516_vm3, %vm4859_vm0  ;;  %vm443_vm3 = vcmp.eq.s32.totalorder %v401_v19, %v2838_v36  ;;  %vm4869_vm0 = vcmp.lt.s32.totalorder %v2772_v23, 384  ;;  %v5040_v19 = vmov 0 }
 0x10c   : > { %v4861_v26 = vsel %vm3130_vm13, 4294967295, %v4860_v26  ;;  %vm615_vm6 = vmxor %vm445_vm14, %vm4803_vm7  ;;  %vm514_vm14 = vcmp.ne.s32.totalorder %v2770_v22, %v477_v24 }
 0x10d   : > { %vm3138_vm12 = vmor %vm517_vm1, %vm4862_vm11  ;;  %vm4873_vm1 = vnez %v4829_v10  ;;  %v4951_v10 = vmov 0 }
 0x10e   : > { %vm3144_vm9 = vmand %vm614_vm2, %vm4865_vm10  ;;  %vm515_vm2 = vcmp.ne.s32.totalorder %v2772_v23, %v477_v24  ;;  %v672_v24 = vld [vmem:[%s2660_s10] sm:$0xff] (!%p2116_p7) }
 0x10f   : > { %v4867_v28 = vsel %vm3144_vm9, 4294967295, %v4866_v28  ;;  %vm3151_vm13 = vmand %vm615_vm6, %vm4869_vm0  ;;  %vm4878_vm6 = vcmp.lt.s32.totalorder %v2770_v22, 384  ;;  %vm4879_vm0 = vnez %v4835_v13  ;;  %vm4882_vm9 = vcmp.lt.s32.totalorder %v2772_v23, 384 }
 0x110   : > { %4868 = vst [vmem:[#allocation14_spill] sm:$0xff] %v4867_v28  ;;  %v4871_v29 = vsel %vm3151_vm13, 4294967295, %v4870_v29  ;;  %vm3158_vm11 = vmand %vm442_vm5, %vm4873_vm1  ;;  %v4957_v13 = vmov 0 }
 0x111   : > { %4872 = vst [vmem:[#allocation15_spill] sm:$0xff] %v4871_v29  ;;  %v4875_v30 = vsel %vm3158_vm11, 4294967295, %v4874_v30  ;;  %vm3165_vm10 = vmand %vm443_vm3, %vm3065_vm4 }
 0x112   : > { %v4877_v32 = vsel %vm3165_vm10, 4294967295, %v4876_v32  ;;  %vm3173_vm13 = vmand %vm4879_vm0, %vm4878_vm6  ;;  %vm4885_vm10 = vcmp.ge.s32.totalorder %v2770_v22, 100  ;;  %vm448_vm0 = vcmp.eq.s32.totalorder %v410_v31, %v2836_v35 }
 0x113   : > { %v4881_v33 = vsel %vm3173_vm13, 4294967295, %v4880_v33  ;;  %vm612_vm1 = vmxor %vm442_vm5, %vm4803_vm7  ;;  %vm4888_vm5 = vcmp.ge.s32.totalorder %v2772_v23, 100 }
 0x114   : > { %vm3183_vm4 = vmand %vm3079_vm8, %vm4882_vm9  ;;  %vm4891_vm8 = vcmp.lt.s32.totalorder %v2770_v22, 384 }
 0x115   : > { %vm3189_vm11 = vmor %vm514_vm14, %vm4885_vm10  ;;  %vm449_vm14 = vcmp.eq.s32.totalorder %v410_v31, %v2838_v36  ;;  %vm4895_vm10 = vcmp.lt.s32.totalorder %v2772_v23, 384  ;;  %v422_v31 = vpop.permute.xlu1 %421 }
 0x116   : > { %v4887_v38 = vsel %vm3189_vm11, 4294967295, %v4886_v38  ;;  %vm613_vm6 = vmxor %vm443_vm3, %vm4803_vm7  ;;  %vm520_vm3 = vcmp.ne.s32.totalorder %v2770_v22, %v480_v34 }
 0x117   : > { %vm3197_vm13 = vmor %vm515_vm2, %vm4888_vm5  ;;  %vm4899_vm2 = vnez %v4855_v21  ;;  %v4967_v21 = vmov 0 }
 0x118   : > { %vm3203_vm9 = vmand %vm612_vm1, %vm4891_vm8  ;;  %vm521_vm1 = vcmp.ne.s32.totalorder %v2772_v23, %v480_v34  ;;  %v673_v34 = vld [vmem:[%s2660_s10 + $0x8] sm:$0xff] (!%p2116_p7) }
 0x119   : > { %v4893_v40 = vsel %vm3203_vm9, 4294967295, %v4892_v40  ;;  %vm3210_vm11 = vmand %vm613_vm6, %vm4895_vm10  ;;  %vm4904_vm6 = vcmp.lt.s32.totalorder %v2770_v22, 384  ;;  %vm4905_vm10 = vnez %v4861_v26  ;;  %vm4908_vm9 = vcmp.lt.s32.totalorder %v2772_v23, 384 }
 0x11a   : > { %4894 = vst [vmem:[#allocation16_spill] sm:$0xff] %v4893_v40  ;;  %v4897_v42 = vsel %vm3210_vm11, 4294967295, %v4896_v42  ;;  %vm3217_vm5 = vmand %vm448_vm0, %vm4899_vm2  ;;  %v4977_v26 = vmov 0 }
 0x11b   : > { %4898 = vst [vmem:[#allocation17_spill] sm:$0xff] %v4897_v42  ;;  %v4901_v44 = vsel %vm3217_vm5, 4294967295, %v4900_v44  ;;  %vm3224_vm8 = vmand %vm449_vm14, %vm3124_vm15 }
 0x11c   : > { %v4903_v46 = vsel %vm3224_vm8, 4294967295, %v4902_v46  ;;  %vm3232_vm11 = vmand %vm4905_vm10, %vm4904_vm6  ;;  %vm4911_vm8 = vcmp.ge.s32.totalorder %v2770_v22, 100  ;;  %vm446_vm10 = vcmp.eq.s32.totalorder %v407_v45, %v2836_v35 }
 0x11d   : > { %v4907_v47 = vsel %vm3232_vm11, 4294967295, %v4906_v47  ;;  %vm618_vm2 = vmxor %vm448_vm0, %vm4803_vm7  ;;  %vm4914_vm0 = vcmp.ge.s32.totalorder %v2772_v23, 100 }
 0x11e   : > { %vm3242_vm15 = vmand %vm3138_vm12, %vm4908_vm9  ;;  %vm4917_vm12 = vcmp.lt.s32.totalorder %v2770_v22, 384 }
 0x11f   : > { %vm3248_vm5 = vmor %vm520_vm3, %vm4911_vm8  ;;  %vm447_vm3 = vcmp.eq.s32.totalorder %v407_v45, %v2838_v36  ;;  %vm4921_vm8 = vcmp.lt.s32.totalorder %v2772_v23, 384  ;;  %v5001_v45 = vmov 0 }
 0x120   : > { %v4913_v54 = vsel %vm3248_vm5, 4294967295, %v4912_v54  ;;  %vm619_vm6 = vmxor %vm449_vm14, %vm4803_vm7  ;;  %vm518_vm14 = vcmp.ne.s32.totalorder %v2770_v22, %v479_v48 }
 0x121   : > { %vm3256_vm11 = vmor %vm521_vm1, %vm4914_vm0  ;;  %vm4925_vm1 = vnez %v4881_v33  ;;  %v4983_v33 = vmov 0 }
 0x122   : > { %vm3262_vm9 = vmand %vm618_vm2, %vm4917_vm12  ;;  %vm519_vm2 = vcmp.ne.s32.totalorder %v2772_v23, %v479_v48  ;;  %v5003_v48 = vmov 0 }
 0x123   : > { %v4919_v56 = vsel %vm3262_vm9, 4294967295, %v4918_v56  ;;  %vm3269_vm5 = vmand %vm619_vm6, %vm4921_vm8  ;;  %vm4932_vm6 = vcmp.lt.s32.totalorder %v2770_v22, 384  ;;  %vm4933_vm8 = vnez %v4887_v38  ;;  %vm4937_vm9 = vcmp.lt.s32.totalorder %v2772_v23, 384 }
 0x124   : > { %4920 = vst [vmem:[#allocation18_spill] sm:$0xff] %v4919_v56  ;;  %v4923_v57 = vsel %vm3269_vm5, 4294967295, %v4922_v57  ;;  %vm3276_vm0 = vmand %vm446_vm10, %vm4925_vm1  ;;  %v4993_v38 = vmov 0 }
 0x125   : > { %4924 = vst [vmem:[#allocation19_spill] sm:$0xff] %v4923_v57  ;;  %v4927_v58 = vsel %vm3276_vm0, 4294967295, %v4926_v58  ;;  %vm3283_vm12 = vmand %vm447_vm3, %vm3183_vm4 }
 0x126   : > { %4928 = vst [vmem:[#allocation20_spill] sm:$0xff] %v4927_v58  ;;  %v4930_v0 = vsel %vm3283_vm12, 4294967295, %v4929_v0  ;;  %vm3291_vm5 = vmand %vm4933_vm8, %vm4932_vm6  ;;  %vm4940_vm12 = vcmp.ge.s32.totalorder %v2770_v22, 100  ;;  %vm452_vm8 = vcmp.eq.s32.totalorder %v416_v62, %v2836_v35 }
 0x127   : > { %4931 = vst [vmem:[#allocation21_spill] sm:$0xff] %v4930_v0  ;;  %v4935_v1 = vsel %vm3291_vm5, 4294967295, %v4934_v1  ;;  %vm616_vm1 = vmxor %vm446_vm10, %vm4803_vm7  ;;  %vm4943_vm10 = vcmp.ge.s32.totalorder %v2772_v23, 100 }
 0x128   : > { %vm3303_vm4 = vmand %vm3197_vm13, %vm4937_vm9  ;;  %vm4946_vm13 = vcmp.lt.s32.totalorder %v2770_v22, 384 }
 0x129   : > { %vm3309_vm0 = vmor %vm518_vm14, %vm4940_vm12  ;;  %vm453_vm14 = vcmp.eq.s32.totalorder %v416_v62, %v2838_v36  ;;  %vm4950_vm12 = vcmp.lt.s32.totalorder %v2772_v23, 384  ;;  %v5016_v62 = vmov 0 }
 0x12a   : > { %v4942_v4 = vsel %vm3309_vm0, 4294967295, %v4941_v4  ;;  %vm617_vm6 = vmxor %vm447_vm3, %vm4803_vm7  ;;  %vm522_vm3 = vcmp.ne.s32.totalorder %v2770_v22, %v3296_v2 }
 0x12b   : > { %vm3317_vm5 = vmor %vm519_vm2, %vm4943_vm10  ;;  %vm4954_vm2 = vnez %v4907_v47  ;;  %v419_v47 = vpop.permute.xlu0 %418 }
 0x12c   : > { %vm3323_vm9 = vmand %vm616_vm1, %vm4946_vm13  ;;  %vm523_vm1 = vcmp.ne.s32.totalorder %v2772_v23, %v3296_v2  ;;  %v2279_v2 = vpack.c.bf16 (!%p2116_p7), %v673_v34, %v672_v24  ;;  %v674_v34 = vld [vmem:[%s2660_s10 + $0x10] sm:$0xff] (!%p2116_p7) }
 0x12d   : > { %v4948_v8 = vsel %vm3323_vm9, 4294967295, %v4947_v8  ;;  %vm3330_vm0 = vmand %vm617_vm6, %vm4950_vm12  ;;  %vm4959_vm6 = vcmp.lt.s32.totalorder %v2770_v22, 384  ;;  %vm4960_vm12 = vnez %v4913_v54  ;;  %vm4963_vm9 = vcmp.lt.s32.totalorder %v2772_v23, 384 }
 0x12e   : > { %4949 = vst [vmem:[#allocation23_spill] sm:$0xff] %v4948_v8  ;;  %v4952_v10 = vsel %vm3330_vm0, 4294967295, %v4951_v10  ;;  %vm3338_vm10 = vmand %vm452_vm8, %vm4954_vm2 }
 0x12f   : > { %4953 = vst [vmem:[#allocation24_spill] sm:$0xff] %v4952_v10  ;;  %v4956_v11 = vsel %vm3338_vm10, 4294967295, %v4955_v11  ;;  %vm3346_vm13 = vmand %vm453_vm14, %vm3242_vm15  ;;  %vm4966_vm15 = vcmp.ge.s32.totalorder %v2770_v22, 100  ;;  %v425_v3 = vpop.permute.xlu0 %424 }
 0x130   : > { %v4958_v13 = vsel %vm3346_vm13, 4294967295, %v4957_v13  ;;  %vm3354_vm0 = vmand %vm4960_vm12, %vm4959_vm6  ;;  %vm450_vm12 = vcmp.eq.s32.totalorder %v413_v12, %v2836_v35 }
 0x131   : > { %v4962_v14 = vsel %vm3354_vm0, 4294967295, %v4961_v14  ;;  %vm622_vm2 = vmxor %vm452_vm8, %vm4803_vm7  ;;  %vm4969_vm8 = vcmp.ge.s32.totalorder %v2772_v23, 100 }
 0x132   : > { %vm3363_vm10 = vmand %vm3256_vm11, %vm4963_vm9  ;;  %vm4972_vm11 = vcmp.lt.s32.totalorder %v2770_v22, 384 }
 0x133   : > { %vm3369_vm13 = vmor %vm522_vm3, %vm4966_vm15  ;;  %vm451_vm3 = vcmp.eq.s32.totalorder %v413_v12, %v2838_v36  ;;  %vm4976_vm15 = vcmp.lt.s32.totalorder %v2772_v23, 384  ;;  %v5028_v12 = vmov 0 }
 0x134   : > { %v4968_v21 = vsel %vm3369_vm13, 4294967295, %v4967_v21  ;;  %vm623_vm6 = vmxor %vm453_vm14, %vm4803_vm7  ;;  %vm4980_vm14 = vnez %v4935_v1 }
 0x135   : > { %vm3377_vm0 = vmor %vm523_vm1, %vm4969_vm8 }
 0x136   : > { %vm3383_vm9 = vmand %vm622_vm2, %vm4972_vm11 }
 0x137   : > { %v4974_v25 = vsel %vm3383_vm9, 4294967295, %v4973_v25  ;;  %vm3390_vm13 = vmand %vm623_vm6, %vm4976_vm15  ;;  %vm4986_vm6 = vnez %v4942_v4  ;;  %vm456_vm9 = vcmp.eq.s32.totalorder %v422_v31, %v2836_v35 }
 0x138   : > { %4975 = vst [vmem:[#allocation25_spill] sm:$0xff] %v4974_v25  ;;  %v4978_v26 = vsel %vm3390_vm13, 4294967295, %v4977_v26  ;;  %vm3396_vm1 = vmand %vm450_vm12, %vm4980_vm14  ;;  %vm4989_vm14 = vcmp.lt.s32.totalorder %v2772_v23, 384 }
 0x139   : > { %4979 = vst [vmem:[#allocation26_spill] sm:$0xff] %v4978_v26  ;;  %v4982_v27 = vsel %vm3396_vm1, 4294967295, %v4981_v27  ;;  %vm3402_vm2 = vmand %vm451_vm3, %vm3303_vm4 }
 0x13a   : > { %v4984_v33 = vsel %vm3402_vm2, 4294967295, %v4983_v33  ;;  %vm4985_vm8 = vmmov %vm4972_vm11 }
 0x13b   : > { %vm3410_vm11 = vmand %vm4986_vm6, %vm4985_vm8 }
 0x13c   : > { %vm620_vm15 = vmxor %vm450_vm12, %vm4803_vm7  ;;  %vm457_vm12 = vcmp.eq.s32.totalorder %v422_v31, %v2838_v36 }
 0x13d   : > { %vm3419_vm13 = vmand %vm3317_vm5, %vm4989_vm14  ;;  %vm5000_vm5 = vnez %v4962_v14  ;;  %v5031_v14 = vmov 0 }
 0x13e   : > { %vm621_vm4 = vmxor %vm451_vm3, %vm4803_vm7 }
 0x13f   : > { %vm4992_vm2 = vmmov %vm4985_vm8 }
 0x140   : > { %vm3427_vm8 = vmand %vm620_vm15, %vm4992_vm2  ;;  %vm5005_vm15 = vnez %v4968_v21  ;;  %v689_v21 = vld [vmem:[%s2660_s10 + $0x88] sm:$0xff] (!%p2116_p7) }
 0x141   : > { %v4994_v38 = vsel %vm3427_vm8, 4294967295, %v4993_v38  ;;  %vm4996_vm6 = vmmov %vm4989_vm14 }
 0x142   : > { %4995 = vst [vmem:[#allocation27_spill] sm:$0xff] %v4994_v38  ;;  %vm3434_vm1 = vmand %vm621_vm4, %vm4996_vm6 }
 0x143   : > { %v4998_v39 = vsel %vm3434_vm1, 4294967295, %v4997_v39  ;;  %vm3440_vm14 = vmand %vm456_vm9, %vm5000_vm5  ;;  %vm5008_vm5 = vcmp.lt.s32.totalorder %v2772_v23, 384 }
 0x144   : > { %4999 = vst [vmem:[#allocation28_spill] sm:$0xff] %v4998_v39  ;;  %v5002_v45 = vsel %vm3440_vm14, 4294967295, %v5001_v45  ;;  %vm3446_vm3 = vmand %vm457_vm12, %vm3363_vm10 }
 0x145   : > { %v5004_v48 = vsel %vm3446_vm3, 4294967295, %v5003_v48  ;;  %vm3454_vm4 = vmand %vm5005_vm15, %vm4992_vm2  ;;  %vm454_vm3 = vcmp.eq.s32.totalorder %v419_v47, %v2836_v35 }
 0x146   : > { %vm626_vm6 = vmxor %vm456_vm9, %vm4803_vm7  ;;  %vm455_vm9 = vcmp.eq.s32.totalorder %v419_v47, %v2838_v36  ;;  %v4698_v47 = vmov (!%p2116_p7), 0.0  }
 0x147   : > { %vm3463_vm14 = vmand %vm3377_vm0, %vm5008_vm5 }
 0x148   : > { %vm627_vm10 = vmxor %vm457_vm12, %vm4803_vm7 }
 0x149   : > { %vm5011_vm1 = vmmov %vm4992_vm2 }
 0x14a   : > { %vm3471_vm2 = vmand %vm626_vm6, %vm5011_vm1 }
 0x14b   : > { %v5013_v55 = vsel %vm3471_vm2, 4294967295, %v5012_v55  ;;  %vm5015_vm15 = vmmov %vm5008_vm5  ;;  %vm458_vm5 = vcmp.eq.s32.totalorder %v425_v3, %v2836_v35  ;;  %v5033_v35 = vmov 0 }
 0x14c   : > { %5014 = vst [vmem:[#allocation29_spill] sm:$0xff] %v5013_v55  ;;  %vm3478_vm8 = vmand %vm627_vm10, %vm5015_vm15  ;;  %vm5023_vm10 = vcmp.lt.s32.totalorder %v2770_v22, 384 }
 0x14d   : > { %v5017_v62 = vsel %vm3478_vm8, 4294967295, %v5016_v62  ;;  %vm3484_vm0 = vmand %vm454_vm3, %vm3410_vm11  ;;  %vm459_vm11 = vcmp.eq.s32.totalorder %v425_v3, %v2838_v36  ;;  %vm5027_vm8 = vcmp.lt.s32.totalorder %v2772_v23, 384  ;;  %v5036_v36 = vmov 0 }
 0x14e   : > { %5018 = vst [vmem:[#allocation30_spill] sm:$0xff] %v5017_v62  ;;  %vm3490_vm1 = vmand %vm455_vm9, %vm3419_vm13 }
 0x14f   : > { %vm624_vm12 = vmxor %vm454_vm3, %vm4803_vm7 }
 0x150   : > { %vm625_vm6 = vmxor %vm455_vm9, %vm4803_vm7 }
 0x151   : > { %vm3499_vm15 = vmand %vm624_vm12, %vm5023_vm10 }
 0x152   : > { %v5025_v18 = vsel %vm3499_vm15, 4294967295, %v5024_v18  ;;  %vm3506_vm13 = vmand %vm625_vm6, %vm5027_vm8  ;;  %vm5035_vm8 = vcmp.lt.s32.totalorder %v2770_v22, 384  ;;  %v688_v22 = vld [vmem:[%s2660_s10 + $0x80] sm:$0xff] (!%p2116_p7)  ;;  %vm5062_vm15 = vnez (!%p2116_p7), %v4958_v13 }
 0x153   : > { %5026 = vst [vmem:[#allocation31_spill] sm:$0xff] %v5025_v18  ;;  %v5029_v12 = vsel %vm3506_vm13, 4294967295, %v5028_v12  ;;  %vm3512_vm3 = vmand %vm458_vm5, %vm3454_vm4  ;;  %vm5039_vm4 = vcmp.lt.s32.totalorder %v2772_v23, 384  ;;  %v2277_v31 = vpack.c.bf16 (!%p2116_p7), %v689_v21, %v688_v22  ;;  %v691_v23 = vld [vmem:[%s2660_s10 + $0x98] sm:$0xff] (!%p2116_p7)  ;;  %vm5061_vm13 = vnez (!%p2116_p7), %v4956_v11 }
 0x154   : > { %5030 = vst [vmem:[#allocation32_spill] sm:$0xff] %v5029_v12  ;;  %v5032_v14 = vsel %vm3512_vm3, 4294967295, %v5031_v14  ;;  %vm3518_vm9 = vmand %vm459_vm11, %vm3463_vm14  ;;  %658 = sbr.rel (%p2116_p7) target bundleno = 820 (0x334), region = 48  ;;  %vm5044_vm14 = vnez (!%p2116_p7), %v4773_v53  ;;  %v2281_v22 = vpack.c.bf16 (!%p2116_p7), %v691_v23, %v690_v37  ;;  %v675_v37 = vld [vmem:[%s2660_s10 + $0x18] sm:$0xff] (!%p2116_p7)  ;;  %v693_v23 = vld [vmem:[%s2660_s10 + $0xa8] sm:$0xff] (!%p2116_p7)  ;;  %vm5054_vm3 = vnez (!%p2116_p7), %v4850_v20 }
 0x155   : > { %v5034_v35 = vsel %vm3518_vm9, 4294967295, %v5033_v35  ;;  %vm628_vm12 = vmxor %vm458_vm5, %vm4803_vm7  ;;  %v2119_v54 = vsel (!%p2116_p7), %vm5044_vm14, 1.0, %v4698_v47  ;;  %vm5045_vm5 = vnez (!%p2116_p7), %v4823_v7  ;;  %2278 = vmatprep.subr.bf16.mxu0 (!%p2116_p7), %v2277_v31  ;;  %2309 = vmatprep.subr.bf16.mxu1 (!%p2116_p7), %v2277_v31  ;;  %v692_v31 = vld [vmem:[%s2660_s10 + $0xa0] sm:$0xff] (!%p2116_p7)  ;;  %vm5053_vm9 = vnez (!%p2116_p7), %v4848_v17 }
 0x156   : > { %vm629_vm10 = vmxor %vm459_vm11, %vm4803_vm7  ;;  %vm5043_vm7 = vnez (!%p2116_p7), %v4771_v51  ;;  %v2120_v3 = vsel (!%p2116_p7), %vm5045_vm5, 1.0, %v4698_v47  ;;  %vm5046_vm11 = vnez (!%p2116_p7), %v4825_v9  ;;  %2280 = vmatpush3.bf16.xpose.msra.mxu0 (!%p2116_p7), %v2279_v2  ;;  %2317 = vmatpush3.bf16.xpose.msra.mxu1 (!%p2116_p7), %v2279_v2  ;;  %v2128_v28 = vsel (!%p2116_p7), %vm5053_vm9, 1.0, %v4698_v47 }
 0x157   : > { %vm3526_vm6 = vmand %vm628_vm12, %vm5035_vm8  ;;  %v2118_v52 = vsel (!%p2116_p7), %vm5043_vm7, 1.0, %v4698_v47  ;;  %v2121_v10 = vsel (!%p2116_p7), %vm5046_vm11, 1.0, %v4698_v47  ;;  %vm5047_vm12 = vnez (!%p2116_p7), %v4749_v41  ;;  %vm5049_vm8 = vnez (!%p2116_p7), %v4796_v61  ;;  %2282 = vmatprep.subr.bf16.mxu0 (!%p2116_p7), %v2281_v22  ;;  %2310 = vmatprep.subr.bf16.mxu1 (!%p2116_p7), %v2281_v22 }
 0x158   : > { %v5037_v36 = vsel %vm3526_vm6, 4294967295, %v5036_v36  ;;  %vm3532_vm2 = vmand %vm629_vm10, %vm5039_vm4  ;;  %v1150_v21 = vadd.f32 (!%p2116_p7), %v2119_v54, %v2118_v52  ;;  %v1153_v8 = vadd.f32 (!%p2116_p7), %v2121_v10, %v2120_v3  ;;  %vm5048_vm10 = vnez (!%p2116_p7), %v4751_v43 }
 0x159   : > { %5038 = vst [vmem:[#allocation33_spill] sm:$0xff] %v5037_v36  ;;  %v5041_v19 = vsel %vm3532_vm2, 4294967295, %v5040_v19  ;;  %v2122_v36 = vsel (!%p2116_p7), %vm5047_vm12, 1.0, %v4698_v47  ;;  %v2123_v29 = vsel (!%p2116_p7), %vm5048_vm10, 1.0, %v4698_v47  ;;  %v2124_v24 = vsel (!%p2116_p7), %vm5049_vm8, 1.0, %v4698_v47 }
 0x15a   : > { %5042 = vst [vmem:[#allocation34_spill] sm:$0xff] %v5041_v19  ;;  %vm5050_vm4 = vnez (!%p2116_p7), %v4798_v63  ;;  %1151 = vadd.xlane.f32.xlu0 (!%p2116_p7), %v1150_v21  ;;  %1154 = vadd.xlane.f32.xlu1 (!%p2116_p7), %v1153_v8  ;;  %v1156_v52 = vadd.f32 (!%p2116_p7), %v2123_v29, %v2122_v36  ;;  %vm5051_vm6 = vnez (!%p2116_p7), %v4875_v30  ;;  %vm5052_vm2 = vnez (!%p2116_p7), %v4877_v32  ;;  %v3586_v29 = vld [vmem:[%s4652_s0] sm:$0xff] (!%p2116_p7) }
 0x15b   : > { %v2125_v10 = vsel %vm5050_vm4, 1.0, %v4698_v47  ;;  %v2126_v2 = vsel %vm5051_vm6, 1.0, %v4698_v47  ;;  %v2127_v3 = vsel %vm5052_vm2, 1.0, %v4698_v47  ;;  %v2283_v22 = vpack.c.bf16 %v675_v37, %v674_v34  ;;  %2251 = vmatprep.mubr.f32.mxu0 %v3586_v29 }
 0x15c   : > { %v1159_v54 = vadd.f32 %v2125_v10, %v2124_v24  ;;  %v2129_v21 = vsel %vm5054_vm3, 1.0, %v4698_v47  ;;  %v2285_v8 = vpack.c.bf16 %v693_v23, %v692_v31  ;;  %v1162_v36 = vadd.f32 %v2127_v3, %v2126_v2  ;;  %v3592_v24 = vld [vmem:[%s4652_s0 + $0x38] sm:$0xff] }
 0x15d   : > { %v1165_v34 = vadd.f32 %v2129_v21, %v2128_v28  ;;  %vm5055_vm3 = vnez %v4927_v58  ;;  %vm5056_vm9 = vnez %v4930_v0  ;;  %vm5057_vm2 = vnez %v4901_v44  ;;  %v676_v28 = vld [vmem:[%s2660_s10 + $0x20] sm:$0xff]  ;;  %v695_v2 = vld [vmem:[%s2660_s10 + $0xb8] sm:$0xff]  ;;  %2265 = vmatprep.mubr.f32.mxu1 %v3592_v24 }
 0x15e   : > { %1157 = vadd.xlane.f32.xlu0 %v1156_v52  ;;  %1160 = vadd.xlane.f32.xlu1 %v1159_v54  ;;  %v2130_v37 = vsel %vm5055_vm3, 1.0, %v4698_v47  ;;  %v2131_v10 = vsel %vm5056_vm9, 1.0, %v4698_v47  ;;  %v2132_v31 = vsel %vm5057_vm2, 1.0, %v4698_v47  ;;  %vm5058_vm6 = vnez %v4903_v46  ;;  %v677_v52 = vld [vmem:[%s2660_s10 + $0x28] sm:$0xff]  ;;  %v694_v54 = vld [vmem:[%s2660_s10 + $0xb0] sm:$0xff] }
 0x15f   : > { %2284 = vmatpush3.bf16.xpose.msra.mxu0 %v2283_v22  ;;  %2318 = vmatpush3.bf16.xpose.msra.mxu1 %v2283_v22  ;;  %v2133_v23 = vsel %vm5058_vm6, 1.0, %v4698_v47  ;;  %v1168_v3 = vadd.f32 %v2131_v10, %v2130_v37  ;;  %vm5059_vm9 = vnez %v4982_v27  ;;  %vm5060_vm3 = vnez %v4984_v33  ;;  %v696_v37 = vld [vmem:[%s2660_s10 + $0xc0] sm:$0xff]  ;;  %v697_v10 = vld [vmem:[%s2660_s10 + $0xc8] sm:$0xff] }
 0x160   : > { %2286 = vmatprep.subr.bf16.mxu0 %v2285_v8  ;;  %2311 = vmatprep.subr.bf16.mxu1 %v2285_v8  ;;  %v1171_v22 = vadd.f32 %v2133_v23, %v2132_v31  ;;  %v2134_v21 = vsel %vm5059_vm9, 1.0, %v4698_v47  ;;  %v2135_v8 = vsel %vm5060_vm3, 1.0, %v4698_v47  ;;  %v2287_v0 = vpack.c.bf16 %v677_v52, %v676_v28  ;;  %v681_v28 = vld [vmem:[%s2660_s10 + $0x48] sm:$0xff]  ;;  %v698_v52 = vld [vmem:[%s2660_s10 + $0xd0] sm:$0xff] }
 0x161   : > { %v2289_v58 = vpack.c.bf16 %v695_v2, %v694_v54  ;;  %v1174_v20 = vadd.f32 %v2135_v8, %v2134_v21  ;;  %v2293_v23 = vpack.c.bf16 %v697_v10, %v696_v37  ;;  %v699_v54 = vld [vmem:[%s2660_s10 + $0xd8] sm:$0xff]  ;;  %v701_v21 = vld [vmem:[%s2660_s10 + $0xe8] sm:$0xff]  ;;  %v702_v10 = vld [vmem:[%s2660_s10 + $0xf0] sm:$0xff]  ;;  %vm4697_vm4 = vcmask 7168  }
 0x162   : > { %1163 = vadd.xlane.f32.xlu0 %v1162_v36  ;;  %1166 = vadd.xlane.f32.xlu1 %v1165_v34  ;;  %v678_v36 = vld [vmem:[%s2660_s10 + $0x30] sm:$0xff]  ;;  %v679_v34 = vld [vmem:[%s2660_s10 + $0x38] sm:$0xff]  ;;  %v2297_v2 = vpack.c.bf16 %v699_v54, %v698_v52  ;;  %v685_v37 = vld [vmem:[%s2660_s10 + $0x68] sm:$0xff] }
 0x163   : > { %v2291_v31 = vpack.c.bf16 %v679_v34, %v678_v36  ;;  %v684_v34 = vld [vmem:[%s2660_s10 + $0x60] sm:$0xff]  ;;  %v687_v52 = vld [vmem:[%s2660_s10 + $0x78] sm:$0xff] }
 0x166   : > { %1169 = vadd.xlane.f32.xlu0 %v1168_v3  ;;  %1172 = vadd.xlane.f32.xlu1 %v1171_v22  ;;  %v683_v3 = vld [vmem:[%s2660_s10 + $0x58] sm:$0xff]  ;;  %v700_v22 = vld [vmem:[%s2660_s10 + $0xe0] sm:$0xff] }
 0x167   : > { %2288 = vmatpush3.bf16.xpose.msra.mxu0 %v2287_v0  ;;  %2319 = vmatpush3.bf16.xpose.msra.mxu1 %v2287_v0  ;;  %v680_v0 = vld [vmem:[%s2660_s10 + $0x40] sm:$0xff]  ;;  %v2301_v36 = vpack.c.bf16 %v701_v21, %v700_v22  ;;  %v670_v21 = vld [vmem:[%s4652_s0 + $0x58] sm:$0xff] }
 0x168   : > { %2290 = vmatprep.subr.bf16.mxu0 %v2289_v58  ;;  %2312 = vmatprep.subr.bf16.mxu1 %v2289_v58  ;;  %v2295_v58 = vpack.c.bf16 %v681_v28, %v680_v0  ;;  %v686_v28 = vld [vmem:[%s2660_s10 + $0x70] sm:$0xff]  ;;  %v663_v22 = vld [vmem:[%s4652_s0 + $0x20] sm:$0xff] }
 0x169   : > { %v2307_v54 = vpack.c.bf16 %v687_v52, %v686_v28 }
 0x16a   : > { %1175 = vadd.xlane.f32.xlu0 %v1174_v20  ;;  %v682_v20 = vld [vmem:[%s2660_s10 + $0x50] sm:$0xff] }
 0x16b   : > { %v2299_v8 = vpack.c.bf16 %v683_v3, %v682_v20  ;;  %v661_v20 = vld [vmem:[%s4652_s0 + $0x10] sm:$0xff]  ;;  %v668_v3 = vld [vmem:[%s4652_s0 + $0x48] sm:$0xff] }
 0x16f   : > { %2292 = vmatpush3.bf16.xpose.msra.mxu0 %v2291_v31  ;;  %2320 = vmatpush3.bf16.xpose.msra.mxu1 %v2291_v31  ;;  %v703_v31 = vld [vmem:[%s2660_s10 + $0xf8] sm:$0xff]  ;;  %s2217_s10 = smul.u32 208, %s2489_s18 }
 0x170   : > { %2294 = vmatprep.subr.bf16.mxu0 %v2293_v23  ;;  %2313 = vmatprep.subr.bf16.mxu1 %v2293_v23  ;;  %v2303_v23 = vpack.c.bf16 %v685_v37, %v684_v34  ;;  %v2305_v0 = vpack.c.bf16 %v703_v31, %v702_v10  ;;  %v665_v34 = vld [vmem:[%s4652_s0 + $0x30] sm:$0xff]  ;;  %v2136_v37 = vsel %vm5061_vm13, 1.0, %v4698_v47  ;;  %v2137_v10 = vsel %vm5062_vm15, 1.0, %v4698_v47 }
 0x171   : > { %v2138_v31 = vsel %vm3484_vm0, 1.0, %v4698_v47  ;;  %s3692_s28 = scalar_lea.vmem [#allocation2], %s2217_s10 }
 0x177   : > { %2296 = vmatpush3.bf16.xpose.msra.mxu0 %v2295_v58  ;;  %2321 = vmatpush3.bf16.xpose.msra.mxu1 %v2295_v58  ;;  %v660_v58 = vld [vmem:[%s4652_s0 + $0x8] sm:$0xff] }
 0x178   : > { %2298 = vmatprep.subr.bf16.mxu0 %v2297_v2  ;;  %2314 = vmatprep.subr.bf16.mxu1 %v2297_v2  ;;  %v667_v2 = vld [vmem:[%s4652_s0 + $0x40] sm:$0xff] }
 0x17f   : > { %2300 = vmatpush3.bf16.xpose.msra.mxu0 %v2299_v8  ;;  %2322 = vmatpush3.bf16.xpose.msra.mxu1 %v2299_v8  ;;  %v664_v8 = vld [vmem:[%s4652_s0 + $0x28] sm:$0xff] }
 0x180   : > { %2302 = vmatprep.subr.bf16.mxu0 %v2301_v36  ;;  %2315 = vmatprep.subr.bf16.mxu1 %v2301_v36  ;;  %v671_v36 = vld [vmem:[%s4652_s0 + $0x60] sm:$0xff] }
 0x187   : > { %2304 = vmatpush3.bf16.xpose.msra.mxu0 %v2303_v23  ;;  %2323 = vmatpush3.bf16.xpose.msra.mxu1 %v2303_v23  ;;  %v2139_v23 = vsel %vm3490_vm1, 1.0, %v4698_v47 }
 0x188   : > { %2306 = vmatprep.subr.bf16.mxu0 %v2305_v0  ;;  %2316 = vmatprep.subr.bf16.mxu1 %v2305_v0  ;;  %v1177_v0 = vadd.f32 %v2137_v10, %v2136_v37  ;;  %v1180_v28 = vadd.f32 %v2139_v23, %v2138_v31  ;;  %v1090_v37 = vld [vmem:[#allocation5 + $0x28] sm:$0xff] }
 0x18a   : > { %1178 = vadd.xlane.f32.xlu1 %v1177_v0  ;;  %1181 = vadd.xlane.f32.xlu0 %v1180_v28  ;;  %v1091_v28 = vld [vmem:[#allocation5 + $0x30] sm:$0xff] }
 0x18f   : > { %2308 = vmatpush3.bf16.xpose.msra.mxu0 %v2307_v54  ;;  %2324 = vmatpush3.bf16.xpose.msra.mxu1 %v2307_v54  ;;  %v1085_v54 = vld [vmem:[#allocation5] sm:$0xff] }
 0x196   : > { %2252 = vmatmul.mubr.f32.vlgmr.msra.gmra.mrb[0].mxu0 %v3586_v29  ;;  %2266 = vmatmul.mubr.f32.vlgmr.msra.gmra.mrb[0].mxu1 %v3592_v24  ;;  %v662_v29 = vld [vmem:[%s4652_s0 + $0x18] sm:$0xff]  ;;  %v669_v24 = vld [vmem:[%s4652_s0 + $0x50] sm:$0xff] }
 0x197   : > { %2253 = vmatprep.mubr.f32.mxu0 %v660_v58  ;;  %2267 = vmatprep.mubr.f32.mxu1 %v667_v2 }
 0x19a   : > { %2254 = vmatmul.mubr.f32.gmra.mrb[2].mxu0 %v660_v58  ;;  %2268 = vmatmul.mubr.f32.gmra.mrb[2].mxu1 %v667_v2  ;;  %v1086_v2 = vld [vmem:[#allocation5 + $0x8] sm:$0xff] }
 0x19b   : > { %2255 = vmatprep.mubr.f32.mxu0 %v661_v20  ;;  %2269 = vmatprep.mubr.f32.mxu1 %v668_v3 }
 0x19e   : > { %2256 = vmatmul.mubr.f32.gmra.mrb[4].mxu0 %v661_v20  ;;  %2270 = vmatmul.mubr.f32.gmra.mrb[4].mxu1 %v668_v3 }
 0x19f   : > { %2257 = vmatprep.mubr.f32.mxu0 %v662_v29  ;;  %2271 = vmatprep.mubr.f32.mxu1 %v669_v24 }
 0x1a2   : > { %2258 = vmatmul.mubr.f32.gmra.mrb[6].mxu0 %v662_v29  ;;  %2272 = vmatmul.mubr.f32.gmra.mrb[6].mxu1 %v669_v24  ;;  %v1087_v29 = vld [vmem:[#allocation5 + $0x10] sm:$0xff]  ;;  %v1088_v24 = vld [vmem:[#allocation5 + $0x18] sm:$0xff] }
 0x1a3   : > { %2259 = vmatprep.mubr.f32.mxu0 %v663_v22  ;;  %2273 = vmatprep.mubr.f32.mxu1 %v670_v21 }
 0x1a6   : > { %2260 = vmatmul.mubr.f32.gmra.mrb[8].mxu0 %v663_v22  ;;  %2274 = vmatmul.mubr.f32.gmra.mrb[8].mxu1 %v670_v21 }
 0x1a7   : > { %2261 = vmatprep.mubr.f32.mxu0 %v664_v8  ;;  %2275 = vmatprep.mubr.f32.mxu1 %v671_v36 }
 0x1aa   : > { %2262 = vmatmul.mubr.f32.gmra.mrb[10].mxu0 %v664_v8  ;;  %2276 = vmatmul.mubr.f32.gmra.mrb[10].mxu1 %v671_v36 }
 0x1ab   : > { %2263 = vmatprep.mubr.f32.mxu0 %v665_v34 }
 0x1ae   : > { %2264 = vmatmul.mubr.f32.gmra.mrb[12].mxu0 %v665_v34  ;;  %v1089_v34 = vld [vmem:[#allocation5 + $0x20] sm:$0xff] }
 0x1e7   : > { %v1152_v52 = vpop.xlane.xlu0 %1151  ;;  %v1155_v58 = vpop.xlane.xlu1 %1154 }
 0x1e8   : > { %v1189_v20 = vadd.f32 %v1152_v52, %v1085_v54  ;;  %v1190_v3 = vadd.f32 %v1155_v58, %v1086_v2  ;;  %v1092_v52 = vld [vmem:[#allocation5 + $0x38] sm:$0xff] }
 0x1ea   : > { %1202 = vst.msk [vmem:[#allocation5] sm:$0xff] %vm4697_vm4, %v1189_v20  ;;  %1203 = vst.msk [vmem:[#allocation5 + $0x8] sm:$0xff] %vm4697_vm4, %v1190_v3  ;;  %v1093_v3 = vld [vmem:[#allocation5 + $0x40] sm:$0xff] }
 0x1eb   : > { %v1158_v22 = vpop.xlane.xlu0 %1157  ;;  %v1161_v21 = vpop.xlane.xlu1 %1160 }
 0x1ec   : > { %v1191_v8 = vadd.f32 %v1158_v22, %v1087_v29  ;;  %v1192_v36 = vadd.f32 %v1161_v21, %v1088_v24 }
 0x1ee   : > { %1204 = vst.msk [vmem:[#allocation5 + $0x10] sm:$0xff] %vm4697_vm4, %v1191_v8  ;;  %1205 = vst.msk [vmem:[#allocation5 + $0x18] sm:$0xff] %vm4697_vm4, %v1192_v36 }
 0x1ef   : > { %v1164_v10 = vpop.xlane.xlu0 %1163  ;;  %v1167_v31 = vpop.xlane.xlu1 %1166 }
 0x1f0   : > { %v1193_v23 = vadd.f32 %v1164_v10, %v1089_v34  ;;  %v1194_v0 = vadd.f32 %v1167_v31, %v1090_v37 }
 0x1f2   : > { %1206 = vst.msk [vmem:[#allocation5 + $0x20] sm:$0xff] %vm4697_vm4, %v1193_v23  ;;  %1207 = vst.msk [vmem:[#allocation5 + $0x28] sm:$0xff] %vm4697_vm4, %v1194_v0 }
 0x1f3   : > { %v1170_v54 = vpop.xlane.xlu0 %1169  ;;  %v1173_v58 = vpop.xlane.xlu1 %1172 }
 0x1f4   : > { %v1195_v2 = vadd.f32 %v1170_v54, %v1091_v28  ;;  %v1196_v20 = vadd.f32 %v1173_v58, %v1092_v52 }
 0x1f6   : > { %1208 = vst.msk [vmem:[#allocation5 + $0x30] sm:$0xff] %vm4697_vm4, %v1195_v2  ;;  %1209 = vst.msk [vmem:[#allocation5 + $0x38] sm:$0xff] %vm4697_vm4, %v1196_v20 }
 0x1f7   : > { %v1176_v29 = vpop.xlane.xlu0 %1175 }
 0x1f8   : > { %v1197_v24 = vadd.f32 %v1176_v29, %v1093_v3 }
 0x1fa   : > { %1210 = vst.msk [vmem:[#allocation5 + $0x40] sm:$0xff] %vm4697_vm4, %v1197_v24  ;;  %vm5063_vm4 = vnez %v4790_v59 }
 0x269   : > { %v770_v22 = vpop.f32.mrb[0].mxu0  ;;  %v812_v21 = vpop.f32.mrb[0].mxu1 }
 0x26a   : > { %850 = vst [vmem:[%s3692_s28] sm:$0xff] %v770_v22  ;;  %864 = vst [vmem:[%s3692_s28 + $0x70] sm:$0xff] %v812_v21  ;;  %v772_v8 = vpop.f32.mrb[1].mxu0  ;;  %v814_v36 = vpop.f32.mrb[1].mxu1  ;;  %v903_v34 = vsel %vm5057_vm2, %v812_v21, -1e+30  ;;  %vm5064_vm2 = vnez %v4793_v60 }
 0x26b   : > { %v889_v37 = vsel %vm5043_vm7, %v770_v22, -1e+30  ;;  %851 = vst [vmem:[%s3692_s28 + $0x8] sm:$0xff] %v772_v8  ;;  %865 = vst [vmem:[%s3692_s28 + $0x78] sm:$0xff] %v814_v36  ;;  %v904_v10 = vsel %vm5058_vm6, %v814_v36, -1e+30  ;;  %vm5065_vm7 = vnez %v4919_v56  ;;  %vm5066_vm6 = vnez %v4923_v57 }
 0x26c   : > { %v890_v31 = vsel %vm5044_vm14, %v772_v8, -1e+30  ;;  %v994_v23 = vsel %vm5063_vm4, %v770_v22, -1e+30  ;;  %v936_v0 = vmax.f32 %v903_v34, %v904_v10  ;;  %v995_v52 = vsel %vm5064_vm2, %v772_v8, -1e+30 }
 0x26d   : > { %v915_v28 = vmax.f32 %v889_v37, %v890_v31  ;;  %v1008_v54 = vsel %vm5065_vm7, %v812_v21, -1e+30  ;;  %v776_v58 = vpop.f32.mrb[2].mxu0  ;;  %v818_v2 = vpop.f32.mrb[2].mxu1  ;;  %v1020_v20 = vmax.f32 %v994_v23, %v995_v52  ;;  %v1009_v3 = vsel %vm5066_vm6, %v814_v36, -1e+30 }
 0x26e   : > { %937 = vmax.xlane.f32.xlu1 %v936_v0  ;;  %852 = vst [vmem:[%s3692_s28 + $0x10] sm:$0xff] %v776_v58  ;;  %866 = vst [vmem:[%s3692_s28 + $0x80] sm:$0xff] %v818_v2  ;;  %v778_v29 = vpop.f32.mrb[3].mxu0  ;;  %v820_v24 = vpop.f32.mrb[3].mxu1  ;;  %v1041_v22 = vmax.f32 %v1008_v54, %v1009_v3  ;;  %vm5067_vm14 = vnez %v4994_v38  ;;  %v891_v34 = vsel %vm5045_vm5, %v776_v58, -1e+30  ;;  %vm5068_vm4 = vnez %v4998_v39 }
 0x26f   : > { %916 = vmax.xlane.f32.xlu0 %v915_v28  ;;  %v1010_v8 = vsel %vm5067_vm14, %v818_v2, -1e+30  ;;  %853 = vst [vmem:[%s3692_s28 + $0x18] sm:$0xff] %v778_v29  ;;  %867 = vst [vmem:[%s3692_s28 + $0x88] sm:$0xff] %v820_v24  ;;  %v1011_v21 = vsel %vm5068_vm4, %v820_v24, -1e+30  ;;  %vm5069_vm5 = vnez %v4841_v15  ;;  %vm5070_vm2 = vnez %v4844_v16 }
 0x270   : > { %v892_v36 = vsel %vm5046_vm11, %v778_v29, -1e+30  ;;  %v905_v37 = vsel %vm5059_vm9, %v818_v2, -1e+30  ;;  %v1044_v10 = vmax.f32 %v1010_v8, %v1011_v21  ;;  %v906_v23 = vsel %vm5060_vm3, %v820_v24, -1e+30 }
 0x271   : > { %v918_v31 = vmax.f32 %v891_v34, %v892_v36  ;;  %v996_v0 = vsel %vm5069_vm5, %v776_v58, -1e+30  ;;  %v782_v28 = vpop.f32.mrb[4].mxu0  ;;  %v824_v52 = vpop.f32.mrb[4].mxu1  ;;  %v939_v54 = vmax.f32 %v905_v37, %v906_v23  ;;  %v997_v3 = vsel %vm5070_vm2, %v778_v29, -1e+30 }
 0x272   : > { %1021 = vmax.xlane.f32.xlu1 %v1020_v20  ;;  %854 = vst [vmem:[%s3692_s28 + $0x20] sm:$0xff] %v782_v28  ;;  %v784_v2 = vpop.f32.mrb[5].mxu0  ;;  %868 = vst [vmem:[%s3692_s28 + $0x90] sm:$0xff] %v824_v52  ;;  %v826_v8 = vpop.f32.mrb[5].mxu1  ;;  %v893_v34 = vsel %vm5047_vm12, %v782_v28, -1e+30  ;;  %v3738_v24 = vmax.f32 %v996_v0, %v997_v3  ;;  %vm5071_vm3 = vnez %v4974_v25  ;;  %vm5072_vm9 = vnez %v4978_v26 }
 0x273   : > { %1042 = vmax.xlane.f32.xlu0 %v1041_v22  ;;  %v907_v58 = vsel %vm5061_vm13, %v824_v52, -1e+30  ;;  %855 = vst [vmem:[%s3692_s28 + $0x28] sm:$0xff] %v784_v2  ;;  %869 = vst [vmem:[%s3692_s28 + $0x98] sm:$0xff] %v826_v8  ;;  %v894_v29 = vsel %vm5048_vm10, %v784_v2, -1e+30  ;;  %vm5073_vm13 = vnez %v4766_v49  ;;  %vm5074_vm11 = vnez %v4769_v50 }
 0x274   : > { %v908_v20 = vsel %vm5062_vm15, %v826_v8, -1e+30  ;;  %v1012_v22 = vsel %vm5071_vm3, %v824_v52, -1e+30  ;;  %v921_v21 = vmax.f32 %v893_v34, %v894_v29  ;;  %v1013_v37 = vsel %vm5072_vm9, %v826_v8, -1e+30  ;;  %v1182_v29 = vpop.xlane.xlu0 %1181 }
 0x275   : > { %v942_v36 = vmax.f32 %v907_v58, %v908_v20  ;;  %v998_v23 = vsel %vm5073_vm13, %v782_v28, -1e+30  ;;  %v788_v0 = vpop.f32.mrb[6].mxu0  ;;  %v830_v3 = vpop.f32.mrb[6].mxu1  ;;  %v3754_v47 = vmax.f32 %v1012_v22, %v1013_v37  ;;  %v999_v57 = vsel %vm5074_vm11, %v784_v2, -1e+30 }
 0x276   : > { %v1094_v56 = vld [vmem:[#allocation5 + $0x48] sm:$0xff]  ;;  %v1095_v25 = vld [vmem:[#allocation5 + $0x50] sm:$0xff]  ;;  %1045 = vmax.xlane.f32.xlu1 %v1044_v10  ;;  %856 = vst [vmem:[%s3692_s28 + $0x30] sm:$0xff] %v788_v0  ;;  %870 = vst [vmem:[%s3692_s28 + $0xa0] sm:$0xff] %v830_v3  ;;  %v790_v52 = vpop.f32.mrb[7].mxu0  ;;  %v832_v8 = vpop.f32.mrb[7].mxu1  ;;  %v3760_v34 = vmax.f32 %v998_v23, %v999_v57  ;;  %vm5075_vm15 = vnez %v4798_v63  ;;  %vm5076_vm12 = vnez %v4815_v5  ;;  %vm5077_vm10 = vnez %v4819_v6 }
 0x277   : > { %919 = vmax.xlane.f32.xlu0 %v918_v31  ;;  %v909_v28 = vsel %vm3484_vm0, %v830_v3, -1e+30  ;;  %v895_v58 = vsel %vm5049_vm8, %v788_v0, -1e+30  ;;  %857 = vst [vmem:[%s3692_s28 + $0x38] sm:$0xff] %v790_v52  ;;  %871 = vst [vmem:[%s3692_s28 + $0xa8] sm:$0xff] %v832_v8  ;;  %v1179_v57 = vpop.xlane.xlu1 %1178  ;;  %vm5078_vm8 = vnez %v5025_v18  ;;  %vm5079_vm7 = vnez %v5029_v12 }
 0x278   : > { %v910_v2 = vsel %vm3490_vm1, %v832_v8, -1e+30  ;;  %v896_v10 = vsel %vm5075_vm15, %v790_v52, -1e+30  ;;  %v1000_v31 = vsel %vm5076_vm12, %v788_v0, -1e+30  ;;  %v1198_v5 = vadd.f32 %v1179_v57, %v1094_v56 }
 0x279   : > { %v3774_v20 = vmax.f32 %v909_v28, %v910_v2  ;;  %v3776_v22 = vmax.f32 %v895_v58, %v896_v10  ;;  %v1001_v37 = vsel %vm5077_vm10, %v790_v52, -1e+30  ;;  %v1014_v23 = vsel %vm5078_vm8, %v830_v3, -1e+30  ;;  %v794_v26 = vpop.f32.mrb[8].mxu0  ;;  %v836_v39 = vpop.f32.mrb[8].mxu1 }
 0x27a   : > { %v1029_v38 = vmax.f32 %v1000_v31, %v1001_v37  ;;  %v1015_v0 = vsel %vm5079_vm7, %v832_v8, -1e+30  ;;  %v1199_v16 = vadd.f32 %v1182_v29, %v1095_v25  ;;  %922 = vmax.xlane.f32.xlu1 %v921_v21  ;;  %858 = vst [vmem:[%s3692_s28 + $0x40] sm:$0xff] %v794_v26  ;;  %872 = vst [vmem:[%s3692_s28 + $0xb0] sm:$0xff] %v836_v39  ;;  %v796_v28 = vpop.f32.mrb[9].mxu0  ;;  %v838_v58 = vpop.f32.mrb[9].mxu1  ;;  %vm5080_vm6 = vnez %v5002_v45 }
 0x27b   : > { %940 = vmax.xlane.f32.xlu0 %v939_v54  ;;  %v1050_v52 = vmax.f32 %v1014_v23, %v1015_v0  ;;  %v911_v3 = vsel %vm5080_vm6, %v836_v39, -1e+30  ;;  %vm5081_vm14 = vnez %v4875_v30  ;;  %859 = vst [vmem:[%s3692_s28 + $0x48] sm:$0xff] %v796_v28  ;;  %873 = vst [vmem:[%s3692_s28 + $0xb8] sm:$0xff] %v838_v58  ;;  %vm5082_vm4 = vnez %v5004_v48 }
 0x27c   : > { %v897_v2 = vsel %vm5081_vm14, %v794_v26, -1e+30  ;;  %v912_v56 = vsel %vm5082_vm4, %v838_v58, -1e+30  ;;  %vm5083_vm5 = vnez %v4877_v32  ;;  %vm5084_vm2 = vnez %v4893_v40 }
 0x27d   : > { %v898_v25 = vsel %vm5083_vm5, %v796_v28, -1e+30  ;;  %v1002_v54 = vsel %vm5084_vm2, %v794_v26, -1e+30  ;;  %vm5085_vm3 = vcmask 7168   ;;  %v948_v21 = vmax.f32 %v911_v3, %v912_v56  ;;  %v800_v57 = vpop.f32.mrb[10].mxu0 }
 0x27e   : > { %1211 = vst.msk [vmem:[#allocation5 + $0x48] sm:$0xff] %vm5085_vm3, %v1198_v5  ;;  %vm5086_vm9 = vmmov %vm5085_vm3  ;;  %v927_v8 = vmax.f32 %v897_v2, %v898_v25  ;;  %vm5087_vm13 = vnez %v4897_v42  ;;  %vm5088_vm11 = vnez %v5013_v55  ;;  %v842_v29 = vpop.f32.mrb[10].mxu1  ;;  %vm5089_vm15 = vnez %v5017_v62  ;;  %943 = vmax.xlane.f32.xlu1 %v942_v36  ;;  %v802_v5 = vpop.f32.mrb[11].mxu0  ;;  %v5094_v36 = vld [vmem:[#allocation13_spill] sm:$0xff]  ;;  %v5096_v56 = vld [vmem:[#allocation14_spill] sm:$0xff] }
 0x27f   : > { %1212 = vst.msk [vmem:[#allocation5 + $0x50] sm:$0xff] %vm5086_vm9, %v1199_v16  ;;  %v1003_v10 = vsel %vm5087_vm13, %v796_v28, -1e+30  ;;  %v1016_v31 = vsel %vm5088_vm11, %v836_v39, -1e+30  ;;  %1024 = vmax.xlane.f32.xlu0 %v3738_v24  ;;  %860 = vst [vmem:[%s3692_s28 + $0x50] sm:$0xff] %v800_v57  ;;  %vm5090_vm12 = vnez %v5032_v14  ;;  %vm5091_vm10 = vnez %v4848_v17 }
 0x280   : > { %v1032_v37 = vmax.f32 %v1002_v54, %v1003_v10  ;;  %v1017_v26 = vsel %vm5089_vm15, %v838_v58, -1e+30  ;;  %874 = vst [vmem:[%s3692_s28 + $0xc0] sm:$0xff] %v842_v29  ;;  %v844_v16 = vpop.f32.mrb[11].mxu1  ;;  %v913_v0 = vsel %vm5090_vm12, %v842_v29, -1e+30  ;;  %vm5092_vm8 = vnez %v5034_v35 }
 0x281   : > { %v1053_v23 = vmax.f32 %v1016_v31, %v1017_v26  ;;  %v899_v39 = vsel %vm5091_vm10, %v800_v57, -1e+30  ;;  %861 = vst [vmem:[%s3692_s28 + $0x58] sm:$0xff] %v802_v5  ;;  %875 = vst [vmem:[%s3692_s28 + $0xc8] sm:$0xff] %v844_v16  ;;  %v914_v28 = vsel %vm5092_vm8, %v844_v16, -1e+30  ;;  %vm5093_vm7 = vnez %v5041_v19 }
 0x282   : > { %v1019_v24 = vsel %vm5093_vm7, %v844_v16, -1e+30  ;;  %vm5095_vm14 = vnez %v5094_v36  ;;  %v951_v3 = vmax.f32 %v913_v0, %v914_v28  ;;  %vm5097_vm5 = vnez %v5096_v56  ;;  %v5098_v54 = vld [vmem:[#allocation15_spill] sm:$0xff]  ;;  %v806_v31 = vpop.f32.mrb[12].mxu0  ;;  %v5100_v62 = vld [vmem:[#allocation33_spill] sm:$0xff]  ;;  %1027 = vmax.xlane.f32.xlu1 %v3760_v34  ;;  %v5104_v28 = vld [vmem:[#allocation20_spill] sm:$0xff] }
 0x283   : > { %v900_v58 = vsel %vm5095_vm14, %v802_v5, -1e+30  ;;  %v1004_v25 = vsel %vm5097_vm5, %v800_v57, -1e+30  ;;  %vm5099_vm2 = vnez %v5098_v54  ;;  %vm5101_vm3 = vnez %v5100_v62  ;;  %1048 = vmax.xlane.f32.xlu0 %v3754_v47  ;;  %862 = vst [vmem:[%s3692_s28 + $0x60] sm:$0xff] %v806_v31  ;;  %v808_v16 = vpop.f32.mrb[13].mxu0 }
 0x284   : > { %v930_v2 = vmax.f32 %v899_v39, %v900_v58  ;;  %v1005_v10 = vsel %vm5099_vm2, %v802_v5, -1e+30  ;;  %v1018_v55 = vsel %vm5101_vm3, %v842_v29, -1e+30  ;;  %v5102_v0 = vld [vmem:[#allocation23_spill] sm:$0xff]  ;;  %vm5105_vm13 = vnez %v5104_v28  ;;  %863 = vst [vmem:[%s3692_s28 + $0x68] sm:$0xff] %v808_v16 }
 0x285   : > { %v1035_v26 = vmax.f32 %v1004_v25, %v1005_v10  ;;  %v1056_v36 = vmax.f32 %v1018_v55, %v1019_v24  ;;  %vm5103_vm9 = vnez %v5102_v0  ;;  %v901_v57 = vsel %vm5105_vm13, %v806_v31, -1e+30  ;;  %v5106_v5 = vld [vmem:[#allocation21_spill] sm:$0xff]  ;;  %v5108_v56 = vld [vmem:[#allocation24_spill] sm:$0xff]  ;;  %v981_v25 = vld [vmem:[#allocation4] sm:$0xff] }
 0x286   : > { %v1006_v39 = vsel %vm5103_vm9, %v806_v31, -1e+30  ;;  %vm5107_vm11 = vnez %v5106_v5  ;;  %vm5109_vm15 = vnez %v5108_v56  ;;  %925 = vmax.xlane.f32.xlu1 %v3776_v22  ;;  %v5110_v55 = vmov 0.0   ;;  %v988_v54 = vld [vmem:[#allocation4 + $0x38] sm:$0xff]  ;;  %v877_v0 = vld [vmem:[#allocation3 + $0x8] sm:$0xff]  ;;  %v878_v56 = vld [vmem:[#allocation3 + $0x10] sm:$0xff] }
 0x287   : > { %v902_v58 = vsel %vm5107_vm11, %v808_v16, -1e+30  ;;  %v1007_v62 = vsel %vm5109_vm15, %v808_v16, -1e+30  ;;  %946 = vmax.xlane.f32.xlu0 %v3774_v20  ;;  %v2140_v34 = vsel %vm5080_vm6, 1.0, %v5110_v55  ;;  %v2141_v20 = vsel %vm5082_vm4, 1.0, %v5110_v55 }
 0x288   : > { %v1038_v29 = vmax.f32 %v1006_v39, %v1007_v62  ;;  %v933_v47 = vmax.f32 %v901_v57, %v902_v58  ;;  %v2143_v22 = vsel %vm5092_vm8, 1.0, %v5110_v55  ;;  %vm5111_vm6 = vcmask 7168   ;;  %v884_v58 = vld [vmem:[#allocation3 + $0x40] sm:$0xff] }
 0x289   : > { %vm5112_vm4 = vmmov %vm5111_vm6 }
 0x28a   : > { %1051 = vmax.xlane.f32.xlu1 %v1050_v52  ;;  %v1183_v52 = vadd.f32 %v2141_v20, %v2140_v34  ;;  %vm5114_vm10 = vmmov %vm5112_vm4  ;;  %v982_v34 = vld [vmem:[#allocation4 + $0x8] sm:$0xff]  ;;  %v885_v20 = vld [vmem:[#allocation3 + $0x48] sm:$0xff] }
 0x28b   : > { %1030 = vmax.xlane.f32.xlu0 %v1029_v38  ;;  %v2142_v38 = vsel %vm5090_vm12, 1.0, %v5110_v55  ;;  %vm5113_vm12 = vmmov %vm5112_vm4 }
 0x28c   : > { %vm5115_vm8 = vmmov %vm5112_vm4 }
 0x28d   : > { %vm5116_vm7 = vmmov %vm5112_vm4 }
 0x28e   : > { %949 = vmax.xlane.f32.xlu1 %v948_v21  ;;  %v1186_v21 = vadd.f32 %v2143_v22, %v2142_v38  ;;  %vm5117_vm14 = vmmov %vm5112_vm4 }
 0x28f   : > { %928 = vmax.xlane.f32.xlu0 %v927_v8  ;;  %v883_v8 = vld [vmem:[#allocation3 + $0x38] sm:$0xff]  ;;  %vm5118_vm5 = vmmov %vm5112_vm4 }
 0x290   : > { %vm5119_vm2 = vmmov %vm5112_vm4 }
 0x291   : > { %vm5120_vm3 = vmmov %vm5119_vm2 }
 0x292   : > { %1033 = vmax.xlane.f32.xlu1 %v1032_v37  ;;  %v876_v37 = vld [vmem:[#allocation3] sm:$0xff]  ;;  %vm5121_vm9 = vmmov %vm5119_vm2 }
 0x293   : > { %1054 = vmax.xlane.f32.xlu0 %v1053_v23  ;;  %vm5122_vm13 = vmmov %vm5119_vm2 }
 0x294   : > { %vm5123_vm11 = vmmov %vm5119_vm2 }
 0x295   : > { %vm5124_vm15 = vmmov %vm5119_vm2 }
 0x296   : > { %931 = vmax.xlane.f32.xlu1 %v930_v2 }
 0x297   : > { %952 = vmax.xlane.f32.xlu0 %v951_v3 }
 0x29a   : > { %1057 = vmax.xlane.f32.xlu1 %v1056_v36  ;;  %v989_v36 = vld [vmem:[#allocation4 + $0x40] sm:$0xff] }
 0x29b   : > { %1036 = vmax.xlane.f32.xlu0 %v1035_v26 }
 0x29e   : > { %1039 = vmax.xlane.f32.xlu1 %v1038_v29 }
 0x29f   : > { %934 = vmax.xlane.f32.xlu0 %v933_v47 }
 0x2a2   : > { %1184 = vadd.xlane.f32.xlu1 %v1183_v52 }
 0x2a3   : > { %1187 = vadd.xlane.f32.xlu0 %v1186_v21 }
 0x2fb   : > { %v938_v23 = vpop.xlane.xlu1 %937 }
 0x2fc   : > { %v917_v24 = vpop.xlane.xlu0 %916  ;;  %v961_v3 = vmax.f32 %v883_v8, %v938_v23  ;;  %v990_v8 = vld [vmem:[#allocation4 + $0x48] sm:$0xff] }
 0x2fd   : > { %v954_v2 = vmax.f32 %v876_v37, %v917_v24  ;;  %v983_v37 = vld [vmem:[#allocation4 + $0x10] sm:$0xff] }
 0x2fe   : > { %975 = vst.msk [vmem:[#allocation3 + $0x38] sm:$0xff] %vm5111_vm6, %v961_v3  ;;  %vm5125_vm6 = vmmov %vm5119_vm2 }
 0x2ff   : > { %968 = vst.msk [vmem:[#allocation3] sm:$0xff] %vm5112_vm4, %v954_v2  ;;  %v1022_v10 = vpop.xlane.xlu1 %1021  ;;  %vm5126_vm4 = vmmov %vm5119_vm2 }
 0x300   : > { %v1043_v31 = vpop.xlane.xlu0 %1042  ;;  %v1059_v26 = vmax.f32 %v981_v25, %v1022_v10  ;;  %v886_v25 = vld [vmem:[#allocation3 + $0x50] sm:$0xff] }
 0x301   : > { %v1066_v16 = vmax.f32 %v988_v54, %v1043_v31  ;;  %v879_v54 = vld [vmem:[#allocation3 + $0x18] sm:$0xff] }
 0x302   : > { %1072 = vst.msk [vmem:[#allocation4] sm:$0xff] %vm5113_vm12, %v1059_v26  ;;  %vm5127_vm12 = vmmov %vm5119_vm2 }
 0x303   : > { %1079 = vst.msk [vmem:[#allocation4 + $0x38] sm:$0xff] %vm5114_vm10, %v1066_v16  ;;  %v1046_v39 = vpop.xlane.xlu1 %1045  ;;  %vm5128_vm10 = vmmov %vm5119_vm2 }
 0x304   : > { %v920_v28 = vpop.xlane.xlu0 %919  ;;  %v1067_v57 = vmax.f32 %v989_v36, %v1046_v39  ;;  %v984_v36 = vld [vmem:[#allocation4 + $0x18] sm:$0xff] }
 0x305   : > { %v955_v5 = vmax.f32 %v877_v0, %v920_v28  ;;  %v991_v0 = vld [vmem:[#allocation4 + $0x50] sm:$0xff] }
 0x306   : > { %1080 = vst.msk [vmem:[#allocation4 + $0x40] sm:$0xff] %vm5115_vm8, %v1067_v57  ;;  %vm5129_vm8 = vmmov %vm5119_vm2 }
 0x307   : > { %969 = vst.msk [vmem:[#allocation3 + $0x8] sm:$0xff] %vm5116_vm7, %v955_v5  ;;  %v923_v29 = vpop.xlane.xlu1 %922  ;;  %vm5130_vm7 = vmmov %vm5119_vm2 }
 0x308   : > { %v941_v62 = vpop.xlane.xlu0 %940  ;;  %v956_v55 = vmax.f32 %v878_v56, %v923_v29  ;;  %v880_v56 = vld [vmem:[#allocation3 + $0x20] sm:$0xff] }
 0x309   : > { %v962_v47 = vmax.f32 %v884_v58, %v941_v62  ;;  %v887_v58 = vld [vmem:[#allocation3 + $0x58] sm:$0xff] }
 0x30a   : > { %970 = vst.msk [vmem:[#allocation3 + $0x10] sm:$0xff] %vm5118_vm5, %v956_v55  ;;  %vm5132_vm5 = vmmov %vm5119_vm2 }
 0x30b   : > { %976 = vst.msk [vmem:[#allocation3 + $0x40] sm:$0xff] %vm5117_vm14, %v962_v47  ;;  %v944_v22 = vpop.xlane.xlu1 %943  ;;  %vm5131_vm14 = vmmov %vm5119_vm2 }
 0x30c   : > { %v1025_v38 = vpop.xlane.xlu0 %1024  ;;  %v963_v21 = vmax.f32 %v885_v20, %v944_v22  ;;  %v992_v20 = vld [vmem:[#allocation4 + $0x58] sm:$0xff] }
 0x30d   : > { %v1060_v52 = vmax.f32 %v982_v34, %v1025_v38  ;;  %v985_v34 = vld [vmem:[#allocation4 + $0x20] sm:$0xff] }
 0x30e   : > { %977 = vst.msk [vmem:[#allocation3 + $0x48] sm:$0xff] %vm5120_vm3, %v963_v21  ;;  %vm5133_vm3 = vmmov %vm5119_vm2 }
 0x30f   : > { %1073 = vst.msk [vmem:[#allocation4 + $0x8] sm:$0xff] %vm5119_vm2, %v1060_v52  ;;  %v1028_v24 = vpop.xlane.xlu1 %1027 }
 0x310   : > { %v1049_v23 = vpop.xlane.xlu0 %1048  ;;  %v1061_v2 = vmax.f32 %v983_v37, %v1028_v24  ;;  %v881_v37 = vld [vmem:[#allocation3 + $0x28] sm:$0xff] }
 0x311   : > { %v1068_v3 = vmax.f32 %v990_v8, %v1049_v23  ;;  %v888_v8 = vld [vmem:[#allocation3 + $0x60] sm:$0xff] }
 0x312   : > { %1074 = vst.msk [vmem:[#allocation4 + $0x10] sm:$0xff] %vm5122_vm13, %v1061_v2  ;;  %vm5135_vm13 = vmmov %vm5119_vm2 }
 0x313   : > { %1081 = vst.msk [vmem:[#allocation4 + $0x48] sm:$0xff] %vm5121_vm9, %v1068_v3  ;;  %v926_v31 = vpop.xlane.xlu1 %925  ;;  %vm5134_vm9 = vmmov %vm5119_vm2 }
 0x314   : > { %v947_v10 = vpop.xlane.xlu0 %946  ;;  %v957_v16 = vmax.f32 %v879_v54, %v926_v31  ;;  %v993_v54 = vld [vmem:[#allocation4 + $0x60] sm:$0xff] }
 0x315   : > { %v964_v26 = vmax.f32 %v886_v25, %v947_v10  ;;  %v986_v25 = vld [vmem:[#allocation4 + $0x28] sm:$0xff] }
 0x316   : > { %971 = vst.msk [vmem:[#allocation3 + $0x18] sm:$0xff] %vm5124_vm15, %v957_v16  ;;  %vm5137_vm15 = vmmov %vm5119_vm2 }
 0x317   : > { %978 = vst.msk [vmem:[#allocation3 + $0x50] sm:$0xff] %vm5123_vm11, %v964_v26  ;;  %v1052_v28 = vpop.xlane.xlu1 %1051  ;;  %vm5136_vm11 = vmmov %vm5119_vm2 }
 0x318   : > { %v1031_v39 = vpop.xlane.xlu0 %1030  ;;  %v1069_v5 = vmax.f32 %v991_v0, %v1052_v28  ;;  %v882_v0 = vld [vmem:[#allocation3 + $0x30] sm:$0xff] }
 0x319   : > { %v1062_v57 = vmax.f32 %v984_v36, %v1031_v39  ;;  %v987_v36 = vld [vmem:[#allocation4 + $0x30] sm:$0xff] }
 0x31a   : > { %1082 = vst.msk [vmem:[#allocation4 + $0x50] sm:$0xff] %vm5126_vm4, %v1069_v5 }
 0x31b   : > { %1075 = vst.msk [vmem:[#allocation4 + $0x18] sm:$0xff] %vm5125_vm6, %v1062_v57  ;;  %v950_v62 = vpop.xlane.xlu1 %949 }
 0x31c   : > { %v929_v29 = vpop.xlane.xlu0 %928  ;;  %v965_v47 = vmax.f32 %v887_v58, %v950_v62  ;;  %v1096_v58 = vld [vmem:[#allocation5 + $0x58] sm:$0xff] }
 0x31d   : > { %v958_v55 = vmax.f32 %v880_v56, %v929_v29  ;;  %v1097_v56 = vld [vmem:[#allocation5 + $0x60] sm:$0xff] }
 0x31e   : > { %979 = vst.msk [vmem:[#allocation3 + $0x58] sm:$0xff] %vm5127_vm12, %v965_v47 }
 0x31f   : > { %972 = vst.msk [vmem:[#allocation3 + $0x20] sm:$0xff] %vm5128_vm10, %v958_v55  ;;  %v1034_v38 = vpop.xlane.xlu1 %1033 }
 0x320   : > { %v1055_v22 = vpop.xlane.xlu0 %1054  ;;  %v1063_v52 = vmax.f32 %v985_v34, %v1034_v38 }
 0x321   : > { %v1070_v21 = vmax.f32 %v992_v20, %v1055_v22 }
 0x322   : > { %1076 = vst.msk [vmem:[#allocation4 + $0x20] sm:$0xff] %vm5129_vm8, %v1063_v52 }
 0x323   : > { %1083 = vst.msk [vmem:[#allocation4 + $0x58] sm:$0xff] %vm5130_vm7, %v1070_v21  ;;  %v932_v24 = vpop.xlane.xlu1 %931 }
 0x324   : > { %v953_v23 = vpop.xlane.xlu0 %952  ;;  %v959_v2 = vmax.f32 %v881_v37, %v932_v24 }
 0x325   : > { %v966_v3 = vmax.f32 %v888_v8, %v953_v23 }
 0x326   : > { %973 = vst.msk [vmem:[#allocation3 + $0x28] sm:$0xff] %vm5132_vm5, %v959_v2 }
 0x327   : > { %980 = vst.msk [vmem:[#allocation3 + $0x60] sm:$0xff] %vm5131_vm14, %v966_v3  ;;  %v1058_v31 = vpop.xlane.xlu1 %1057 }
 0x328   : > { %v1037_v10 = vpop.xlane.xlu0 %1036  ;;  %v1071_v16 = vmax.f32 %v993_v54, %v1058_v31 }
 0x329   : > { %v1064_v26 = vmax.f32 %v986_v25, %v1037_v10 }
 0x32a   : > { %1084 = vst.msk [vmem:[#allocation4 + $0x60] sm:$0xff] %vm5133_vm3, %v1071_v16 }
 0x32b   : > { %1077 = vst.msk [vmem:[#allocation4 + $0x28] sm:$0xff] %vm5119_vm2, %v1064_v26  ;;  %v1040_v39 = vpop.xlane.xlu1 %1039 }
 0x32c   : > { %v935_v28 = vpop.xlane.xlu0 %934  ;;  %v1065_v57 = vmax.f32 %v987_v36, %v1040_v39 }
 0x32d   : > { %v960_v5 = vmax.f32 %v882_v0, %v935_v28 }
 0x32e   : > { %1078 = vst.msk [vmem:[#allocation4 + $0x30] sm:$0xff] %vm5134_vm9, %v1065_v57 }
 0x32f   : > { %974 = vst.msk [vmem:[#allocation3 + $0x30] sm:$0xff] %vm5135_vm13, %v960_v5  ;;  %v1185_v62 = vpop.xlane.xlu1 %1184 }
 0x330   : > { %v1188_v29 = vpop.xlane.xlu0 %1187  ;;  %v1200_v47 = vadd.f32 %v1185_v62, %v1096_v58 }
 0x331   : > { %v1201_v55 = vadd.f32 %v1188_v29, %v1097_v56 }
 0x332   : > { %1213 = vst.msk [vmem:[#allocation5 + $0x58] sm:$0xff] %vm5136_vm11, %v1200_v47 }
 0x333   : > { %1214 = vst.msk [vmem:[#allocation5 + $0x60] sm:$0xff] %vm5137_vm15, %v1201_v55 }
 0x334 PF: > { %p2144_p9 = scmp.ne.s32.totalorder %s2493_s19, 1 }
 0x336   : > { %1218 = sbr.rel (%p2144_p9) target bundleno = 1200 (0x4b0), region = 52 }
 0x33d   : > { %v1250_v34 = vld [vmem:[#allocation4 + $0x10] sm:$0xff]  ;;  %v1248_v20 = vld [vmem:[#allocation4] sm:$0xff]  ;;  %v1251_v38 = vld [vmem:[#allocation4 + $0x18] sm:$0xff]  ;;  %v2515_v22 = vmov 0   ;;  %s2218_s19 = smul.u32 208, %s2489_s18  ;;  %vm5138_vm10 = vnez %v4749_v41  ;;  %vm5139_vm14 = vnez %v4751_v43  ;;  %vm5142_vm2 = vnez %v4771_v51  ;;  %p2211_p13 = scmp.ne.s32.totalorder %s2489_s18, 1 }
 0x33e   : > { %2408 = vset.pattern.permute.xlu1 %v2515_v22  ;;  %2407 = vset.pattern.permute.xlu0 %v2515_v22  ;;  %v1263_v52 = vadd.f32 0.1, %v1250_v34  ;;  %v1261_v21 = vadd.f32 0.1, %v1248_v20  ;;  %v1249_v8 = vld [vmem:[#allocation4 + $0x8] sm:$0xff]  ;;  %v1252_v3 = vld [vmem:[#allocation4 + $0x20] sm:$0xff]  ;;  %vm5143_vm9 = vnez %v4773_v53 }
 0x33f   : > { %v1264_v37 = vadd.f32 0.1, %v1251_v38  ;;  %v1262_v23 = vadd.f32 0.1, %v1249_v8  ;;  %v1253_v24 = vld [vmem:[#allocation4 + $0x28] sm:$0xff]  ;;  %v1255_v54 = vld [vmem:[#allocation4 + $0x38] sm:$0xff] }
 0x340   : > { %1286 = vperm.xlu1 %2408, %v1263_v52   ;;  %1276 = vperm.xlu0 %2407, %v1261_v21   ;;  %v1266_v2 = vadd.f32 0.1, %v1253_v24  ;;  %v1265_v25 = vadd.f32 0.1, %v1252_v3  ;;  %v1254_v10 = vld [vmem:[#allocation4 + $0x30] sm:$0xff]  ;;  %v1257_v16 = vld [vmem:[#allocation4 + $0x48] sm:$0xff] }
 0x341   : > { %v1268_v31 = vadd.f32 0.1, %v1255_v54  ;;  %v1267_v26 = vadd.f32 0.1, %v1254_v10  ;;  %v1256_v36 = vld [vmem:[#allocation4 + $0x40] sm:$0xff]  ;;  %v1259_v28 = vld [vmem:[#allocation4 + $0x58] sm:$0xff] }
 0x342   : > { %v1270_v0 = vadd.f32 0.1, %v1257_v16  ;;  %v1269_v39 = vadd.f32 0.1, %v1256_v36  ;;  %v1258_v57 = vld [vmem:[#allocation4 + $0x50] sm:$0xff]  ;;  %v1443_v5 = vld [vmem:[#allocation3] sm:$0xff] }
 0x343   : > { %v1272_v58 = vadd.f32 0.1, %v1259_v28  ;;  %v1271_v56 = vadd.f32 0.1, %v1258_v57  ;;  %v1456_v62 = vmax.f32 %v1443_v5, 0.6 }
 0x344   : > { %1291 = vperm.xlu1 %2408, %v1264_v37   ;;  %1281 = vperm.xlu0 %2407, %v1262_v23   ;;  %v1260_v29 = vld [vmem:[#allocation4 + $0x60] sm:$0xff]  ;;  %v1445_v47 = vld [vmem:[#allocation3 + $0x10] sm:$0xff]  ;;  %v1447_v52 = vld [vmem:[#allocation3 + $0x20] sm:$0xff]  ;;  %s3883_s5 = scalar_lea.vmem [#allocation2], %s2218_s19  ;;  %v5179_v18 = vmov 0.0  }
 0x345   : > { %v1444_v55 = vld [vmem:[#allocation3 + $0x8] sm:$0xff]  ;;  %v1273_v34 = vadd.f32 0.1, %v1260_v29  ;;  %v1458_v20 = vmax.f32 %v1445_v47, 0.6  ;;  %v1446_v21 = vld [vmem:[#allocation3 + $0x18] sm:$0xff] }
 0x346   : > { %v2172_v38 = vadd.f32 -0.1, %v1456_v62  ;;  %v1457_v22 = vmax.f32 %v1444_v55, 0.6  ;;  %v1460_v37 = vmax.f32 %v1447_v52, 0.6 }
 0x347   : > { %v2174_v8 = vadd.f32 -0.1, %v1458_v20  ;;  %v1459_v24 = vmax.f32 %v1446_v21, 0.6  ;;  %v1449_v3 = vld [vmem:[#allocation3 + $0x30] sm:$0xff]  ;;  %v1450_v16 = vld [vmem:[#allocation3 + $0x38] sm:$0xff] }
 0x348   : > { %1301 = vperm.xlu1 %2408, %v1266_v2   ;;  %1296 = vperm.xlu0 %2407, %v1265_v25   ;;  %v2173_v23 = vadd.f32 -0.1, %v1457_v22  ;;  %v1448_v2 = vld [vmem:[#allocation3 + $0x28] sm:$0xff]  ;;  %v1462_v25 = vmax.f32 %v1449_v3, 0.6  ;;  %v1453_v57 = vld [vmem:[#allocation3 + $0x50] sm:$0xff] }
 0x349   : > { %v1461_v54 = vmax.f32 %v1448_v2, 0.6  ;;  %v2176_v10 = vadd.f32 -0.1, %v1460_v37  ;;  %v1463_v28 = vmax.f32 %v1450_v16, 0.6 }
 0x34a   : > { %v1452_v5 = vld [vmem:[#allocation3 + $0x48] sm:$0xff]  ;;  %v1466_v29 = vmax.f32 %v1453_v57, 0.6  ;;  %v1454_v55 = vld [vmem:[#allocation3 + $0x58] sm:$0xff]  ;;  %v3929_v43 = vld [vmem:[%s3883_s5 + $0x50] sm:$0xff] }
 0x34b   : > { %v2179_v62 = vadd.f32 -0.1, %v1463_v28  ;;  %v1465_v47 = vmax.f32 %v1452_v5, 0.6  ;;  %v1467_v22 = vmax.f32 %v1454_v55, 0.6 }
 0x34c   : > { %1311 = vperm.xlu1 %2408, %v1268_v31   ;;  %1306 = vperm.xlu0 %2407, %v1267_v26   ;;  %v2175_v31 = vadd.f32 -0.1, %v1459_v24  ;;  %v1451_v26 = vld [vmem:[#allocation3 + $0x40] sm:$0xff]  ;;  %v2182_v20 = vadd.f32 -0.1, %v1466_v29  ;;  %v3889_v37 = vld [vmem:[%s3883_s5 + $0x28] sm:$0xff] }
 0x34d   : > { %v1464_v36 = vmax.f32 %v1451_v26, 0.6  ;;  %v2183_v21 = vadd.f32 -0.1, %v1467_v22  ;;  %v3895_v24 = vld [vmem:[%s3883_s5 + $0x8] sm:$0xff]  ;;  %v3919_v26 = vld [vmem:[%s3883_s5 + $0x18] sm:$0xff] }
 0x34e   : > { %v3948_v28 = vld [vmem:[%s3883_s5 + $0x58] sm:$0xff]  ;;  %v3951_v57 = vld [vmem:[%s3883_s5 + $0x40] sm:$0xff] }
 0x34f   : > { %v4045_v51 = vld [vmem:[%s3883_s5 + $0x98] sm:$0xff]  ;;  %v4048_v5 = vld [vmem:[%s3883_s5 + $0x80] sm:$0xff] }
 0x350   : > { %1321 = vperm.xlu1 %2408, %v1270_v0   ;;  %1316 = vperm.xlu0 %2407, %v1269_v39   ;;  %v2178_v0 = vadd.f32 -0.1, %v1462_v25  ;;  %v2177_v39 = vadd.f32 -0.1, %v1461_v54  ;;  %v3901_v25 = vld [vmem:[%s3883_s5 + $0x30] sm:$0xff]  ;;  %v3907_v54 = vld [vmem:[%s3883_s5 + $0x38] sm:$0xff] }
 0x354   : > { %1331 = vperm.xlu1 %2408, %v1272_v58   ;;  %1326 = vperm.xlu0 %2407, %v1271_v56   ;;  %v2180_v58 = vadd.f32 -0.1, %v1464_v36  ;;  %v1455_v56 = vld [vmem:[#allocation3 + $0x60] sm:$0xff]  ;;  %v4711_v36 = vmov 0.0  }
 0x358   : > { %1484 = vperm.xlu1 %2408, %v2172_v38   ;;  %1336 = vperm.xlu0 %2407, %v1273_v34   ;;  %v1468_v34 = vmax.f32 %v1455_v56, 0.6  ;;  %v2181_v38 = vadd.f32 -0.1, %v1465_v47  ;;  %v3967_v56 = vld [vmem:[%s3883_s5 + $0x48] sm:$0xff]  ;;  %v3979_v47 = vld [vmem:[%s3883_s5 + $0x70] sm:$0xff] }
 0x35a   : > { %v2184_v52 = vadd.f32 -0.1, %v1468_v34  ;;  %v3995_v34 = vld [vmem:[%s3883_s5 + $0x78] sm:$0xff] }
 0x35c   : > { %1494 = vperm.xlu1 %2408, %v2174_v8   ;;  %1489 = vperm.xlu0 %2407, %v2173_v23   ;;  %v3886_v8 = vld [vmem:[%s3883_s5 + $0x20] sm:$0xff] }
 0x35d   : > { %v3892_v23 = vld [vmem:[%s3883_s5] sm:$0xff] }
 0x360   : > { %1504 = vperm.xlu1 %2408, %v2176_v10   ;;  %1499 = vperm.xlu0 %2407, %v2175_v31   ;;  %v3910_v10 = vld [vmem:[%s3883_s5 + $0x10] sm:$0xff] }
 0x364   : > { %1514 = vperm.xlu1 %2408, %v2178_v0   ;;  %1509 = vperm.xlu0 %2407, %v2177_v39  }
 0x368   : > { %1524 = vperm.xlu1 %2408, %v2180_v58   ;;  %1519 = vperm.xlu0 %2407, %v2179_v62  }
 0x36c   : > { %1534 = vperm.xlu1 %2408, %v2182_v20   ;;  %1529 = vperm.xlu0 %2407, %v2181_v38   ;;  %v3998_v20 = vld [vmem:[%s3883_s5 + $0x60] sm:$0xff]  ;;  %v5155_v38 = vld [vmem:[#allocation13_spill] sm:$0xff] }
 0x370   : > { %1544 = vperm.xlu1 %2408, %v2184_v52   ;;  %1539 = vperm.xlu0 %2407, %v2183_v21   ;;  %v4009_v52 = vld [vmem:[%s3883_s5 + $0x68] sm:$0xff] }
 0x3bf   : > { %v1287_v3 = vpop.permute.xlu1 %1286  ;;  %v1277_v2 = vpop.permute.xlu0 %1276 }
 0x3c0   : > { %vm1343_vm6 = vcmp.lt.f32.partialorder %v3886_v8, %v1287_v3  ;;  %vm1344_vm4 = vcmp.lt.f32.partialorder %v3889_v37, %v1287_v3  ;;  %vm1339_vm12 = vcmp.lt.f32.partialorder %v3892_v23, %v1277_v2  ;;  %vm1340_vm7 = vcmp.lt.f32.partialorder %v3895_v24, %v1277_v2 }
 0x3c1   : > { %vm1369_vm8 = vmand %vm5138_vm10, %vm1343_vm6 }
 0x3c2   : > { %vm3914_vm5 = vmand %vm5139_vm14, %vm1344_vm4  ;;  %v3932_v0 = vsel %vm1369_vm8, 1.0, %v4711_v36  ;;  %vm5144_vm4 = vnez %v4796_v61  ;;  %vm5147_vm8 = vnez %v4798_v63  ;;  %vm5150_vm14 = vnez %v4823_v7 }
 0x3c3   : > { %vm1365_vm3 = vmand %vm5142_vm2, %vm1339_vm12  ;;  %v1292_v41 = vpop.permute.xlu1 %1291  ;;  %v1282_v16 = vpop.permute.xlu0 %1281  ;;  %v3956_v61 = vsel %vm3914_vm5, 1.0, %v4711_v36  ;;  %vm5151_vm5 = vnez %v4825_v9 }
 0x3c4   : > { %vm1366_vm13 = vmand %vm5143_vm9, %vm1340_vm7  ;;  %vm1345_vm11 = vcmp.lt.f32.partialorder %v3901_v25, %v1292_v41  ;;  %vm1346_vm15 = vcmp.lt.f32.partialorder %v3907_v54, %v1292_v41  ;;  %vm1341_vm6 = vcmp.lt.f32.partialorder %v3910_v10, %v1282_v16  ;;  %vm1342_vm10 = vcmp.lt.f32.partialorder %v3919_v26, %v1282_v16  ;;  %v4032_v41 = vld [vmem:[%s3883_s5 + $0x90] sm:$0xff] }
 0x3c5   : > { %vm3936_vm12 = vmand %vm5144_vm4, %vm1345_vm11  ;;  %v3942_v53 = vsel %vm1365_vm3, 1.0, %v4711_v36  ;;  %v3945_v39 = vsel %vm1366_vm13, 1.0, %v4711_v36  ;;  %v1657_v63 = vadd.f32 %v3956_v61, %v3932_v0 }
 0x3c6   : > { %vm3960_vm7 = vmand %vm5147_vm8, %vm1346_vm15  ;;  %v1651_v58 = vadd.f32 %v3945_v39, %v3942_v53  ;;  %vm5152_vm15 = vnez %v4848_v17  ;;  %v4016_v2 = vsel %vm3936_vm12, 1.0, %v4711_v36  ;;  %vm5161_vm12 = vnez %v4901_v44 }
 0x3c7   : > { %vm1367_vm2 = vmand %vm5150_vm14, %vm1341_vm6  ;;  %v1302_v62 = vpop.permute.xlu1 %1301  ;;  %v1297_v29 = vpop.permute.xlu0 %1296  ;;  %vm5159_vm14 = vnez %v4875_v30  ;;  %v4021_v31 = vsel %vm3960_vm7, 1.0, %v4711_v36  ;;  %v1690_v16 = vmul.f32 %v3942_v53, %v3892_v23  ;;  %v1694_v53 = vmul.f32 %v3932_v0, %v3886_v8 }
 0x3c8   : > { %vm1368_vm3 = vmand %vm5151_vm5, %vm1342_vm10  ;;  %1652 = vadd.xlane.f32.xlu0 %v1651_v58  ;;  %vm1349_vm9 = vcmp.lt.f32.partialorder %v3929_v43, %v1302_v62  ;;  %vm1350_vm13 = vcmp.lt.f32.partialorder %v3948_v28, %v1302_v62  ;;  %vm1347_vm11 = vcmp.lt.f32.partialorder %v3951_v57, %v1297_v29  ;;  %vm1348_vm4 = vcmp.lt.f32.partialorder %v3967_v56, %v1297_v29  ;;  %v4061_v29 = vld [vmem:[%s3883_s5 + $0x88] sm:$0xff] }
 0x3c9   : > { %vm3983_vm6 = vmand %vm5152_vm15, %vm1349_vm9  ;;  %v3989_v9 = vsel %vm1367_vm2, 1.0, %v4711_v36  ;;  %v3992_v55 = vsel %vm1368_vm3, 1.0, %v4711_v36  ;;  %vm5156_vm10 = vnez %v5155_v38  ;;  %vm5160_vm5 = vnez %v4877_v32 }
 0x3ca   : > { %vm4002_vm8 = vmand %vm5156_vm10, %vm1350_vm13  ;;  %v1654_v22 = vadd.f32 %v3992_v55, %v3989_v9  ;;  %v1660_v62 = vadd.f32 %v4021_v31, %v4016_v2 }
 0x3cb   : > { %vm1373_vm2 = vmand %vm5159_vm14, %vm1347_vm11  ;;  %v1312_v21 = vpop.permute.xlu1 %1311  ;;  %v1307_v3 = vpop.permute.xlu0 %1306 }
 0x3cc   : > { %vm1374_vm3 = vmand %vm5160_vm5, %vm1348_vm4  ;;  %1655 = vadd.xlane.f32.xlu1 %v1654_v22  ;;  %1658 = vadd.xlane.f32.xlu0 %v1657_v63  ;;  %vm1353_vm9 = vcmp.lt.f32.partialorder %v3979_v47, %v1312_v21  ;;  %vm1354_vm13 = vcmp.lt.f32.partialorder %v3995_v34, %v1312_v21  ;;  %vm1351_vm11 = vcmp.lt.f32.partialorder %v3998_v20, %v1307_v3  ;;  %v4029_v30 = vsel %vm1373_vm2, 1.0, %v4711_v36  ;;  %v5167_v63 = vld [vmem:[#allocation20_spill] sm:$0xff] }
 0x3cd   : > { %vm4036_vm7 = vmand %vm5161_vm12, %vm1353_vm9  ;;  %vm1352_vm15 = vcmp.lt.f32.partialorder %v4009_v52, %v1307_v3  ;;  %v4042_v32 = vsel %vm1374_vm3, 1.0, %v4711_v36  ;;  %vm5164_vm4 = vnez %v4903_v46  ;;  %vm5168_vm14 = vnez %v5167_v63  ;;  %v5169_v3 = vld [vmem:[#allocation21_spill] sm:$0xff]  ;;  %v4084_v63 = vld [vmem:[%s3883_s5 + $0xb0] sm:$0xff] }
 0x3ce   : > { %vm4052_vm10 = vmand %vm5164_vm4, %vm1354_vm13  ;;  %v1663_v44 = vadd.f32 %v4042_v32, %v4029_v30  ;;  %v4068_v22 = vsel %vm3983_vm6, 1.0, %v4711_v36  ;;  %v4073_v21 = vsel %vm4002_vm8, 1.0, %v4711_v36  ;;  %vm5170_vm5 = vnez %v5169_v3 }
 0x3cf   : > { %vm1377_vm2 = vmand %vm5168_vm14, %vm1351_vm11  ;;  %v1322_v38 = vpop.permute.xlu1 %1321  ;;  %v1317_v46 = vpop.permute.xlu0 %1316  ;;  %vm5171_vm6 = vnez %v4956_v11  ;;  %v1666_v19 = vadd.f32 %v4073_v21, %v4068_v22  ;;  %vm5178_vm14 = vnez %v4982_v27  ;;  %v4125_v6 = vsel %vm4052_vm10, 1.0, %v5179_v18 }
 0x3d0   : > { %vm1378_vm3 = vmand %vm5170_vm5, %vm1352_vm15  ;;  %1664 = vadd.xlane.f32.xlu1 %v1663_v44  ;;  %1661 = vadd.xlane.f32.xlu0 %v1660_v62  ;;  %vm1357_vm9 = vcmp.lt.f32.partialorder %v4032_v41, %v1322_v38  ;;  %vm1358_vm13 = vcmp.lt.f32.partialorder %v4045_v51, %v1322_v38  ;;  %vm1355_vm11 = vcmp.lt.f32.partialorder %v4048_v5, %v1317_v46  ;;  %v4081_v7 = vsel %vm1377_vm2, 1.0, %v4711_v36  ;;  %v4097_v62 = vld [vmem:[%s3883_s5 + $0xb8] sm:$0xff]  ;;  %v4100_v38 = vld [vmem:[%s3883_s5 + $0xa0] sm:$0xff] }
 0x3d1   : > { %vm4088_vm8 = vmand %vm5171_vm6, %vm1357_vm9  ;;  %vm1356_vm12 = vcmp.lt.f32.partialorder %v4061_v29, %v1317_v46  ;;  %v4094_v44 = vsel %vm1378_vm3, 1.0, %v4711_v36  ;;  %vm5174_vm15 = vnez %v4958_v13  ;;  %v4113_v46 = vld [vmem:[%s3883_s5 + $0xa8] sm:$0xff]  ;;  %v4120_v13 = vsel %vm4036_vm7, 1.0, %v5179_v18 }
 0x3d2   : > { %vm4104_vm4 = vmand %vm5174_vm15, %vm1358_vm13  ;;  %v1669_v11 = vadd.f32 %v4094_v44, %v4081_v7  ;;  %5177 = vst [vmem:[#allocation35_spill] sm:$0xff] %v4113_v46  ;;  %vm5180_vm5 = vnez %v4984_v33  ;;  %vm5181_vm7 = vnez %v5002_v45  ;;  %v1672_v58 = vadd.f32 %v4125_v6, %v4120_v13 }
 0x3d3   : > { %vm1381_vm2 = vmand %vm5178_vm14, %vm1355_vm11  ;;  %v1332_v36 = vpop.permute.xlu1 %1331  ;;  %v1327_v12 = vpop.permute.xlu0 %1326  ;;  %v2165_v42 = vsel %vm4104_vm4, 1.0, %v5179_v18  ;;  %vm5191_vm4 = vnez %v5034_v35  ;;  %v1701_v0 = vmul.f32 %v4073_v21, %v3948_v28  ;;  %v1705_v21 = vmul.f32 %v4125_v6, %v3995_v34 }
 0x3d4   : > { %vm1382_vm3 = vmand %vm5180_vm5, %vm1356_vm12  ;;  %1670 = vadd.xlane.f32.xlu1 %v1669_v11  ;;  %1667 = vadd.xlane.f32.xlu0 %v1666_v19  ;;  %vm1361_vm9 = vcmp.lt.f32.partialorder %v4084_v63, %v1332_v36  ;;  %vm1362_vm13 = vcmp.lt.f32.partialorder %v4097_v62, %v1332_v36  ;;  %vm1359_vm11 = vcmp.lt.f32.partialorder %v4100_v38, %v1327_v12  ;;  %v4133_v27 = vsel %vm1381_vm2, 1.0, %v5179_v18  ;;  %v4146_v19 = vld [vmem:[%s3883_s5 + $0xc0] sm:$0xff]  ;;  %v4159_v11 = vld [vmem:[%s3883_s5 + $0xc8] sm:$0xff] }
 0x3d5   : > { %vm4137_vm6 = vmand %vm5181_vm7, %vm1361_vm9  ;;  %vm1360_vm10 = vcmp.lt.f32.partialorder %v4113_v46, %v1327_v12  ;;  %v4143_v33 = vsel %vm1382_vm3, 1.0, %v5179_v18  ;;  %5184 = vst [vmem:[#allocation36_spill] sm:$0xff] %v4146_v19  ;;  %vm5185_vm12 = vnez %v5004_v48  ;;  %v2164_v48 = vsel %vm4088_vm8, 1.0, %v5179_v18 }
 0x3d6   : > { %vm4150_vm15 = vmand %vm5185_vm12, %vm1362_vm13  ;;  %v1675_v45 = vadd.f32 %v4143_v33, %v4133_v27  ;;  %5188 = vst [vmem:[#allocation37_spill] sm:$0xff] %v4159_v11  ;;  %v1678_v3 = vadd.f32 %v2165_v42, %v2164_v48  ;;  %vm5190_vm8 = vnez %v5032_v14  ;;  %v4186_v4 = vsel %vm4137_vm6, 1.0, %v5179_v18 }
 0x3d7   : > { %vm1385_vm14 = vmand %vm3484_vm0, %vm1359_vm11  ;;  %v1337_v12 = vpop.permute.xlu0 %1336  ;;  %v1485_v46 = vpop.permute.xlu1 %1484  ;;  %vm5194_vm7 = vnez %v4790_v59  ;;  %vm5195_vm12 = vnez %v4793_v60  ;;  %v5231_v60 = vld [vmem:[#allocation23_spill] sm:$0xff] }
 0x3d8   : > { %vm1386_vm2 = vmand %vm3490_vm1, %vm1360_vm10  ;;  %1676 = vadd.xlane.f32.xlu1 %v1675_v45  ;;  %1673 = vadd.xlane.f32.xlu0 %v1672_v58  ;;  %vm1363_vm5 = vcmp.lt.f32.partialorder %v4146_v19, %v1337_v12  ;;  %v4173_v40 = vsel %vm1385_vm14, 1.0, %v5179_v18  ;;  %vm1364_vm0 = vcmp.lt.f32.partialorder %v4159_v11, %v1337_v12  ;;  %v4191_v45 = vsel %vm4150_vm15, 1.0, %v5179_v18 }
 0x3d9   : > { %v4177_v1 = vsel %vm1386_vm2, 1.0, %v5179_v18  ;;  %vm1389_vm1 = vmand %vm5190_vm8, %vm1363_vm5  ;;  %v1691_v12 = vmul.f32 %v3945_v39, %v3895_v24  ;;  %v1684_v35 = vadd.f32 %v4191_v45, %v4186_v4  ;;  %v1695_v39 = vmul.f32 %v3956_v61, %v3889_v37 }
 0x3da   : > { %5189 = vst [vmem:[#allocation38_spill] sm:$0xff] %v4177_v1  ;;  %v1681_v17 = vadd.f32 %v4177_v1, %v4173_v40  ;;  %vm1390_vm3 = vmand %vm5191_vm4, %vm1364_vm0  ;;  %v4196_v58 = vsel %vm1389_vm1, 1.0, %v5179_v18  ;;  %v1698_v61 = vmul.f32 %v4029_v30, %v3951_v57  ;;  %vm1547_vm9 = vcmp.gt.f32.partialorder %v3892_v23, %v1485_v46 }
 0x3db   : > { %5192 = vst [vmem:[#allocation39_spill] sm:$0xff] %v4196_v58  ;;  %v4199_v14 = vsel %vm1390_vm3, 1.0, %v5179_v18  ;;  %v1495_v11 = vpop.permute.xlu1 %1494  ;;  %v1490_v1 = vpop.permute.xlu0 %1489  ;;  %v1702_v30 = vmul.f32 %v4081_v7, %v3998_v20  ;;  %vm1548_vm13 = vcmp.gt.f32.partialorder %v3895_v24, %v1485_v46  ;;  %vm1573_vm6 = vmand %vm5194_vm7, %vm1547_vm9  ;;  %v1706_v7 = vmul.f32 %v4133_v27, %v4048_v5 }
 0x3dc   : > { %1682 = vadd.xlane.f32.xlu1 %v1681_v17  ;;  %1679 = vadd.xlane.f32.xlu0 %v1678_v3  ;;  %5193 = vst [vmem:[#allocation40_spill] sm:$0xff] %v4199_v14  ;;  %v1687_v36 = vadd.f32 %v4199_v14, %v4196_v58  ;;  %v1692_v17 = vmul.f32 %v3989_v9, %v3910_v10  ;;  %vm1574_vm15 = vmand %vm5195_vm12, %vm1548_vm13  ;;  %vm5196_vm2 = vnez %v4766_v49  ;;  %v2185_v27 = vsel %vm1573_vm6, 1.0, %v5179_v18 }
 0x3dd   : > { %v1693_v3 = vmul.f32 %v3992_v55, %v3919_v26  ;;  %v1716_v14 = vadd.f32 %v1691_v12, %v1690_v16  ;;  %v1696_v58 = vmul.f32 %v4016_v2, %v3901_v25  ;;  %v1697_v9 = vmul.f32 %v4021_v31, %v3907_v54 }
 0x3de   : > { %v1700_v55 = vmul.f32 %v4068_v22, %v3929_v43  ;;  %v1699_v16 = vmul.f32 %v4042_v32, %v3967_v56  ;;  %v1722_v2 = vadd.f32 %v1695_v39, %v1694_v53  ;;  %v1704_v22 = vmul.f32 %v4120_v13, %v3979_v47 }
 0x3df   : > { %v1719_v19 = vadd.f32 %v1693_v3, %v1692_v17  ;;  %v1725_v12 = vadd.f32 %v1697_v9, %v1696_v58  ;;  %v1500_v31 = vpop.permute.xlu0 %1499  ;;  %v1703_v32 = vmul.f32 %v4094_v44, %v4009_v52  ;;  %vm1551_vm11 = vcmp.gt.f32.partialorder %v3886_v8, %v1495_v11  ;;  %v5209_v3 = vld [vmem:[#allocation35_spill] sm:$0xff] }
 0x3e0   : > { %1688 = vadd.xlane.f32.xlu1 %v1687_v36  ;;  %1685 = vadd.xlane.f32.xlu0 %v1684_v35  ;;  %v1505_v36 = vpop.permute.xlu1 %1504  ;;  %v1708_v58 = vmul.f32 %v2164_v48, %v4032_v41  ;;  %vm1552_vm10 = vcmp.gt.f32.partialorder %v3889_v37, %v1495_v11  ;;  %v1709_v13 = vmul.f32 %v2165_v42, %v4045_v51  ;;  %vm4254_vm5 = vmand %vm5196_vm2, %vm1551_vm11  ;;  %v5205_v35 = vld [vmem:[#allocation12_spill] sm:$0xff] }
 0x3e1   : > { %v1707_v44 = vmul.f32 %v4143_v33, %v4061_v29  ;;  %vm1549_vm14 = vcmp.gt.f32.partialorder %v3910_v10, %v1490_v1  ;;  %v1737_v46 = vadd.f32 %v1705_v21, %v1704_v22  ;;  %v1734_v48 = vadd.f32 %v1703_v32, %v1702_v30  ;;  %v5210_v53 = vld [vmem:[#allocation38_spill] sm:$0xff]  ;;  %v5217_v22 = vld [vmem:[#allocation17_spill] sm:$0xff]  ;;  %v5257_v21 = vld [vmem:[#allocation19_spill] sm:$0xff] }
 0x3e2   : > { %vm1550_vm0 = vcmp.gt.f32.partialorder %v3919_v26, %v1490_v1  ;;  %vm5199_vm8 = vnez %v4769_v50  ;;  %v1712_v49 = vmul.f32 %v4186_v4, %v4084_v63  ;;  %v2186_v33 = vsel %vm1574_vm15, 1.0, %v5179_v18  ;;  %v5221_v30 = vld [vmem:[#allocation37_spill] sm:$0xff] }
 0x3e3   : > { %v1510_v42 = vpop.permute.xlu0 %1509  ;;  %vm4262_vm1 = vmand %vm5199_vm8, %vm1552_vm10  ;;  %vm5202_vm4 = vnez %v4841_v15  ;;  %vm1555_vm9 = vcmp.gt.f32.partialorder %v3951_v57, %v1505_v36  ;;  %v1743_v50 = vadd.f32 %v1709_v13, %v1708_v58  ;;  %v1740_v1 = vadd.f32 %v1707_v44, %v1706_v7  ;;  %v5222_v32 = vld [vmem:[#allocation40_spill] sm:$0xff]  ;;  %v5223_v13 = vld [vmem:[#allocation10_spill] sm:$0xff] }
 0x3e4   : > { %1720 = vadd.xlane.f32.xlu1 %v1719_v19  ;;  %1717 = vadd.xlane.f32.xlu0 %v1716_v14  ;;  %v1731_v19 = vadd.f32 %v1701_v0, %v1700_v55  ;;  %v1728_v14 = vadd.f32 %v1699_v16, %v1698_v61  ;;  %v1515_v6 = vpop.permute.xlu1 %1514  ;;  %vm4271_vm3 = vmand %vm5202_vm4, %vm1549_vm14  ;;  %vm5206_vm13 = vnez %v5205_v35  ;;  %vm1556_vm7 = vcmp.gt.f32.partialorder %v3967_v56, %v1505_v36 }
 0x3e5   : > { %vm4278_vm11 = vmand %vm5206_vm13, %vm1550_vm0  ;;  %v1713_v4 = vmul.f32 %v4191_v45, %v4097_v62  ;;  %v1710_v15 = vmul.f32 %v4173_v40, %v4100_v38  ;;  %v1711_v39 = vmul.f32 %v5210_v53, %v5209_v3  ;;  %v2189_v9 = vsel %vm4254_vm5, 1.0, %v5179_v18  ;;  %v5211_v45 = vld [vmem:[#allocation16_spill] sm:$0xff]  ;;  %v5285_v53 = vld [vmem:[#allocation29_spill] sm:$0xff] }
 0x3e6   : > { %vm1553_vm6 = vcmp.gt.f32.partialorder %v3901_v25, %v1500_v31  ;;  %v1755_v0 = vmul.f32 %v2185_v27, %v3892_v23  ;;  %v2190_v61 = vsel %vm4262_vm1, 1.0, %v5179_v18  ;;  %vm5212_vm10 = vnez %v5211_v45  ;;  %v5247_v45 = vld [vmem:[#allocation27_spill] sm:$0xff] }
 0x3e7   : > { %vm4299_vm12 = vmand %vm5212_vm10, %vm1555_vm9  ;;  %vm1554_vm15 = vcmp.gt.f32.partialorder %v3907_v54, %v1500_v31  ;;  %v1756_v16 = vmul.f32 %v2186_v33, %v3895_v24  ;;  %v2187_v23 = vsel %vm4271_vm3, 1.0, %v5179_v18  ;;  %vm5218_vm14 = vnez %v5217_v22  ;;  %v1520_v24 = vpop.permute.xlu0 %1519  ;;  %v5235_v33 = vld [vmem:[#allocation24_spill] sm:$0xff]  ;;  %v5273_v31 = vld [vmem:[#allocation26_spill] sm:$0xff] }
 0x3e8   : > { %1726 = vadd.xlane.f32.xlu1 %v1725_v12  ;;  %1723 = vadd.xlane.f32.xlu0 %v1722_v2  ;;  %v1525_v55 = vpop.permute.xlu1 %1524  ;;  %v5215_v12 = vld [vmem:[#allocation36_spill] sm:$0xff]  ;;  %v5216_v2 = vld [vmem:[#allocation39_spill] sm:$0xff]  ;;  %vm4317_vm2 = vmand %vm5218_vm14, %vm1556_vm7  ;;  %vm1559_vm5 = vcmp.gt.f32.partialorder %v3998_v20, %v1515_v6  ;;  %v1715_v58 = vmul.f32 %v5222_v32, %v5221_v30  ;;  %vm5224_vm0 = vnez %v5223_v13  ;;  %vm1560_vm1 = vcmp.gt.f32.partialorder %v4009_v52, %v1515_v6 }
 0x3e9   : > { %vm4328_vm8 = vmand %vm5224_vm0, %vm1553_vm6  ;;  %v1749_v36 = vadd.f32 %v1713_v4, %v1712_v49  ;;  %v1746_v44 = vadd.f32 %v1711_v39, %v1710_v15  ;;  %vm1557_vm9 = vcmp.gt.f32.partialorder %v3929_v43, %v1510_v42  ;;  %v1759_v59 = vmul.f32 %v2189_v9, %v3886_v8  ;;  %v5243_v15 = vld [vmem:[#allocation15_spill] sm:$0xff] }
 0x3ea   : > { %v1760_v27 = vmul.f32 %v2190_v61, %v3889_v37  ;;  %v2193_v6 = vsel %vm4299_vm12, 1.0, %v5179_v18  ;;  %vm5232_vm13 = vnez %v5231_v60  ;;  %vm1558_vm7 = vcmp.gt.f32.partialorder %v3948_v28, %v1510_v42 }
 0x3eb   : > { %v1757_v49 = vmul.f32 %v2187_v23, %v3910_v10  ;;  %vm5236_vm6 = vnez %v5235_v33  ;;  %v2194_v35 = vsel %vm4317_vm2, 1.0, %v5179_v18  ;;  %v2191_v17 = vsel %vm4328_vm8, 1.0, %v5179_v18  ;;  %v1530_v39 = vpop.permute.xlu0 %1529  ;;  %v5277_v33 = vld [vmem:[#allocation33_spill] sm:$0xff] }
 0x3ec   : > { %1732 = vadd.xlane.f32.xlu1 %v1731_v19  ;;  %1729 = vadd.xlane.f32.xlu0 %v1728_v14  ;;  %v1714_v19 = vmul.f32 %v5216_v2, %v5215_v12  ;;  %v2188_v14 = vsel %vm4278_vm11, 1.0, %v5179_v18  ;;  %vm4349_vm11 = vmand %vm5232_vm13, %vm1559_vm5  ;;  %v1535_v11 = vpop.permute.xlu1 %1534  ;;  %vm1563_vm14 = vcmp.gt.f32.partialorder %v4048_v5, %v1525_v55  ;;  %vm5244_vm2 = vnez %v5243_v15 }
 0x3ed   : > { %v1758_v8 = vmul.f32 %v2188_v14, %v3919_v26  ;;  %vm4358_vm10 = vmand %vm5236_vm6, %vm1560_vm1  ;;  %v5239_v26 = vld [vmem:[#allocation14_spill] sm:$0xff]  ;;  %vm1564_vm0 = vcmp.gt.f32.partialorder %v4061_v29, %v1525_v55  ;;  %v1763_v9 = vmul.f32 %v2193_v6, %v3951_v57  ;;  %v2197_v42 = vsel %vm4349_vm11, 1.0, %v5179_v18  ;;  %v5249_v14 = vld [vmem:[#allocation28_spill] sm:$0xff] }
 0x3ee   : > { %vm5240_vm12 = vnez %v5239_v26  ;;  %vm4382_vm5 = vmand %vm5244_vm2, %vm1558_vm7  ;;  %vm1561_vm8 = vcmp.gt.f32.partialorder %v3979_v47, %v1520_v24  ;;  %vm5248_vm1 = vnez %v5247_v45  ;;  %v1764_v40 = vmul.f32 %v2194_v35, %v3967_v56  ;;  %v5269_v6 = vld [vmem:[#allocation25_spill] sm:$0xff] }
 0x3ef   : > { %v1784_v61 = vadd.f32 %v1758_v8, %v1757_v49  ;;  %v2198_v2 = vsel %vm4358_vm10, 1.0, %v5179_v18  ;;  %v2196_v23 = vsel %vm4382_vm5, 1.0, %v5179_v18  ;;  %vm1567_vm11 = vcmp.gt.f32.partialorder %v4100_v38, %v1535_v11  ;;  %v1540_v7 = vpop.permute.xlu0 %1539 }
 0x3f0   : > { %1738 = vadd.xlane.f32.xlu1 %v1737_v46  ;;  %1735 = vadd.xlane.f32.xlu0 %v1734_v48  ;;  %v5227_v46 = vld [vmem:[#allocation11_spill] sm:$0xff]  ;;  %vm1568_vm10 = vcmp.gt.f32.partialorder %v5209_v3, %v1535_v11  ;;  %v1545_v22 = vpop.permute.xlu1 %1544 }
 0x3f1   : > { %vm5228_vm4 = vnez %v5227_v46  ;;  %v1766_v46 = vmul.f32 %v2196_v23, %v3948_v28 }
 0x3f2   : > { %vm4337_vm3 = vmand %vm5228_vm4, %vm1554_vm15 }
 0x3f3   : > { %v2192_v10 = vsel %vm4337_vm3, 1.0, %v5179_v18  ;;  %vm4375_vm15 = vmand %vm5240_vm12, %vm1557_vm9  ;;  %vm1562_vm3 = vcmp.gt.f32.partialorder %v3995_v34, %v1520_v24  ;;  %vm5250_vm9 = vnez %v5249_v14  ;;  %vm5258_vm12 = vnez %v5257_v21 }
 0x3f4   : > { %1744 = vadd.xlane.f32.xlu1 %v1743_v50  ;;  %1741 = vadd.xlane.f32.xlu0 %v1740_v1  ;;  %v1781_v50 = vadd.f32 %v1756_v16, %v1755_v0  ;;  %v1752_v1 = vadd.f32 %v1715_v58, %v1714_v19  ;;  %v1787_v0 = vadd.f32 %v1760_v27, %v1759_v59  ;;  %vm1589_vm4 = vmand %vm5248_vm1, %vm1563_vm14  ;;  %v2195_v19 = vsel %vm4375_vm15, 1.0, %v5179_v18  ;;  %v5261_v58 = vld [vmem:[#allocation31_spill] sm:$0xff] }
 0x3f5   : > { %v1761_v16 = vmul.f32 %v2191_v17, %v3901_v25  ;;  %v1762_v57 = vmul.f32 %v2192_v10, %v3907_v54  ;;  %vm4411_vm13 = vmand %vm5250_vm9, %vm1564_vm0  ;;  %v5253_v54 = vld [vmem:[#allocation18_spill] sm:$0xff]  ;;  %v2201_v55 = vsel %vm1589_vm4, 1.0, %v5179_v18  ;;  %vm1565_vm14 = vcmp.gt.f32.partialorder %v4032_v41, %v1530_v39 }
 0x3f6   : > { %vm5254_vm7 = vnez %v5253_v54  ;;  %vm4428_vm15 = vmand %vm5258_vm12, %vm1562_vm3  ;;  %v1767_v24 = vmul.f32 %v2197_v42, %v3998_v20  ;;  %vm5262_vm2 = vnez %v5261_v58  ;;  %vm1566_vm0 = vcmp.gt.f32.partialorder %v4045_v51, %v1530_v39  ;;  %v5265_v20 = vld [vmem:[#allocation32_spill] sm:$0xff]  ;;  %v5281_v17 = vld [vmem:[#allocation34_spill] sm:$0xff] }
 0x3f7   : > { %vm4420_vm6 = vmand %vm5254_vm7, %vm1561_vm8  ;;  %v2202_v48 = vsel %vm4411_vm13, 1.0, %v5179_v18  ;;  %vm5266_vm8 = vnez %v5265_v20  ;;  %vm1571_vm4 = vcmp.gt.f32.partialorder %v5215_v12, %v1545_v22  ;;  %v1793_v27 = vadd.f32 %v1764_v40, %v1763_v9  ;;  %v5287_v39 = vld [vmem:[#allocation30_spill] sm:$0xff] }
 0x3f8   : > { %1750 = vadd.xlane.f32.xlu1 %v1749_v36  ;;  %1747 = vadd.xlane.f32.xlu0 %v1746_v44  ;;  %vm4436_vm5 = vmand %vm5262_vm2, %vm1567_vm11  ;;  %v1768_v36 = vmul.f32 %v2198_v2, %v4009_v52  ;;  %v1765_v44 = vmul.f32 %v2195_v19, %v3929_v43  ;;  %v1790_v52 = vadd.f32 %v1762_v57, %v1761_v16  ;;  %v2199_v43 = vsel %vm4420_vm6, 1.0, %v5179_v18 }
 0x3f9   : > { %vm4451_vm1 = vmand %vm5266_vm8, %vm1568_vm10  ;;  %v2200_v28 = vsel %vm4428_vm15, 1.0, %v5179_v18  ;;  %vm5270_vm3 = vnez %v5269_v6  ;;  %vm1572_vm13 = vcmp.gt.f32.partialorder %v5221_v30, %v1545_v22  ;;  %vm5274_vm11 = vnez %v5273_v31  ;;  %v1820_v6 = vld [vmem:[#allocation6] sm:$0xff] }
 0x3fa   : > { %vm4466_vm9 = vmand %vm5270_vm3, %vm1565_vm14  ;;  %vm1569_vm6 = vcmp.gt.f32.partialorder %v4084_v63, %v1540_v7  ;;  %v1771_v8 = vmul.f32 %v2201_v55, %v4048_v5  ;;  %vm5278_vm10 = vnez %v5277_v33  ;;  %vm1570_vm15 = vcmp.gt.f32.partialorder %v4097_v62, %v1540_v7 }
 0x3fb   : > { %vm4473_vm7 = vmand %vm5274_vm11, %vm1566_vm0  ;;  %v1799_v11 = vadd.f32 %v1768_v36, %v1767_v24  ;;  %v2205_v35 = vsel %vm4436_vm5, 1.0, %v5179_v18  ;;  %v2206_v5 = vsel %vm4451_vm1, 1.0, %v5179_v18  ;;  %vm5282_vm14 = vnez %v5281_v17 }
 0x3fc   : > { %1782 = vadd.xlane.f32.xlu1 %v1781_v50  ;;  %1753 = vadd.xlane.f32.xlu0 %v1752_v1  ;;  %vm4481_vm12 = vmand %vm5278_vm10, %vm1571_vm4  ;;  %v1796_v50 = vadd.f32 %v1766_v46, %v1765_v44  ;;  %v1772_v1 = vmul.f32 %v2202_v48, %v4061_v29  ;;  %v1769_v26 = vmul.f32 %v2199_v43, %v3979_v47  ;;  %v2203_v29 = vsel %vm4466_vm9, 1.0, %v5179_v18 }
 0x3fd   : > { %vm4495_vm2 = vmand %vm5282_vm14, %vm1572_vm13  ;;  %v1770_v4 = vmul.f32 %v2200_v28, %v3995_v34  ;;  %v2204_v15 = vsel %vm4473_vm7, 1.0, %v5179_v18  ;;  %vm5286_vm5 = vnez %v5285_v53  ;;  %vm5288_vm8 = vnez %v5287_v39  ;;  %v1823_v39 = vld [vmem:[#allocation6 + $0x18] sm:$0xff] }
 0x3fe   : > { %vm1595_vm0 = vmand %vm5286_vm5, %vm1569_vm6  ;;  %v1805_v47 = vadd.f32 %v1772_v1, %v1771_v8  ;;  %v1775_v34 = vmul.f32 %v2205_v35, %v4100_v38  ;;  %v1776_v9 = vmul.f32 %v2206_v5, %v5209_v3  ;;  %v2209_v42 = vsel %vm4481_vm12, 1.0, %v5179_v18  ;;  %v1821_v1 = vld [vmem:[#allocation6 + $0x8] sm:$0xff] }
 0x3ff   : > { %vm1596_vm1 = vmand %vm5288_vm8, %vm1570_vm15  ;;  %v1774_v45 = vmul.f32 %v2204_v15, %v4045_v51  ;;  %v2210_v40 = vsel %vm4495_vm2, 1.0, %v5179_v18  ;;  %v2207_v16 = vsel %vm1595_vm0, 1.0, %v5179_v18  ;;  %v1779_v3 = vmul.f32 %v2209_v42, %v5215_v12  ;;  %v1824_v15 = vld [vmem:[#allocation6 + $0x20] sm:$0xff] }
 0x400   : > { %1788 = vadd.xlane.f32.xlu1 %v1787_v0  ;;  %1785 = vadd.xlane.f32.xlu0 %v1784_v61  ;;  %v1802_v0 = vadd.f32 %v1770_v4, %v1769_v26  ;;  %v1773_v61 = vmul.f32 %v2203_v29, %v4032_v41  ;;  %v2208_v57 = vsel %vm1596_vm1, 1.0, %v5179_v18  ;;  %v1811_v38 = vadd.f32 %v1776_v9, %v1775_v34 }
 0x401   : > { %v1780_v19 = vmul.f32 %v2210_v40, %v5221_v30  ;;  %v1777_v41 = vmul.f32 %v2207_v16, %v4084_v63  ;;  %v1778_v51 = vmul.f32 %v2208_v57, %v4097_v62  ;;  %vm1872_vm4 = vcmask 7168   ;;  %v1826_v40 = vld [vmem:[#allocation6 + $0x30] sm:$0xff]  ;;  %v1825_v57 = vld [vmem:[#allocation6 + $0x28] sm:$0xff] }
 0x402   : > { %v1808_v2 = vadd.f32 %v1774_v45, %v1773_v61 }
 0x403   : > { %v1817_v23 = vadd.f32 %v1780_v19, %v1779_v3  ;;  %v1814_v14 = vadd.f32 %v1778_v51, %v1777_v41 }
 0x404   : > { %1794 = vadd.xlane.f32.xlu1 %v1793_v27  ;;  %1791 = vadd.xlane.f32.xlu0 %v1790_v52 }
 0x408   : > { %1800 = vadd.xlane.f32.xlu1 %v1799_v11  ;;  %1797 = vadd.xlane.f32.xlu0 %v1796_v50  ;;  %v1822_v11 = vld [vmem:[#allocation6 + $0x10] sm:$0xff] }
 0x40c   : > { %1806 = vadd.xlane.f32.xlu1 %v1805_v47  ;;  %1803 = vadd.xlane.f32.xlu0 %v1802_v0 }
 0x410   : > { %1812 = vadd.xlane.f32.xlu1 %v1811_v38  ;;  %1809 = vadd.xlane.f32.xlu0 %v1808_v2 }
 0x414   : > { %1818 = vadd.xlane.f32.xlu1 %v1817_v23  ;;  %1815 = vadd.xlane.f32.xlu0 %v1814_v14  ;;  %v1828_v14 = vld [vmem:[#allocation6 + $0x40] sm:$0xff] }
 0x455   : > { %v1653_v25 = vpop.xlane.xlu0 %1652 }
 0x459   : > { %v1656_v18 = vpop.xlane.xlu1 %1655  ;;  %v1659_v54 = vpop.xlane.xlu0 %1658 }
 0x45d   : > { %v1665_v56 = vpop.xlane.xlu1 %1664  ;;  %v1662_v22 = vpop.xlane.xlu0 %1661 }
 0x461   : > { %v1671_v55 = vpop.xlane.xlu1 %1670  ;;  %v1668_v12 = vpop.xlane.xlu0 %1667 }
 0x465   : > { %v4529_v21 = vpop.xlane.xlu1 %1676  ;;  %v4531_v30 = vpop.xlane.xlu0 %1673 }
 0x469   : > { %v4533_v63 = vpop.xlane.xlu1 %1682  ;;  %v4535_v62 = vpop.xlane.xlu0 %1679 }
 0x46d   : > { %v4537_v32 = vpop.xlane.xlu1 %1688  ;;  %v4539_v24 = vpop.xlane.xlu0 %1685 }
 0x471   : > { %v1721_v58 = vpop.xlane.xlu1 %1720  ;;  %v1718_v13 = vpop.xlane.xlu0 %1717 }
 0x472   : > { %v1833_v28 = vsub.f32 %v1653_v25, %v1718_v13  ;;  %v1834_v8 = vsub.f32 %v1656_v18, %v1721_v58  ;;  %v1827_v18 = vld [vmem:[#allocation6 + $0x38] sm:$0xff]  ;;  %v1830_v58 = vld [vmem:[#allocation6 + $0x50] sm:$0xff] }
 0x475   : > { %v1727_v7 = vpop.xlane.xlu1 %1726  ;;  %v1724_v36 = vpop.xlane.xlu0 %1723 }
 0x476   : > { %v1835_v33 = vsub.f32 %v1659_v54, %v1724_v36  ;;  %v1836_v10 = vsub.f32 %v1662_v22, %v1727_v7  ;;  %v1829_v7 = vld [vmem:[#allocation6 + $0x48] sm:$0xff] }
 0x479   : > { %v1733_v44 = vpop.xlane.xlu1 %1732  ;;  %v1730_v46 = vpop.xlane.xlu0 %1729 }
 0x47a   : > { %v1837_v26 = vsub.f32 %v1665_v56, %v1730_v46  ;;  %v1838_v42 = vsub.f32 %v1668_v12, %v1733_v44 }
 0x47d   : > { %v1739_v48 = vpop.xlane.xlu1 %1738  ;;  %v1736_v20 = vpop.xlane.xlu0 %1735 }
 0x47e   : > { %v1839_v0 = vsub.f32 %v1671_v55, %v1736_v20  ;;  %v1840_v19 = vsub.f32 %v4531_v30, %v1739_v48 }
 0x481   : > { %v4541_v59 = vpop.xlane.xlu1 %1744  ;;  %v1742_v27 = vpop.xlane.xlu0 %1741 }
 0x482   : > { %v1841_v41 = vsub.f32 %v4529_v21, %v1742_v27  ;;  %v1842_v55 = vsub.f32 %v4535_v62, %v4541_v59  ;;  %v1832_v59 = vld [vmem:[#allocation6 + $0x60] sm:$0xff] }
 0x485   : > { %v4543_v52 = vpop.xlane.xlu1 %1750  ;;  %v4545_v43 = vpop.xlane.xlu0 %1747 }
 0x486   : > { %v1843_v12 = vsub.f32 %v4533_v63, %v4545_v43  ;;  %v1844_v48 = vsub.f32 %v4539_v24, %v4543_v52  ;;  %v1831_v43 = vld [vmem:[#allocation6 + $0x58] sm:$0xff]  ;;  %v1891_v52 = vld [vmem:[#allocation5 + $0x8] sm:$0xff] (!%p2211_p13) }
 0x487   : > { %vm1904_vm9 = vcmp.gt.f32.partialorder (!%p2211_p13), %v1891_v52, 0.0 }
 0x489   : > { %v1783_v60 = vpop.xlane.xlu1 %1782  ;;  %v4547_v31 = vpop.xlane.xlu0 %1753 }
 0x48a   : > { %v1846_v49 = vadd.f32 %v1833_v28, %v1783_v60  ;;  %v1845_v62 = vsub.f32 %v4537_v32, %v4547_v31  ;;  %v1890_v32 = vld [vmem:[#allocation5] sm:$0xff] (!%p2211_p13) }
 0x48b   : > { %vm1903_vm3 = vcmp.gt.f32.partialorder (!%p2211_p13), %v1890_v32, 0.0 }
 0x48c   : > { %v1859_v37 = vadd.f32 %v1846_v49, %v1820_v6 }
 0x48d   : > { %v1789_v50 = vpop.xlane.xlu1 %1788  ;;  %v1786_v35 = vpop.xlane.xlu0 %1785 }
 0x48e   : > { %1873 = vst.msk [vmem:[#allocation6] sm:$0xff] %vm1872_vm4, %v1859_v37  ;;  %v1848_v5 = vadd.f32 %v1835_v33, %v1789_v50  ;;  %v1847_v17 = vadd.f32 %v1834_v8, %v1786_v35  ;;  %v1892_v33 = vld [vmem:[#allocation5 + $0x10] sm:$0xff] (!%p2211_p13)  ;;  %v1893_v35 = vld [vmem:[#allocation5 + $0x18] sm:$0xff] (!%p2211_p13) }
 0x48f   : > { %vm1905_vm11 = vcmp.gt.f32.partialorder (!%p2211_p13), %v1892_v33, 0.0  ;;  %vm1906_vm7 = vcmp.gt.f32.partialorder (!%p2211_p13), %v1893_v35, 0.0 }
 0x490   : > { %v1861_v4 = vadd.f32 %v1848_v5, %v1822_v11  ;;  %v1860_v29 = vadd.f32 %v1847_v17, %v1821_v1  ;;  %v5289_v11 = vld [vmem:[#allocation22_spill] sm:$0xff] (!%p2211_p13)  ;;  %v1894_v17 = vld [vmem:[#allocation5 + $0x20] sm:$0xff] (!%p2211_p13) }
 0x491   : > { %v1795_v53 = vpop.xlane.xlu1 %1794  ;;  %v1792_v47 = vpop.xlane.xlu0 %1791  ;;  %vm1928_vm13 = vcmp.lt.s32.totalorder (!%p2211_p13), %v5289_v11, 100  ;;  %vm1907_vm6 = vcmp.gt.f32.partialorder (!%p2211_p13), %v1894_v17, 0.0 }
 0x492   : > { %1875 = vst.msk [vmem:[#allocation6 + $0x10] sm:$0xff] %vm1872_vm4, %v1861_v4  ;;  %1874 = vst.msk [vmem:[#allocation6 + $0x8] sm:$0xff] %vm1872_vm4, %v1860_v29  ;;  %v1850_v34 = vadd.f32 %v1837_v26, %v1795_v53  ;;  %v1849_v9 = vadd.f32 %v1836_v10, %v1792_v47  ;;  %v1895_v4 = vld [vmem:[#allocation5 + $0x28] sm:$0xff] (!%p2211_p13) }
 0x493   : > { %vm1908_vm10 = vcmp.gt.f32.partialorder (!%p2211_p13), %v1895_v4, 0.0 }
 0x494   : > { %v1863_v61 = vadd.f32 %v1850_v34, %v1824_v15  ;;  %v1862_v45 = vadd.f32 %v1849_v9, %v1823_v39  ;;  %v1896_v39 = vld [vmem:[#allocation5 + $0x30] sm:$0xff] (!%p2211_p13)  ;;  %v1897_v34 = vld [vmem:[#allocation5 + $0x38] sm:$0xff] (!%p2211_p13) }
 0x495   : > { %v1801_v16 = vpop.xlane.xlu1 %1800  ;;  %v1798_v38 = vpop.xlane.xlu0 %1797  ;;  %v1942_v24 = vld [vmem:[#allocation6] sm:$0xff] (!%p2211_p13)  ;;  %vm1909_vm12 = vcmp.gt.f32.partialorder (!%p2211_p13), %v1896_v39, 0.0  ;;  %vm1910_vm15 = vcmp.gt.f32.partialorder (!%p2211_p13), %v1897_v34, 0.0 }
 0x496   : > { %1877 = vst.msk [vmem:[#allocation6 + $0x20] sm:$0xff] %vm1872_vm4, %v1863_v61  ;;  %1876 = vst.msk [vmem:[#allocation6 + $0x18] sm:$0xff] %vm1872_vm4, %v1862_v45  ;;  %v1852_v3 = vadd.f32 %v1839_v0, %v1801_v16  ;;  %v1851_v2 = vadd.f32 %v1838_v42, %v1798_v38  ;;  %v1955_v50 = vsel (!%p2211_p13), %vm1903_vm3, %v1942_v24, 0.0  ;;  %v1898_v0 = vld [vmem:[#allocation5 + $0x40] sm:$0xff] (!%p2211_p13)  ;;  %v1899_v16 = vld [vmem:[#allocation5 + $0x48] sm:$0xff] (!%p2211_p13) }
 0x497   : > { %1968 = vst.msk [vmem:[%s4656_s4] sm:$0xff] (!%p2211_p13), %vm1872_vm4, %v1955_v50  ;;  %vm1911_vm14 = vcmp.gt.f32.partialorder (!%p2211_p13), %v1898_v0, 0.0  ;;  %v1900_v38 = vld [vmem:[#allocation5 + $0x50] sm:$0xff] (!%p2211_p13)  ;;  %vm1912_vm2 = vcmp.gt.f32.partialorder (!%p2211_p13), %v1899_v16, 0.0 }
 0x498   : > { %v1865_v51 = vadd.f32 %v1852_v3, %v1826_v40  ;;  %v1864_v23 = vadd.f32 %v1851_v2, %v1825_v57  ;;  %vm1913_vm5 = vcmp.gt.f32.partialorder (!%p2211_p13), %v1900_v38, 0.0 }
 0x499   : > { %v1807_v25 = vpop.xlane.xlu1 %1806  ;;  %v1804_v54 = vpop.xlane.xlu0 %1803  ;;  %v1943_v31 = vld [vmem:[#allocation6 + $0x8] sm:$0xff] (!%p2211_p13)  ;;  %v1944_v37 = vld [vmem:[#allocation6 + $0x10] sm:$0xff] (!%p2211_p13) }
 0x49a   : > { %1879 = vst.msk [vmem:[#allocation6 + $0x30] sm:$0xff] %vm1872_vm4, %v1865_v51  ;;  %1878 = vst.msk [vmem:[#allocation6 + $0x28] sm:$0xff] %vm1872_vm4, %v1864_v23  ;;  %v1854_v56 = vadd.f32 %v1841_v41, %v1807_v25  ;;  %v1853_v22 = vadd.f32 %v1840_v19, %v1804_v54  ;;  %v1956_v1 = vsel (!%p2211_p13), %vm1904_vm9, %v1943_v31, 0.0  ;;  %v1957_v10 = vsel (!%p2211_p13), %vm1905_vm11, %v1944_v37, 0.0  ;;  %v1901_v19 = vld [vmem:[#allocation5 + $0x58] sm:$0xff] (!%p2211_p13) }
 0x49b   : > { %1969 = vst.msk [vmem:[%s4656_s4 + $0x8] sm:$0xff] (!%p2211_p13), %vm1872_vm4, %v1956_v1  ;;  %1970 = vst.msk [vmem:[%s4656_s4 + $0x10] sm:$0xff] (!%p2211_p13), %vm1872_vm4, %v1957_v10  ;;  %vm1914_vm0 = vcmp.gt.f32.partialorder (!%p2211_p13), %v1901_v19, 0.0 }
 0x49c   : > { %v1867_v30 = vadd.f32 %v1854_v56, %v1828_v14  ;;  %v1866_v21 = vadd.f32 %v1853_v22, %v1827_v18  ;;  %v1902_v14 = vld [vmem:[#allocation5 + $0x60] sm:$0xff] (!%p2211_p13) }
 0x49d   : > { %v1813_v13 = vpop.xlane.xlu1 %1812  ;;  %v1810_v36 = vpop.xlane.xlu0 %1809  ;;  %v1945_v5 = vld [vmem:[#allocation6 + $0x18] sm:$0xff] (!%p2211_p13)  ;;  %v1946_v26 = vld [vmem:[#allocation6 + $0x20] sm:$0xff] (!%p2211_p13)  ;;  %vm1915_vm8 = vcmp.gt.f32.partialorder (!%p2211_p13), %v1902_v14, 0.0 }
 0x49e   : > { %1881 = vst.msk [vmem:[#allocation6 + $0x40] sm:$0xff] %vm1872_vm4, %v1867_v30  ;;  %1880 = vst.msk [vmem:[#allocation6 + $0x38] sm:$0xff] %vm1872_vm4, %v1866_v21  ;;  %v1856_v44 = vadd.f32 %v1843_v12, %v1813_v13  ;;  %v1855_v46 = vadd.f32 %v1842_v55, %v1810_v36  ;;  %v1958_v15 = vsel (!%p2211_p13), %vm1906_vm7, %v1945_v5, 0.0  ;;  %v1959_v53 = vsel (!%p2211_p13), %vm1907_vm6, %v1946_v26, 0.0 }
 0x49f   : > { %1971 = vst.msk [vmem:[%s4656_s4 + $0x18] sm:$0xff] (!%p2211_p13), %vm1872_vm4, %v1958_v15  ;;  %1972 = vst.msk [vmem:[%s4656_s4 + $0x20] sm:$0xff] (!%p2211_p13), %vm1872_vm4, %v1959_v53 }
 0x4a0   : > { %v1869_v20 = vadd.f32 %v1856_v44, %v1830_v58  ;;  %v1868_v63 = vadd.f32 %v1855_v46, %v1829_v7  ;;  %1889 = sbr.rel (%p2211_p13) target bundleno = 1200 (0x4b0), region = 56  ;;  %vm1941_vm1 = vmand (!%p2211_p13), %vm1915_vm8, %vm1928_vm13 }
 0x4a1   : > { %v1819_v27 = vpop.xlane.xlu1 %1818  ;;  %v1816_v28 = vpop.xlane.xlu0 %1815  ;;  %v1947_v29 = vld [vmem:[#allocation6 + $0x28] sm:$0xff] (!%p2211_p13)  ;;  %v1948_v47 = vld [vmem:[#allocation6 + $0x30] sm:$0xff] (!%p2211_p13) }
 0x4a2   : > { %1883 = vst.msk [vmem:[#allocation6 + $0x50] sm:$0xff] %vm1872_vm4, %v1869_v20  ;;  %1882 = vst.msk [vmem:[#allocation6 + $0x48] sm:$0xff] %vm1872_vm4, %v1868_v63  ;;  %v1858_v6 = vadd.f32 %v1845_v62, %v1819_v27  ;;  %v1857_v60 = vadd.f32 %v1844_v48, %v1816_v28  ;;  %v1960_v9 = vsel (!%p2211_p13), %vm1908_vm10, %v1947_v29, 0.0  ;;  %v1961_v45 = vsel (!%p2211_p13), %vm1909_vm12, %v1948_v47, 0.0 }
 0x4a3   : > { %1973 = vst.msk [vmem:[%s4656_s4 + $0x28] sm:$0xff] (!%p2211_p13), %vm1872_vm4, %v1960_v9  ;;  %1974 = vst.msk [vmem:[%s4656_s4 + $0x30] sm:$0xff] (!%p2211_p13), %vm1872_vm4, %v1961_v45 }
 0x4a4   : > { %v1871_v49 = vadd.f32 %v1858_v6, %v1832_v59  ;;  %v1870_v8 = vadd.f32 %v1857_v60, %v1831_v43 }
 0x4a5   : > { %v1949_v42 = vld [vmem:[#allocation6 + $0x38] sm:$0xff] (!%p2211_p13)  ;;  %v1950_v61 = vld [vmem:[#allocation6 + $0x40] sm:$0xff] (!%p2211_p13) }
 0x4a6   : > { %1885 = vst.msk [vmem:[#allocation6 + $0x60] sm:$0xff] %vm1872_vm4, %v1871_v49  ;;  %1884 = vst.msk [vmem:[#allocation6 + $0x58] sm:$0xff] %vm1872_vm4, %v1870_v8  ;;  %v1962_v40 = vsel (!%p2211_p13), %vm1910_vm15, %v1949_v42, 0.0  ;;  %v1963_v3 = vsel (!%p2211_p13), %vm1911_vm14, %v1950_v61, 0.0 }
 0x4a7   : > { %1975 = vst.msk [vmem:[%s4656_s4 + $0x38] sm:$0xff] %vm1872_vm4, %v1962_v40  ;;  %1976 = vst.msk [vmem:[%s4656_s4 + $0x40] sm:$0xff] %vm1872_vm4, %v1963_v3 }
 0x4a9   : > { %v1951_v57 = vld [vmem:[#allocation6 + $0x48] sm:$0xff]  ;;  %v1952_v2 = vld [vmem:[#allocation6 + $0x50] sm:$0xff] }
 0x4aa   : > { %v1964_v51 = vsel %vm1912_vm2, %v1951_v57, 0.0  ;;  %v1965_v23 = vsel %vm1913_vm5, %v1952_v2, 0.0 }
 0x4ab   : > { %1977 = vst.msk [vmem:[%s4656_s4 + $0x48] sm:$0xff] %vm1872_vm4, %v1964_v51  ;;  %1978 = vst.msk [vmem:[%s4656_s4 + $0x50] sm:$0xff] %vm1872_vm4, %v1965_v23 }
 0x4ad   : > { %v1953_v41 = vld [vmem:[#allocation6 + $0x58] sm:$0xff]  ;;  %v1954_v25 = vld [vmem:[#allocation6 + $0x60] sm:$0xff] }
 0x4ae   : > { %v1966_v18 = vsel %vm1914_vm0, %v1953_v41, 0.0  ;;  %v1967_v54 = vsel %vm1941_vm1, %v1954_v25, 0.0 }
 0x4af   : > { %1979 = vst.msk [vmem:[%s4656_s4 + $0x58] sm:$0xff] %vm1872_vm4, %v1966_v18  ;;  %1980 = vst.msk [vmem:[%s4656_s4 + $0x60] sm:$0xff] %vm1872_vm4, %v1967_v54 }
 0x4b0 PF: > { %s17_s22 = sadd.s32 1, %s2505_s22   ;;  %s5290_s23 = smov %s2610_s15 }
 0x4b1   : > { %p14_p1 = scmp.ge.s32.totalorder %s17_s22, 6   ;;  %s5291_s15 = smov %s2481_s16 }
 0x4b2   : > { %s5292_s16 = smov %s2485_s17  ;;  %s5293_s17 = smov %s5290_s23 }
 0x4b3   : > { %s5294_s18 = smov %s2497_s20  ;;  %s5295_s19 = smov %s2501_s21 }
 0x4b4   : > { %s5296_s20 = smov %s5299_s24  ;;  %s5297_s21 = smov %s5303_s25 }
 0x4b5   :  { %16 = sbr.rel (!%p14_p1) target bundleno = 5 (0x5), region = 103 }
 0x4bc   :  { %2003 = vsyncpa [#allocation8], 1 }
 0x4bd   :  { %2005 = vsyncpa [#allocation8 + $0x1], 1 }

</bundles_post_ra>
